<compile_context>
chip_gen: v6e
topology: v6e:2x2x1
jax: 0.10.0
libtpu: 0.0.40
codegen_flags: <defaults>
</compile_context>

<pallas_src>
import functools

import jax
import jax.numpy as jnp
import numpy as np
from jax.experimental import pallas as pl
from jax.experimental.pallas import tpu as pltpu


# ----------------------------- shared math helpers -----------------------------
def _layernorm(x, gamma, beta, eps=1e-5):
    """LayerNorm over the last dim, f32 statistics (matches torch.nn.LayerNorm)."""
    mu = jnp.mean(x, axis=-1, keepdims=True)
    xc = x - mu
    var = jnp.mean(xc * xc, axis=-1, keepdims=True)
    return xc * jax.lax.rsqrt(var + eps) * gamma + beta


def _mha_core(q, k, v, num_heads, *, in_kernel):
    """Scaled-dot-product attention with heads batched into single contractions.

    q: (Sq, D), k/v: (Sk, D), all f32. The 1/sqrt(dk) scale is already folded into the
    Q projection.  MXU matmuls use bf16 operands with f32 accumulation; softmax stats f32.
    """
    D = q.shape[-1]
    dk = D // num_heads

    def split_heads(t):
        t = t.astype(jnp.bfloat16)
        # lane-aligned slices stacked along a new leading (batch) head axis: (H, S, dk)
        return jnp.stack([t[:, h * dk:(h + 1) * dk] for h in range(num_heads)], axis=0)

    qh, kh, vh = split_heads(q), split_heads(k), split_heads(v)
    s = jnp.einsum("hqd,hkd->hqk", qh, kh, preferred_element_type=jnp.float32)
    s = s - jnp.max(s, axis=-1, keepdims=True)          # numerically stable softmax
    p = jnp.exp(s)
    denom = jnp.sum(p, axis=-1, keepdims=True)
    inv = pl.reciprocal(denom, approx=True) if in_kernel else 1.0 / denom
    p = (p * inv).astype(jnp.bfloat16)
    o = jnp.einsum("hqk,hkd->hqd", p, vh, preferred_element_type=jnp.float32)  # (H, Sq, dk)
    return jnp.concatenate([o[h] for h in range(num_heads)], axis=-1)          # (Sq, D) f32


# ----------------------------------- Pallas kernel ---------------------------------
def decoder_layer_kernel(num_heads,
                         x_q_ref, x_full_ref, enc_ref,
                         w_self_qkv_ref, b_self_qkv_ref,
                         w_cross_kv_ref, b_cross_kv_ref,
                         w_misc_ref, w_ffn1_ref, b_ffn1_ref, w_ffn2_ref,
                         vecs_ref,
                         out_ref,
                         kv_self_scr, kv_cross_scr):
    # TODO(synk): tgt_mask / memory_mask are not supported (module default: None).
    qi = pl.program_id(1)
    D = x_q_ref.shape[-1]

    # ---- once per batch row: fused K|V projections into persistent VMEM scratch ----
    @pl.when(qi == 0)
    def _():
        xf = x_full_ref[0].astype(jnp.bfloat16)                    # (St, D)
        kv_self_scr[...] = (jnp.dot(xf, w_self_qkv_ref[:, D:],
                                    preferred_element_type=jnp.float32)
                            + b_self_qkv_ref[:, D:])
        ef = enc_ref[0].astype(jnp.bfloat16)                       # (Ss, D)
        kv_cross_scr[...] = (jnp.dot(ef, w_cross_kv_ref[...],
                                     preferred_element_type=jnp.float32)
                             + b_cross_kv_ref[...])

    vecs = vecs_ref[...]                                           # (10, D) packed vectors

    def row(i):                                                    # (1, D) f32
        return vecs[i:i + 1, :]

    x = x_q_ref[0]                                                 # (tq, D) f32 query tile

    # ---- self-attention (scale folded into Wq); dropout1 = identity ----
    q_self = (jnp.dot(x.astype(jnp.bfloat16), w_self_qkv_ref[:, :D],
                      preferred_element_type=jnp.float32) + b_self_qkv_ref[:, :D])
    kv_s = kv_self_scr[...]
    sa = _mha_core(q_self, kv_s[:, :D], kv_s[:, D:], num_heads, in_kernel=True)
    sa = (jnp.dot(sa.astype(jnp.bfloat16), w_misc_ref[0],
                  preferred_element_type=jnp.float32) + row(0))
    y = _layernorm(x + sa, row(4), row(5))

    # ---- cross-attention (Q from decoder stream, K/V from encoder output) ----
    q_cross = (jnp.dot(y.astype(jnp.bfloat16), w_misc_ref[1],
                       preferred_element_type=jnp.float32) + row(1))
    kv_c = kv_cross_scr[...]
    ca = _mha_core(q_cross, kv_c[:, :D], kv_c[:, D:], num_heads, in_kernel=True)
    ca = (jnp.dot(ca.astype(jnp.bfloat16), w_misc_ref[2],
                  preferred_element_type=jnp.float32) + row(2))
    y = _layernorm(y + ca, row(6), row(7))

    # ---- position-wise FFN (Linear -> ReLU -> Linear) ----
    h = (jnp.dot(y.astype(jnp.bfloat16), w_ffn1_ref[...],
                 preferred_element_type=jnp.float32) + b_ffn1_ref[...])
    h = jnp.maximum(h, 0.0)
    f = (jnp.dot(h.astype(jnp.bfloat16), w_ffn2_ref[...],
                 preferred_element_type=jnp.float32) + row(3))
    y = _layernorm(y + f, row(8), row(9))

    out_ref[0] = y


# ------------------------------------ wrapper ---------------------------------------
def decoder_layer(x, enc_output, packed, num_heads, *, tq=None):
    B, St, D = x.shape
    _, Ss, _ = enc_output.shape
    F = packed["w_ffn1"].shape[1]
    if tq is None:
        tq = min(St, 128)
    assert St % tq == 0 and tq % 8 == 0, "query tile must be sublane-aligned and divide St"
    nq = St // tq

    kernel = functools.partial(decoder_layer_kernel, num_heads)

    in_specs = [
        pl.BlockSpec((1, tq, D), lambda b, q: (b, q, 0)),    # query tile of x
        pl.BlockSpec((1, St, D), lambda b, q: (b, 0, 0)),    # full x (self-attn K/V source)
        pl.BlockSpec((1, Ss, D), lambda b, q: (b, 0, 0)),    # full encoder output
        pl.BlockSpec((D, 3 * D), lambda b, q: (0, 0)),       # W_q|W_k|W_v  (self)
        pl.BlockSpec((1, 3 * D), lambda b, q: (0, 0)),       # b_q|b_k|b_v  (self)
        pl.BlockSpec((D, 2 * D), lambda b, q: (0, 0)),       # W_k|W_v      (cross)
        pl.BlockSpec((1, 2 * D), lambda b, q: (0, 0)),       # b_k|b_v      (cross)
        pl.BlockSpec((3, D, D), lambda b, q: (0, 0, 0)),     # [Wo_self, Wq_cross, Wo_cross]
        pl.BlockSpec((D, F), lambda b, q: (0, 0)),           # FFN W1
        pl.BlockSpec((1, F), lambda b, q: (0, 0)),           # FFN b1
        pl.BlockSpec((F, D), lambda b, q: (0, 0)),           # FFN W2
        pl.BlockSpec((10, D), lambda b, q: (0, 0)),          # packed D-length vectors
    ]

    return pl.pallas_call(
        kernel,
        out_shape=jax.ShapeDtypeStruct((B, St, D), jnp.float32),
        grid=(B, nq),
        in_specs=in_specs,
        out_specs=pl.BlockSpec((1, tq, D), lambda b, q: (b, q, 0)),
        scratch_shapes=[
            pltpu.VMEM((St, 2 * D), jnp.float32),    # self-attn  K | V (per batch row)
            pltpu.VMEM((Ss, 2 * D), jnp.float32),    # cross-attn K | V (per batch row)
        ],
        compiler_params=pltpu.CompilerParams(
            dimension_semantics=("parallel", "arbitrary"),
            vmem_limit_bytes=64 * 1024 * 1024,
        ),
    )(x, x, enc_output,
      packed["w_self_qkv"], packed["b_self_qkv"],
      packed["w_cross_kv"], packed["b_cross_kv"],
      packed["w_misc"], packed["w_ffn1"], packed["b_ffn1"], packed["w_ffn2"],
      packed["vecs"])


# -------------------------------- parameter init / packing ---------------------------
def init_params(key, d_model, d_ffn):
    ks = jax.random.split(key, 10)

    def lin(k, din, dout):
        kw, kb = jax.random.split(k)
        w = jax.random.normal(kw, (din, dout), jnp.float32) / np.sqrt(din)
        b = jax.random.normal(kb, (1, dout), jnp.float32) * 0.01
        return w, b

    p = {}
    p["wq1"], p["bq1"] = lin(ks[0], d_model, d_model)
    p["wk1"], p["bk1"] = lin(ks[1], d_model, d_model)
    p["wv1"], p["bv1"] = lin(ks[2], d_model, d_model)
    p["wo1"], p["bo1"] = lin(ks[3], d_model, d_model)
    p["wq2"], p["bq2"] = lin(ks[4], d_model, d_model)
    p["wk2"], p["bk2"] = lin(ks[5], d_model, d_model)
    p["wv2"], p["bv2"] = lin(ks[6], d_model, d_model)
    p["wo2"], p["bo2"] = lin(ks[7], d_model, d_model)
    p["w1"], p["b1"] = lin(ks[8], d_model, d_ffn)
    p["w2"], p["b2"] = lin(ks[9], d_ffn, d_model)
    for i in (1, 2, 3):                                  # PyTorch LayerNorm defaults
        p[f"g{i}"] = jnp.ones((1, d_model), jnp.float32)
        p[f"be{i}"] = jnp.zeros((1, d_model), jnp.float32)
    return p


def pack_params(p, d_model, num_heads):
    """Host-side, mathematically-equivalent repacking of the PyTorch parameters:
    fuse Q/K/V, fold 1/sqrt(dk) into the Q projections, cast matmul weights to bf16."""
    dk = d_model // num_heads
    scale = 1.0 / float(np.sqrt(dk))
    w_self_qkv = jnp.concatenate([p["wq1"] * scale, p["wk1"], p["wv1"]], axis=1)
    b_self_qkv = jnp.concatenate([p["bq1"] * scale, p["bk1"], p["bv1"]], axis=1)
    w_cross_kv = jnp.concatenate([p["wk2"], p["wv2"]], axis=1)
    b_cross_kv = jnp.concatenate([p["bk2"], p["bv2"]], axis=1)
    w_misc = jnp.stack([p["wo1"], p["wq2"] * scale, p["wo2"]], axis=0)       # (3, D, D)
    vecs = jnp.concatenate([p["bo1"], p["bq2"] * scale, p["bo2"], p["b2"],
                            p["g1"], p["be1"], p["g2"], p["be2"], p["g3"], p["be3"]],
                           axis=0)                                           # (10, D)
    return dict(
        w_self_qkv=w_self_qkv.astype(jnp.bfloat16),
        b_self_qkv=b_self_qkv.astype(jnp.float32),
        w_cross_kv=w_cross_kv.astype(jnp.bfloat16),
        b_cross_kv=b_cross_kv.astype(jnp.float32),
        w_misc=w_misc.astype(jnp.bfloat16),
        w_ffn1=p["w1"].astype(jnp.bfloat16),
        b_ffn1=p["b1"].astype(jnp.float32),
        w_ffn2=p["w2"].astype(jnp.bfloat16),
        vecs=vecs.astype(jnp.float32),
    )


# ------------------------------- pure-JAX reference ---------------------------------
def reference(x, enc, pk, num_heads):
    """Same math recipe as the kernel (bf16 MXU operands, f32 accumulation/statistics)."""
    D = x.shape[-1]

    def one(xb, eb):
        xbf = xb.astype(jnp.bfloat16)
        q_self = (jnp.dot(xbf, pk["w_self_qkv"][:, :D],
                          preferred_element_type=jnp.float32) + pk["b_self_qkv"][:, :D])
        kv_s = (jnp.dot(xbf, pk["w_self_qkv"][:, D:],
                        preferred_element_type=jnp.float32) + pk["b_self_qkv"][:, D:])
        sa = _mha_core(q_self, kv_s[:, :D], kv_s[:, D:], num_heads, in_kernel=False)
        sa = (jnp.dot(sa.astype(jnp.bfloat16), pk["w_misc"][0],
                      preferred_element_type=jnp.float32) + pk["vecs"][0:1])
        y = _layernorm(xb + sa, pk["vecs"][4:5], pk["vecs"][5:6])

        q_cross = (jnp.dot(y.astype(jnp.bfloat16), pk["w_misc"][1],
                           preferred_element_type=jnp.float32) + pk["vecs"][1:2])
        kv_c = (jnp.dot(eb.astype(jnp.bfloat16), pk["w_cross_kv"],
                        preferred_element_type=jnp.float32) + pk["b_cross_kv"])
        ca = _mha_core(q_cross, kv_c[:, :D], kv_c[:, D:], num_heads, in_kernel=False)
        ca = (jnp.dot(ca.astype(jnp.bfloat16), pk["w_misc"][2],
                      preferred_element_type=jnp.float32) + pk["vecs"][2:3])
        y = _layernorm(y + ca, pk["vecs"][6:7], pk["vecs"][7:8])

        h = jnp.maximum(jnp.dot(y.astype(jnp.bfloat16), pk["w_ffn1"],
                                preferred_element_type=jnp.float32) + pk["b_ffn1"], 0.0)
        f = (jnp.dot(h.astype(jnp.bfloat16), pk["w_ffn2"],
                     preferred_element_type=jnp.float32) + pk["vecs"][3:4])
        return _layernorm(y + f, pk["vecs"][8:9], pk["vecs"][9:10])

    return jax.vmap(one)(x, enc)


if __name__ == "__main__":
    # small but lane-dense shapes: d_model and per-head dk are multiples of 128
    batch, tgt_seq, src_seq = 2, 16, 24
    d_model, num_heads, d_ffn = 256, 2, 512
    tq = 8          # 2 query tiles per batch row -> exercises K/V scratch reuse across tiles

    key = jax.random.PRNGKey(0)
    kx, ke, kp = jax.random.split(key, 3)
    x = jax.random.normal(kx, (batch, tgt_seq, d_model), jnp.float32)
    enc_output = jax.random.normal(ke, (batch, src_seq, d_model), jnp.float32)

    raw = init_params(kp, d_model, d_ffn)
    packed = pack_params(raw, d_model, num_heads)

    out = jax.block_until_ready(decoder_layer(x, enc_output, packed, num_heads, tq=tq))
    ref = jax.block_until_ready(reference(x, enc_output, packed, num_heads))

    assert out.shape == (batch, tgt_seq, d_model)
    # tolerance covers approx-reciprocal softmax normalization + reduction-order differences
    np.testing.assert_allclose(np.asarray(out), np.asarray(ref), rtol=1e-2, atol=1e-2)

    print("KERNEL_OK")
</pallas_src>

<mosaic_0001>
module attributes {stable_mosaic.version = 11 : i64} {
  func.func @decoder_layer_kernel(%arg0: i32, %arg1: i32, %arg2: memref<1x8x256xf32, #tpu.memory_space<vmem>>, %arg3: memref<1x16x256xf32, #tpu.memory_space<vmem>>, %arg4: memref<1x24x256xf32, #tpu.memory_space<vmem>>, %arg5: memref<256x768xbf16, #tpu.memory_space<vmem>>, %arg6: memref<1x768xf32, #tpu.memory_space<vmem>>, %arg7: memref<256x512xbf16, #tpu.memory_space<vmem>>, %arg8: memref<1x512xf32, #tpu.memory_space<vmem>>, %arg9: memref<3x256x256xbf16, #tpu.memory_space<vmem>>, %arg10: memref<256x512xbf16, #tpu.memory_space<vmem>>, %arg11: memref<1x512xf32, #tpu.memory_space<vmem>>, %arg12: memref<512x256xbf16, #tpu.memory_space<vmem>>, %arg13: memref<10x256xf32, #tpu.memory_space<vmem>>, %arg14: memref<1x8x256xf32, #tpu.memory_space<vmem>>, %arg15: memref<16x512xf32, #tpu.memory_space<vmem>>, %arg16: memref<24x512xf32, #tpu.memory_space<vmem>>) attributes {dimension_semantics = [#tpu.dimension_semantics<parallel>, #tpu.dimension_semantics<arbitrary>], iteration_bounds = array<i64: 2, 2>, scalar_prefetch = 0 : i64, scratch_operands = 2 : i64, tpu.core_type = #tpu.core_type<tc>, window_params = [{transform_indices = @transform_0, window_bounds = array<i64: 1, 8, 256>}, {transform_indices = @transform_1, window_bounds = array<i64: 1, 16, 256>}, {transform_indices = @transform_2, window_bounds = array<i64: 1, 24, 256>}, {pipeline_mode = #tpu.pipeline_mode<synchronous>, transform_indices = @transform_3, window_bounds = array<i64: 256, 768>}, {pipeline_mode = #tpu.pipeline_mode<synchronous>, transform_indices = @transform_4, window_bounds = array<i64: 1, 768>}, {pipeline_mode = #tpu.pipeline_mode<synchronous>, transform_indices = @transform_5, window_bounds = array<i64: 256, 512>}, {pipeline_mode = #tpu.pipeline_mode<synchronous>, transform_indices = @transform_6, window_bounds = array<i64: 1, 512>}, {pipeline_mode = #tpu.pipeline_mode<synchronous>, transform_indices = @transform_7, window_bounds = array<i64: 3, 256, 256>}, {pipeline_mode = #tpu.pipeline_mode<synchronous>, transform_indices = @transform_8, window_bounds = array<i64: 256, 512>}, {pipeline_mode = #tpu.pipeline_mode<synchronous>, transform_indices = @transform_9, window_bounds = array<i64: 1, 512>}, {pipeline_mode = #tpu.pipeline_mode<synchronous>, transform_indices = @transform_10, window_bounds = array<i64: 512, 256>}, {pipeline_mode = #tpu.pipeline_mode<synchronous>, transform_indices = @transform_11, window_bounds = array<i64: 10, 256>}, {transform_indices = @transform_12, window_bounds = array<i64: 1, 8, 256>}]} {
    %c0_i32 = arith.constant 0 : i32
    %0 = arith.cmpi eq, %arg1, %c0_i32 : i32
    %1 = arith.extui %0 : i1 to i32
    %c0_i32_0 = arith.constant 0 : i32
    %2 = arith.cmpi ne, %1, %c0_i32_0 : i32
    scf.if %2 {
      %c0_58 = arith.constant 0 : index
      %c0_59 = arith.constant 0 : index
      %c0_60 = arith.constant 0 : index
      %197 = vector.load %arg3[%c0_58, %c0_59, %c0_60] : memref<1x16x256xf32, #tpu.memory_space<vmem>>, vector<1x16x256xf32>
      %198 = vector.shape_cast %197 : vector<1x16x256xf32> to vector<16x256xf32>
      %199 = arith.truncf %198 : vector<16x256xf32> to vector<16x256xbf16>
      %c0_61 = arith.constant 0 : index
      %c256 = arith.constant 256 : index
      %200 = vector.load %arg5[%c0_61, %c256] : memref<256x768xbf16, #tpu.memory_space<vmem>>, vector<256x512xbf16>
      %cst_62 = arith.constant dense<0.000000e+00> : vector<16x512xf32>
      %201 = tpu.matmul %199, %200, %cst_62 {dimension_numbers = #tpu.dot_dimension_numbers<[1], [0], [0], [1], [0, 0, 1, 1], [], []>} : vector<16x256xbf16>, vector<256x512xbf16>, vector<16x512xf32> -> vector<16x512xf32>
      %c0_63 = arith.constant 0 : index
      %c256_64 = arith.constant 256 : index
      %202 = vector.load %arg6[%c0_63, %c256_64] : memref<1x768xf32, #tpu.memory_space<vmem>>, vector<1x512xf32>
      %203 = vector.broadcast %202 : vector<1x512xf32> to vector<16x512xf32>
      %204 = arith.addf %201, %203 : vector<16x512xf32>
      %c0_65 = arith.constant 0 : index
      %c0_66 = arith.constant 0 : index
      %205 = vector.load %arg15[%c0_65, %c0_66] : memref<16x512xf32, #tpu.memory_space<vmem>>, vector<16x512xf32>
      tpu.vector_store %arg15[%c0_65, %c0_66], %204 {strides = array<i32>} : memref<16x512xf32, #tpu.memory_space<vmem>>, vector<16x512xf32>,
      %c0_67 = arith.constant 0 : index
      %c0_68 = arith.constant 0 : index
      %c0_69 = arith.constant 0 : index
      %206 = vector.load %arg4[%c0_67, %c0_68, %c0_69] : memref<1x24x256xf32, #tpu.memory_space<vmem>>, vector<1x24x256xf32>
      %207 = vector.shape_cast %206 : vector<1x24x256xf32> to vector<24x256xf32>
      %208 = arith.truncf %207 : vector<24x256xf32> to vector<24x256xbf16>
      %c0_70 = arith.constant 0 : index
      %c0_71 = arith.constant 0 : index
      %209 = vector.load %arg7[%c0_70, %c0_71] : memref<256x512xbf16, #tpu.memory_space<vmem>>, vector<256x512xbf16>
      %cst_72 = arith.constant dense<0.000000e+00> : vector<24x512xf32>
      %210 = tpu.matmul %208, %209, %cst_72 {dimension_numbers = #tpu.dot_dimension_numbers<[1], [0], [0], [1], [0, 0, 1, 1], [], []>} : vector<24x256xbf16>, vector<256x512xbf16>, vector<24x512xf32> -> vector<24x512xf32>
      %c0_73 = arith.constant 0 : index
      %c0_74 = arith.constant 0 : index
      %211 = vector.load %arg8[%c0_73, %c0_74] : memref<1x512xf32, #tpu.memory_space<vmem>>, vector<1x512xf32>
      %212 = vector.broadcast %211 : vector<1x512xf32> to vector<24x512xf32>
      %213 = arith.addf %210, %212 : vector<24x512xf32>
      %c0_75 = arith.constant 0 : index
      %c0_76 = arith.constant 0 : index
      %214 = vector.load %arg16[%c0_75, %c0_76] : memref<24x512xf32, #tpu.memory_space<vmem>>, vector<24x512xf32>
      tpu.vector_store %arg16[%c0_75, %c0_76], %213 {strides = array<i32>} : memref<24x512xf32, #tpu.memory_space<vmem>>, vector<24x512xf32>,
    } else {
    }
    %c0 = arith.constant 0 : index
    %c0_1 = arith.constant 0 : index
    %3 = vector.load %arg13[%c0, %c0_1] : memref<10x256xf32, #tpu.memory_space<vmem>>, vector<10x256xf32>
    %c0_2 = arith.constant 0 : index
    %c0_3 = arith.constant 0 : index
    %c0_4 = arith.constant 0 : index
    %4 = vector.load %arg2[%c0_2, %c0_3, %c0_4] : memref<1x8x256xf32, #tpu.memory_space<vmem>>, vector<1x8x256xf32>
    %5 = vector.shape_cast %4 : vector<1x8x256xf32> to vector<8x256xf32>
    %6 = arith.truncf %5 : vector<8x256xf32> to vector<8x256xbf16>
    %c0_5 = arith.constant 0 : index
    %c0_6 = arith.constant 0 : index
    %7 = vector.load %arg5[%c0_5, %c0_6] : memref<256x768xbf16, #tpu.memory_space<vmem>>, vector<256x256xbf16>
    %cst = arith.constant dense<0.000000e+00> : vector<8x256xf32>
    %8 = tpu.matmul %6, %7, %cst {dimension_numbers = #tpu.dot_dimension_numbers<[1], [0], [0], [1], [0, 0, 1, 1], [], []>} : vector<8x256xbf16>, vector<256x256xbf16>, vector<8x256xf32> -> vector<8x256xf32>
    %c0_7 = arith.constant 0 : index
    %c0_8 = arith.constant 0 : index
    %9 = vector.load %arg6[%c0_7, %c0_8] : memref<1x768xf32, #tpu.memory_space<vmem>>, vector<1x256xf32>
    %10 = vector.broadcast %9 : vector<1x256xf32> to vector<8x256xf32>
    %11 = arith.addf %8, %10 : vector<8x256xf32>
    %c0_9 = arith.constant 0 : index
    %c0_10 = arith.constant 0 : index
    %12 = vector.load %arg15[%c0_9, %c0_10] : memref<16x512xf32, #tpu.memory_space<vmem>>, vector<16x512xf32>
    %13 = vector.extract_strided_slice %12 {offsets = [0, 0], sizes = [16, 256], strides = [1, 1]} : vector<16x512xf32> to vector<16x256xf32>
    %14 = vector.extract_strided_slice %12 {offsets = [0, 256], sizes = [16, 256], strides = [1, 1]} : vector<16x512xf32> to vector<16x256xf32>
    %15 = arith.truncf %11 : vector<8x256xf32> to vector<8x256xbf16>
    %16 = vector.extract_strided_slice %15 {offsets = [0, 0], sizes = [8, 128], strides = [1, 1]} : vector<8x256xbf16> to vector<8x128xbf16>
    %17 = vector.extract_strided_slice %15 {offsets = [0, 128], sizes = [8, 128], strides = [1, 1]} : vector<8x256xbf16> to vector<8x128xbf16>
    %18 = vector.shape_cast %16 : vector<8x128xbf16> to vector<1x8x128xbf16>
    %19 = vector.shape_cast %17 : vector<8x128xbf16> to vector<1x8x128xbf16>
    %20 = tpu.concatenate %18, %19 in 0 : vector<1x8x128xbf16>, vector<1x8x128xbf16> -> vector<2x8x128xbf16>
    %21 = arith.truncf %13 : vector<16x256xf32> to vector<16x256xbf16>
    %22 = vector.extract_strided_slice %21 {offsets = [0, 0], sizes = [16, 128], strides = [1, 1]} : vector<16x256xbf16> to vector<16x128xbf16>
    %23 = vector.extract_strided_slice %21 {offsets = [0, 128], sizes = [16, 128], strides = [1, 1]} : vector<16x256xbf16> to vector<16x128xbf16>
    %24 = vector.shape_cast %22 : vector<16x128xbf16> to vector<1x16x128xbf16>
    %25 = vector.shape_cast %23 : vector<16x128xbf16> to vector<1x16x128xbf16>
    %26 = tpu.concatenate %24, %25 in 0 : vector<1x16x128xbf16>, vector<1x16x128xbf16> -> vector<2x16x128xbf16>
    %27 = arith.truncf %14 : vector<16x256xf32> to vector<16x256xbf16>
    %28 = vector.extract_strided_slice %27 {offsets = [0, 0], sizes = [16, 128], strides = [1, 1]} : vector<16x256xbf16> to vector<16x128xbf16>
    %29 = vector.extract_strided_slice %27 {offsets = [0, 128], sizes = [16, 128], strides = [1, 1]} : vector<16x256xbf16> to vector<16x128xbf16>
    %30 = vector.shape_cast %28 : vector<16x128xbf16> to vector<1x16x128xbf16>
    %31 = vector.shape_cast %29 : vector<16x128xbf16> to vector<1x16x128xbf16>
    %32 = tpu.concatenate %30, %31 in 0 : vector<1x16x128xbf16>, vector<1x16x128xbf16> -> vector<2x16x128xbf16>
    "tpu.trace_start"() <{level = 10 : i32, message = "hqd,hkd->hqk"}> : () -> ()
    %cst_11 = arith.constant dense<0.000000e+00> : vector<2x8x16xf32>
    %33 = tpu.matmul %20, %26, %cst_11 {dimension_numbers = #tpu.dot_dimension_numbers<[2], [2], [1], [1], [0, 0, 0, 1, 1, 1], [0], [0]>} : vector<2x8x128xbf16>, vector<2x16x128xbf16>, vector<2x8x16xf32> -> vector<2x8x16xf32>
    "tpu.trace_stop"() : () -> ()
    %cst_12 = arith.constant dense<0xFF800000> : vector<2x8xf32>
    %34 = vector.multi_reduction <maximumf>, %33, %cst_12 [2] : vector<2x8x16xf32> to vector<2x8xf32>
    %35 = vector.shape_cast %34 : vector<2x8xf32> to vector<2x8x1xf32>
    %36 = vector.broadcast %35 : vector<2x8x1xf32> to vector<2x8x16xf32>
    %37 = arith.subf %33, %36 : vector<2x8x16xf32>
    %38 = math.exp %37 : vector<2x8x16xf32>
    %cst_13 = arith.constant dense<0.000000e+00> : vector<2x8xf32>
    %39 = vector.multi_reduction <add>, %38, %cst_13 [2] : vector<2x8x16xf32> to vector<2x8xf32>
    %40 = vector.shape_cast %39 : vector<2x8xf32> to vector<2x8x1xf32>
    %41 = tpu.reciprocal %40 {approx = true} : vector<2x8x1xf32> -> vector<2x8x1xf32>
    %42 = vector.broadcast %41 : vector<2x8x1xf32> to vector<2x8x16xf32>
    %43 = arith.mulf %38, %42 : vector<2x8x16xf32>
    %44 = arith.truncf %43 : vector<2x8x16xf32> to vector<2x8x16xbf16>
    "tpu.trace_start"() <{level = 10 : i32, message = "hqk,hkd->hqd"}> : () -> ()
    %cst_14 = arith.constant dense<0.000000e+00> : vector<2x8x128xf32>
    %45 = tpu.matmul %44, %32, %cst_14 {dimension_numbers = #tpu.dot_dimension_numbers<[2], [1], [1], [2], [0, 0, 0, 1, 1, 2], [0], [0]>} : vector<2x8x16xbf16>, vector<2x16x128xbf16>, vector<2x8x128xf32> -> vector<2x8x128xf32>
    "tpu.trace_stop"() : () -> ()
    %46 = vector.extract_strided_slice %45 {offsets = [0, 0, 0], sizes = [1, 8, 128], strides = [1, 1, 1]} : vector<2x8x128xf32> to vector<1x8x128xf32>
    %47 = vector.shape_cast %46 : vector<1x8x128xf32> to vector<8x128xf32>
    %48 = vector.extract_strided_slice %45 {offsets = [1, 0, 0], sizes = [1, 8, 128], strides = [1, 1, 1]} : vector<2x8x128xf32> to vector<1x8x128xf32>
    %49 = vector.shape_cast %48 : vector<1x8x128xf32> to vector<8x128xf32>
    %50 = tpu.concatenate %47, %49 in 1 : vector<8x128xf32>, vector<8x128xf32> -> vector<8x256xf32>
    %51 = arith.truncf %50 : vector<8x256xf32> to vector<8x256xbf16>
    %c0_15 = arith.constant 0 : index
    %c0_16 = arith.constant 0 : index
    %c0_17 = arith.constant 0 : index
    %52 = vector.load %arg9[%c0_15, %c0_16, %c0_17] : memref<3x256x256xbf16, #tpu.memory_space<vmem>>, vector<1x256x256xbf16>
    %53 = vector.shape_cast %52 : vector<1x256x256xbf16> to vector<256x256xbf16>
    %cst_18 = arith.constant dense<0.000000e+00> : vector<8x256xf32>
    %54 = tpu.matmul %51, %53, %cst_18 {dimension_numbers = #tpu.dot_dimension_numbers<[1], [0], [0], [1], [0, 0, 1, 1], [], []>} : vector<8x256xbf16>, vector<256x256xbf16>, vector<8x256xf32> -> vector<8x256xf32>
    %55 = vector.extract_strided_slice %3 {offsets = [0, 0], sizes = [1, 256], strides = [1, 1]} : vector<10x256xf32> to vector<1x256xf32>
    %56 = vector.broadcast %55 : vector<1x256xf32> to vector<8x256xf32>
    %57 = arith.addf %54, %56 : vector<8x256xf32>
    %58 = arith.addf %5, %57 : vector<8x256xf32>
    %59 = vector.extract_strided_slice %3 {offsets = [4, 0], sizes = [1, 256], strides = [1, 1]} : vector<10x256xf32> to vector<1x256xf32>
    %60 = vector.extract_strided_slice %3 {offsets = [5, 0], sizes = [1, 256], strides = [1, 1]} : vector<10x256xf32> to vector<1x256xf32>
    %cst_19 = arith.constant dense<0.000000e+00> : vector<8xf32>
    %61 = vector.multi_reduction <add>, %58, %cst_19 [1] : vector<8x256xf32> to vector<8xf32>
    %62 = vector.shape_cast %61 : vector<8xf32> to vector<8x1xf32>
    %cst_20 = arith.constant 2.560000e+02 : f32
    %63 = vector.broadcast %cst_20 : f32 to vector<8x1xf32>
    %64 = arith.divf %62, %63 : vector<8x1xf32>
    %65 = vector.broadcast %64 : vector<8x1xf32> to vector<8x256xf32>
    %66 = arith.subf %58, %65 : vector<8x256xf32>
    %67 = arith.mulf %66, %66 : vector<8x256xf32>
    %cst_21 = arith.constant dense<0.000000e+00> : vector<8xf32>
    %68 = vector.multi_reduction <add>, %67, %cst_21 [1] : vector<8x256xf32> to vector<8xf32>
    %69 = vector.shape_cast %68 : vector<8xf32> to vector<8x1xf32>
    %cst_22 = arith.constant 2.560000e+02 : f32
    %70 = vector.broadcast %cst_22 : f32 to vector<8x1xf32>
    %71 = arith.divf %69, %70 : vector<8x1xf32>
    %cst_23 = arith.constant 9.99999974E-6 : f32
    %72 = vector.broadcast %cst_23 : f32 to vector<8x1xf32>
    %73 = arith.addf %71, %72 : vector<8x1xf32>
    %74 = math.rsqrt %73 : vector<8x1xf32>
    %75 = vector.broadcast %74 : vector<8x1xf32> to vector<8x256xf32>
    %76 = arith.mulf %66, %75 : vector<8x256xf32>
    %77 = vector.broadcast %59 : vector<1x256xf32> to vector<8x256xf32>
    %78 = arith.mulf %76, %77 : vector<8x256xf32>
    %79 = vector.broadcast %60 : vector<1x256xf32> to vector<8x256xf32>
    %80 = arith.addf %78, %79 : vector<8x256xf32>
    %81 = arith.truncf %80 : vector<8x256xf32> to vector<8x256xbf16>
    %c1 = arith.constant 1 : index
    %c0_24 = arith.constant 0 : index
    %c0_25 = arith.constant 0 : index
    %82 = vector.load %arg9[%c1, %c0_24, %c0_25] : memref<3x256x256xbf16, #tpu.memory_space<vmem>>, vector<1x256x256xbf16>
    %83 = vector.shape_cast %82 : vector<1x256x256xbf16> to vector<256x256xbf16>
    %cst_26 = arith.constant dense<0.000000e+00> : vector<8x256xf32>
    %84 = tpu.matmul %81, %83, %cst_26 {dimension_numbers = #tpu.dot_dimension_numbers<[1], [0], [0], [1], [0, 0, 1, 1], [], []>} : vector<8x256xbf16>, vector<256x256xbf16>, vector<8x256xf32> -> vector<8x256xf32>
    %85 = vector.extract_strided_slice %3 {offsets = [1, 0], sizes = [1, 256], strides = [1, 1]} : vector<10x256xf32> to vector<1x256xf32>
    %86 = vector.broadcast %85 : vector<1x256xf32> to vector<8x256xf32>
    %87 = arith.addf %84, %86 : vector<8x256xf32>
    %c0_27 = arith.constant 0 : index
    %c0_28 = arith.constant 0 : index
    %88 = vector.load %arg16[%c0_27, %c0_28] : memref<24x512xf32, #tpu.memory_space<vmem>>, vector<24x512xf32>
    %89 = vector.extract_strided_slice %88 {offsets = [0, 0], sizes = [24, 256], strides = [1, 1]} : vector<24x512xf32> to vector<24x256xf32>
    %90 = vector.extract_strided_slice %88 {offsets = [0, 256], sizes = [24, 256], strides = [1, 1]} : vector<24x512xf32> to vector<24x256xf32>
    %91 = arith.truncf %87 : vector<8x256xf32> to vector<8x256xbf16>
    %92 = vector.extract_strided_slice %91 {offsets = [0, 0], sizes = [8, 128], strides = [1, 1]} : vector<8x256xbf16> to vector<8x128xbf16>
    %93 = vector.extract_strided_slice %91 {offsets = [0, 128], sizes = [8, 128], strides = [1, 1]} : vector<8x256xbf16> to vector<8x128xbf16>
    %94 = vector.shape_cast %92 : vector<8x128xbf16> to vector<1x8x128xbf16>
    %95 = vector.shape_cast %93 : vector<8x128xbf16> to vector<1x8x128xbf16>
    %96 = tpu.concatenate %94, %95 in 0 : vector<1x8x128xbf16>, vector<1x8x128xbf16> -> vector<2x8x128xbf16>
    %97 = arith.truncf %89 : vector<24x256xf32> to vector<24x256xbf16>
    %98 = vector.extract_strided_slice %97 {offsets = [0, 0], sizes = [24, 128], strides = [1, 1]} : vector<24x256xbf16> to vector<24x128xbf16>
    %99 = vector.extract_strided_slice %97 {offsets = [0, 128], sizes = [24, 128], strides = [1, 1]} : vector<24x256xbf16> to vector<24x128xbf16>
    %100 = vector.shape_cast %98 : vector<24x128xbf16> to vector<1x24x128xbf16>
    %101 = vector.shape_cast %99 : vector<24x128xbf16> to vector<1x24x128xbf16>
    %102 = tpu.concatenate %100, %101 in 0 : vector<1x24x128xbf16>, vector<1x24x128xbf16> -> vector<2x24x128xbf16>
    %103 = arith.truncf %90 : vector<24x256xf32> to vector<24x256xbf16>
    %104 = vector.extract_strided_slice %103 {offsets = [0, 0], sizes = [24, 128], strides = [1, 1]} : vector<24x256xbf16> to vector<24x128xbf16>
    %105 = vector.extract_strided_slice %103 {offsets = [0, 128], sizes = [24, 128], strides = [1, 1]} : vector<24x256xbf16> to vector<24x128xbf16>
    %106 = vector.shape_cast %104 : vector<24x128xbf16> to vector<1x24x128xbf16>
    %107 = vector.shape_cast %105 : vector<24x128xbf16> to vector<1x24x128xbf16>
    %108 = tpu.concatenate %106, %107 in 0 : vector<1x24x128xbf16>, vector<1x24x128xbf16> -> vector<2x24x128xbf16>
    "tpu.trace_start"() <{level = 10 : i32, message = "hqd,hkd->hqk"}> : () -> ()
    %cst_29 = arith.constant dense<0.000000e+00> : vector<2x8x24xf32>
    %109 = tpu.matmul %96, %102, %cst_29 {dimension_numbers = #tpu.dot_dimension_numbers<[2], [2], [1], [1], [0, 0, 0, 1, 1, 1], [0], [0]>} : vector<2x8x128xbf16>, vector<2x24x128xbf16>, vector<2x8x24xf32> -> vector<2x8x24xf32>
    "tpu.trace_stop"() : () -> ()
    %cst_30 = arith.constant dense<0xFF800000> : vector<2x8xf32>
    %110 = vector.multi_reduction <maximumf>, %109, %cst_30 [2] : vector<2x8x24xf32> to vector<2x8xf32>
    %111 = vector.shape_cast %110 : vector<2x8xf32> to vector<2x8x1xf32>
    %112 = vector.broadcast %111 : vector<2x8x1xf32> to vector<2x8x24xf32>
    %113 = arith.subf %109, %112 : vector<2x8x24xf32>
    %114 = math.exp %113 : vector<2x8x24xf32>
    %cst_31 = arith.constant dense<0.000000e+00> : vector<2x8xf32>
    %115 = vector.multi_reduction <add>, %114, %cst_31 [2] : vector<2x8x24xf32> to vector<2x8xf32>
    %116 = vector.shape_cast %115 : vector<2x8xf32> to vector<2x8x1xf32>
    %117 = tpu.reciprocal %116 {approx = true} : vector<2x8x1xf32> -> vector<2x8x1xf32>
    %118 = vector.broadcast %117 : vector<2x8x1xf32> to vector<2x8x24xf32>
    %119 = arith.mulf %114, %118 : vector<2x8x24xf32>
    %120 = arith.truncf %119 : vector<2x8x24xf32> to vector<2x8x24xbf16>
    "tpu.trace_start"() <{level = 10 : i32, message = "hqk,hkd->hqd"}> : () -> ()
    %cst_32 = arith.constant dense<0.000000e+00> : vector<2x8x128xf32>
    %121 = tpu.matmul %120, %108, %cst_32 {dimension_numbers = #tpu.dot_dimension_numbers<[2], [1], [1], [2], [0, 0, 0, 1, 1, 2], [0], [0]>} : vector<2x8x24xbf16>, vector<2x24x128xbf16>, vector<2x8x128xf32> -> vector<2x8x128xf32>
    "tpu.trace_stop"() : () -> ()
    %122 = vector.extract_strided_slice %121 {offsets = [0, 0, 0], sizes = [1, 8, 128], strides = [1, 1, 1]} : vector<2x8x128xf32> to vector<1x8x128xf32>
    %123 = vector.shape_cast %122 : vector<1x8x128xf32> to vector<8x128xf32>
    %124 = vector.extract_strided_slice %121 {offsets = [1, 0, 0], sizes = [1, 8, 128], strides = [1, 1, 1]} : vector<2x8x128xf32> to vector<1x8x128xf32>
    %125 = vector.shape_cast %124 : vector<1x8x128xf32> to vector<8x128xf32>
    %126 = tpu.concatenate %123, %125 in 1 : vector<8x128xf32>, vector<8x128xf32> -> vector<8x256xf32>
    %127 = arith.truncf %126 : vector<8x256xf32> to vector<8x256xbf16>
    %c2 = arith.constant 2 : index
    %c0_33 = arith.constant 0 : index
    %c0_34 = arith.constant 0 : index
    %128 = vector.load %arg9[%c2, %c0_33, %c0_34] : memref<3x256x256xbf16, #tpu.memory_space<vmem>>, vector<1x256x256xbf16>
    %129 = vector.shape_cast %128 : vector<1x256x256xbf16> to vector<256x256xbf16>
    %cst_35 = arith.constant dense<0.000000e+00> : vector<8x256xf32>
    %130 = tpu.matmul %127, %129, %cst_35 {dimension_numbers = #tpu.dot_dimension_numbers<[1], [0], [0], [1], [0, 0, 1, 1], [], []>} : vector<8x256xbf16>, vector<256x256xbf16>, vector<8x256xf32> -> vector<8x256xf32>
    %131 = vector.extract_strided_slice %3 {offsets = [2, 0], sizes = [1, 256], strides = [1, 1]} : vector<10x256xf32> to vector<1x256xf32>
    %132 = vector.broadcast %131 : vector<1x256xf32> to vector<8x256xf32>
    %133 = arith.addf %130, %132 : vector<8x256xf32>
    %134 = arith.addf %80, %133 : vector<8x256xf32>
    %135 = vector.extract_strided_slice %3 {offsets = [6, 0], sizes = [1, 256], strides = [1, 1]} : vector<10x256xf32> to vector<1x256xf32>
    %136 = vector.extract_strided_slice %3 {offsets = [7, 0], sizes = [1, 256], strides = [1, 1]} : vector<10x256xf32> to vector<1x256xf32>
    %cst_36 = arith.constant dense<0.000000e+00> : vector<8xf32>
    %137 = vector.multi_reduction <add>, %134, %cst_36 [1] : vector<8x256xf32> to vector<8xf32>
    %138 = vector.shape_cast %137 : vector<8xf32> to vector<8x1xf32>
    %cst_37 = arith.constant 2.560000e+02 : f32
    %139 = vector.broadcast %cst_37 : f32 to vector<8x1xf32>
    %140 = arith.divf %138, %139 : vector<8x1xf32>
    %141 = vector.broadcast %140 : vector<8x1xf32> to vector<8x256xf32>
    %142 = arith.subf %134, %141 : vector<8x256xf32>
    %143 = arith.mulf %142, %142 : vector<8x256xf32>
    %cst_38 = arith.constant dense<0.000000e+00> : vector<8xf32>
    %144 = vector.multi_reduction <add>, %143, %cst_38 [1] : vector<8x256xf32> to vector<8xf32>
    %145 = vector.shape_cast %144 : vector<8xf32> to vector<8x1xf32>
    %cst_39 = arith.constant 2.560000e+02 : f32
    %146 = vector.broadcast %cst_39 : f32 to vector<8x1xf32>
    %147 = arith.divf %145, %146 : vector<8x1xf32>
    %cst_40 = arith.constant 9.99999974E-6 : f32
    %148 = vector.broadcast %cst_40 : f32 to vector<8x1xf32>
    %149 = arith.addf %147, %148 : vector<8x1xf32>
    %150 = math.rsqrt %149 : vector<8x1xf32>
    %151 = vector.broadcast %150 : vector<8x1xf32> to vector<8x256xf32>
    %152 = arith.mulf %142, %151 : vector<8x256xf32>
    %153 = vector.broadcast %135 : vector<1x256xf32> to vector<8x256xf32>
    %154 = arith.mulf %152, %153 : vector<8x256xf32>
    %155 = vector.broadcast %136 : vector<1x256xf32> to vector<8x256xf32>
    %156 = arith.addf %154, %155 : vector<8x256xf32>
    %157 = arith.truncf %156 : vector<8x256xf32> to vector<8x256xbf16>
    %c0_41 = arith.constant 0 : index
    %c0_42 = arith.constant 0 : index
    %158 = vector.load %arg10[%c0_41, %c0_42] : memref<256x512xbf16, #tpu.memory_space<vmem>>, vector<256x512xbf16>
    %cst_43 = arith.constant dense<0.000000e+00> : vector<8x512xf32>
    %159 = tpu.matmul %157, %158, %cst_43 {dimension_numbers = #tpu.dot_dimension_numbers<[1], [0], [0], [1], [0, 0, 1, 1], [], []>} : vector<8x256xbf16>, vector<256x512xbf16>, vector<8x512xf32> -> vector<8x512xf32>
    %c0_44 = arith.constant 0 : index
    %c0_45 = arith.constant 0 : index
    %160 = vector.load %arg11[%c0_44, %c0_45] : memref<1x512xf32, #tpu.memory_space<vmem>>, vector<1x512xf32>
    %161 = vector.broadcast %160 : vector<1x512xf32> to vector<8x512xf32>
    %162 = arith.addf %159, %161 : vector<8x512xf32>
    %cst_46 = arith.constant 0.000000e+00 : f32
    %163 = vector.broadcast %cst_46 : f32 to vector<8x512xf32>
    %164 = arith.maximumf %162, %163 : vector<8x512xf32>
    %165 = arith.truncf %164 : vector<8x512xf32> to vector<8x512xbf16>
    %c0_47 = arith.constant 0 : index
    %c0_48 = arith.constant 0 : index
    %166 = vector.load %arg12[%c0_47, %c0_48] : memref<512x256xbf16, #tpu.memory_space<vmem>>, vector<512x256xbf16>
    %cst_49 = arith.constant dense<0.000000e+00> : vector<8x256xf32>
    %167 = tpu.matmul %165, %166, %cst_49 {dimension_numbers = #tpu.dot_dimension_numbers<[1], [0], [0], [1], [0, 0, 1, 1], [], []>} : vector<8x512xbf16>, vector<512x256xbf16>, vector<8x256xf32> -> vector<8x256xf32>
    %168 = vector.extract_strided_slice %3 {offsets = [3, 0], sizes = [1, 256], strides = [1, 1]} : vector<10x256xf32> to vector<1x256xf32>
    %169 = vector.broadcast %168 : vector<1x256xf32> to vector<8x256xf32>
    %170 = arith.addf %167, %169 : vector<8x256xf32>
    %171 = arith.addf %156, %170 : vector<8x256xf32>
    %172 = vector.extract_strided_slice %3 {offsets = [8, 0], sizes = [1, 256], strides = [1, 1]} : vector<10x256xf32> to vector<1x256xf32>
    %173 = vector.extract_strided_slice %3 {offsets = [9, 0], sizes = [1, 256], strides = [1, 1]} : vector<10x256xf32> to vector<1x256xf32>
    %cst_50 = arith.constant dense<0.000000e+00> : vector<8xf32>
    %174 = vector.multi_reduction <add>, %171, %cst_50 [1] : vector<8x256xf32> to vector<8xf32>
    %175 = vector.shape_cast %174 : vector<8xf32> to vector<8x1xf32>
    %cst_51 = arith.constant 2.560000e+02 : f32
    %176 = vector.broadcast %cst_51 : f32 to vector<8x1xf32>
    %177 = arith.divf %175, %176 : vector<8x1xf32>
    %178 = vector.broadcast %177 : vector<8x1xf32> to vector<8x256xf32>
    %179 = arith.subf %171, %178 : vector<8x256xf32>
    %180 = arith.mulf %179, %179 : vector<8x256xf32>
    %cst_52 = arith.constant dense<0.000000e+00> : vector<8xf32>
    %181 = vector.multi_reduction <add>, %180, %cst_52 [1] : vector<8x256xf32> to vector<8xf32>
    %182 = vector.shape_cast %181 : vector<8xf32> to vector<8x1xf32>
    %cst_53 = arith.constant 2.560000e+02 : f32
    %183 = vector.broadcast %cst_53 : f32 to vector<8x1xf32>
    %184 = arith.divf %182, %183 : vector<8x1xf32>
    %cst_54 = arith.constant 9.99999974E-6 : f32
    %185 = vector.broadcast %cst_54 : f32 to vector<8x1xf32>
    %186 = arith.addf %184, %185 : vector<8x1xf32>
    %187 = math.rsqrt %186 : vector<8x1xf32>
    %188 = vector.broadcast %187 : vector<8x1xf32> to vector<8x256xf32>
    %189 = arith.mulf %179, %188 : vector<8x256xf32>
    %190 = vector.broadcast %172 : vector<1x256xf32> to vector<8x256xf32>
    %191 = arith.mulf %189, %190 : vector<8x256xf32>
    %192 = vector.broadcast %173 : vector<1x256xf32> to vector<8x256xf32>
    %193 = arith.addf %191, %192 : vector<8x256xf32>
    %c0_55 = arith.constant 0 : index
    %c0_56 = arith.constant 0 : index
    %c0_57 = arith.constant 0 : index
    %194 = vector.load %arg14[%c0_55, %c0_56, %c0_57] : memref<1x8x256xf32, #tpu.memory_space<vmem>>, vector<1x8x256xf32>
    %195 = vector.shape_cast %194 : vector<1x8x256xf32> to vector<8x256xf32>
    %196 = vector.shape_cast %193 : vector<8x256xf32> to vector<1x8x256xf32>
    tpu.vector_store %arg14[%c0_55, %c0_56, %c0_57], %196 {strides = array<i32>} : memref<1x8x256xf32, #tpu.memory_space<vmem>>, vector<1x8x256xf32>,
    return
  }
  func.func @transform_0(%arg0: i32, %arg1: i32) -> (i32, i32, i32) {
    %c0_i32 = arith.constant 0 : i32
    %c0_i32_0 = arith.constant 0 : i32
    return %arg0, %arg1, %c0_i32 : i32, i32, i32
  }
  func.func @transform_1(%arg0: i32, %arg1: i32) -> (i32, i32, i32) {
    %c0_i32 = arith.constant 0 : i32
    %c0_i32_0 = arith.constant 0 : i32
    %c0_i32_1 = arith.constant 0 : i32
    return %arg0, %c0_i32, %c0_i32_0 : i32, i32, i32
  }
  func.func @transform_2(%arg0: i32, %arg1: i32) -> (i32, i32, i32) {
    %c0_i32 = arith.constant 0 : i32
    %c0_i32_0 = arith.constant 0 : i32
    %c0_i32_1 = arith.constant 0 : i32
    return %arg0, %c0_i32, %c0_i32_0 : i32, i32, i32
  }
  func.func @transform_3(%arg0: i32, %arg1: i32) -> (i32, i32) {
    %c0_i32 = arith.constant 0 : i32
    %c0_i32_0 = arith.constant 0 : i32
    %c0_i32_1 = arith.constant 0 : i32
    return %c0_i32, %c0_i32_0 : i32, i32
  }
  func.func @transform_4(%arg0: i32, %arg1: i32) -> (i32, i32) {
    %c0_i32 = arith.constant 0 : i32
    %c0_i32_0 = arith.constant 0 : i32
    %c0_i32_1 = arith.constant 0 : i32
    return %c0_i32, %c0_i32_0 : i32, i32
  }
  func.func @transform_5(%arg0: i32, %arg1: i32) -> (i32, i32) {
    %c0_i32 = arith.constant 0 : i32
    %c0_i32_0 = arith.constant 0 : i32
    %c0_i32_1 = arith.constant 0 : i32
    return %c0_i32, %c0_i32_0 : i32, i32
  }
  func.func @transform_6(%arg0: i32, %arg1: i32) -> (i32, i32) {
    %c0_i32 = arith.constant 0 : i32
    %c0_i32_0 = arith.constant 0 : i32
    %c0_i32_1 = arith.constant 0 : i32
    return %c0_i32, %c0_i32_0 : i32, i32
  }
  func.func @transform_7(%arg0: i32, %arg1: i32) -> (i32, i32, i32) {
    %c0_i32 = arith.constant 0 : i32
    %c0_i32_0 = arith.constant 0 : i32
    %c0_i32_1 = arith.constant 0 : i32
    %c0_i32_2 = arith.constant 0 : i32
    return %c0_i32, %c0_i32_0, %c0_i32_1 : i32, i32, i32
  }
  func.func @transform_8(%arg0: i32, %arg1: i32) -> (i32, i32) {
    %c0_i32 = arith.constant 0 : i32
    %c0_i32_0 = arith.constant 0 : i32
    %c0_i32_1 = arith.constant 0 : i32
    return %c0_i32, %c0_i32_0 : i32, i32
  }
  func.func @transform_9(%arg0: i32, %arg1: i32) -> (i32, i32) {
    %c0_i32 = arith.constant 0 : i32
    %c0_i32_0 = arith.constant 0 : i32
    %c0_i32_1 = arith.constant 0 : i32
    return %c0_i32, %c0_i32_0 : i32, i32
  }
  func.func @transform_10(%arg0: i32, %arg1: i32) -> (i32, i32) {
    %c0_i32 = arith.constant 0 : i32
    %c0_i32_0 = arith.constant 0 : i32
    %c0_i32_1 = arith.constant 0 : i32
    return %c0_i32, %c0_i32_0 : i32, i32
  }
  func.func @transform_11(%arg0: i32, %arg1: i32) -> (i32, i32) {
    %c0_i32 = arith.constant 0 : i32
    %c0_i32_0 = arith.constant 0 : i32
    %c0_i32_1 = arith.constant 0 : i32
    return %c0_i32, %c0_i32_0 : i32, i32
  }
  func.func @transform_12(%arg0: i32, %arg1: i32) -> (i32, i32, i32) {
    %c0_i32 = arith.constant 0 : i32
    %c0_i32_0 = arith.constant 0 : i32
    return %arg0, %arg1, %c0_i32 : i32, i32, i32
  }
}

</mosaic_0001>

<bundles_post_ra>
// kernel: tpu_custom_call.1
= control target key start
LH: loop header
LB: loop body
LE: loop exit
PB: predicated region body
PF: predicated region fallthrough
CT: control target
= control target key end

     0   :  { %s6626_s0 = inlined_call_operand.hbm [shape: f32[2,16,256], index: 0, kind: input, shape index: {}]   ;;  %s6627_s1 = inlined_call_operand.hbm [shape: f32[2,16,256], index: 1, kind: input, shape index: {}]   ;;  %s6628_s2 = inlined_call_operand.hbm [shape: f32[2,24,256], index: 2, kind: input, shape index: {}]   ;;  %s6629_s3 = inlined_call_operand.hbm [shape: bf16[256,768], index: 3, kind: input, shape index: {}]   ;;  %s6630_s4 = inlined_call_operand.vmem [shape: f32[1,768], index: 4, kind: input, shape index: {}]   ;;  %s6631_s5 = inlined_call_operand.hbm [shape: bf16[256,512], index: 5, kind: input, shape index: {}]   ;;  %s6632_s6 = inlined_call_operand.vmem [shape: f32[1,512], index: 6, kind: input, shape index: {}]   ;;  %s6633_s7 = inlined_call_operand.hbm [shape: bf16[3,256,256], index: 7, kind: input, shape index: {}]   ;;  %s6634_s8 = inlined_call_operand.hbm [shape: bf16[256,512], index: 8, kind: input, shape index: {}]   ;;  %s6635_s9 = inlined_call_operand.vmem [shape: f32[1,512], index: 9, kind: input, shape index: {}]   ;;  %s6636_s10 = inlined_call_operand.hbm [shape: bf16[512,256], index: 10, kind: input, shape index: {}]   ;;  %s6637_s11 = inlined_call_operand.hbm [shape: f32[10,256], index: 11, kind: input, shape index: {}]   ;;  %s6638_s12 = inlined_call_operand.hbm [shape: f32[2,16,256], index: 12, kind: output, shape index: {}]  }
   0x1   :  { %6655 = sst [smem:[#allocation36_spill]] %s6627_s1 }
   0x2   :  { %6656 = sst [smem:[#allocation37_spill]] %s6628_s2 }
   0x3   :  { %6657 = sst [smem:[#allocation38_spill]] %s6629_s3 }
   0x4   :  { %6658 = sst [smem:[#allocation39_spill]] %s6630_s4 }
   0x5   :  { %6659 = sst [smem:[#allocation40_spill]] %s6631_s5 }
   0x6   :  { %6660 = sst [smem:[#allocation41_spill]] %s6632_s6 }
   0x7   :  { %6661 = sst [smem:[#allocation42_spill]] %s6633_s7 }
   0x8   :  { %6662 = sst [smem:[#allocation43_spill]] %s6634_s8 }
   0x9   :  { %6663 = sst [smem:[#allocation44_spill]] %s6635_s9 }
   0xa   :  { %6664 = sst [smem:[#allocation45_spill]] %s6636_s10 }
   0xb   :  { %6665 = sst [smem:[#allocation46_spill]] %s6637_s11 }
   0xc   :  { %6666 = sst [smem:[#allocation47_spill]] %s6638_s12 }
   0xd   :  { %17 = vsyncpa [#allocation5], 0 }
   0xe   :  { %19 = vsyncpa [#allocation5 + $0x1], 0 }
   0xf   :  { %20 = vsyncpa [#allocation8], 0 }
  0x10   :  { %22 = vsyncpa [#allocation8 + $0x1], 0 }
  0x11   :  { %23 = vsyncpa [#allocation11], 0 }
  0x12   :  { %24 = vsyncpa [#allocation14], 0 }
  0x13   :  { %25 = vsyncpa [#allocation17], 0 }
  0x14   :  { %26 = vsyncpa [#allocation6], 0 }
  0x15   :  { %28 = vsyncpa [#allocation6 + $0x1], 0  ;;  %s6100_s21 = smov 0   ;;  %s6102_s22 = smov 0  }
  0x16   :  { %s6104_s23 = smov 0   ;;  %s6106_s24 = smov 0  }
  0x17   :  { %s6108_s25 = smov 0   ;;  %s6110_s26 = smov 0  }
  0x18   :  { %s6112_s27 = smov 0   ;;  %s6114_s28 = smov 0  }
  0x19   :  { %s6116_s29 = smov 0   ;;  %s6118_s30 = smov 0  }
  0x1a   :  { %s6120_s13 = smov 0  }
  0x1b LB: > { %6667 = sst [smem:[#allocation26_spill]] %s5987_s24  ;;  %s6156_s14 = sadd.s32 4294967295, %s6015_s13   ;;  %s6015_s13 = sphi %s6120_s13, %s34_s13   ;;  %s6011_s30 = sphi %s6118_s30, %s6733_s30   ;;  %s6007_s29 = sphi %s6116_s29, %s6725_s29   ;;  %s6003_s28 = sphi %s6114_s28, %s6732_s28   ;;  %s5999_s27 = sphi %s6112_s27, %s6724_s27   ;;  %s5995_s26 = sphi %s6110_s26, %s6723_s26   ;;  %s5991_s25 = sphi %s6108_s25, %s6731_s25   ;;  %s5987_s24 = sphi %s6106_s24, %s6730_s24   ;;  %s5983_s23 = sphi %s6104_s23, %s6729_s23   ;;  %s5979_s22 = sphi %s6102_s22, %s6728_s22   ;;  %s5975_s21 = sphi %s6100_s21, %s6727_s21  }
  0x1c   : > { %6668 = sst [smem:[#allocation27_spill]] %s5995_s26  ;;  %p4357_p0 = scmp.ge.s32.totalorder %s6015_s13, 1 }
  0x1d   : > { %6669 = sst [smem:[#allocation28_spill]] %s5999_s27  ;;  %p6640_p1 = scmp.eq.s32.totalorder %s6156_s14, 0 }
  0x1e   : > { %6670 = sst [smem:[#allocation29_spill]] %s6003_s28  ;;  %p348_p2 = scmp.lt.s32.totalorder %s6015_s13, 5 }
  0x1f   : > { %6671 = sst [smem:[#allocation30_spill]] %s6007_s29  ;;  %s6017_s16 = smov [#allocation10]  }
  0x20   : > { %p6161_p3 = pnand %p4357_p0, %p348_p2  ;;  %s360_s17 = sshll.u32 %s6017_s16, 4  ;;  %s361_s17 = int_to_ptr.vmem [resolvable:$true] %s360_s17 }
  0x21   : > { %s6018_s19 = smov [#allocation13]   ;;  %s5650_s28 = scalar_lea.vmem %s361_s17, 12288 }
  0x22   : > { %s6672_s15 = scalar_select %p6161_p3, 1, 0 }
  0x23   : > { %p4890_p4 = pneg %p6161_p3  ;;  %s392_s20 = sshll.u32 %s6018_s19, 4  ;;  %s393_s20 = int_to_ptr.vmem [resolvable:$true] %s392_s20 }
  0x24   : > { %6673 = sst [smem:[#allocation31_spill]] %s6672_s15  ;;  %p5651_p7 = scmp.ne.s32.totalorder %s361_s17, %s5650_s28 }
  0x25   : > { %p6169_p5 = pnand %p4890_p4, %p6640_p1  ;;  %p5658_p10 = scmp.lt.s32.totalorder %s361_s17, %s361_s17 }
  0x26   : > { %p5659_p11 = scmp.lt.s32.totalorder %s5650_s28, %s5650_s28 }
  0x27   : > { %p6175_p6 = pneg %p6169_p5 }
  0x28   : > { %p5660_p12 = por %p5659_p11, %p5658_p10 }
  0x29   : > { %p5653_p8 = pnand %p5651_p7, %p6175_p6 }
  0x2b   : > { %p5654_p9 = pneg %p5653_p8 }
  0x2d   : > { %p5661_p13 = pnand %p5660_p12, %p5654_p9 }
  0x2f   : > { %5664 = shalt.err (!%p5661_p13)
}
  0x30   : > { %s6019_s16 = smov 384   ;;  %s6020_s19 = smov 24  }
  0x31   : > { %s6676_s3 = sld [smem:[#allocation38_spill]]  ;;  %s5676_s4 = scalar_lea.vmem %s393_s20, 12288 }
  0x32   : > { %p5677_p0 = scmp.ne.s32.totalorder %s393_s20, %s5676_s4  ;;  %p5684_p7 = scmp.lt.s32.totalorder %s393_s20, %s393_s20 }
  0x33   : > { %p5685_p8 = scmp.lt.s32.totalorder %s5676_s4, %s5676_s4 }
  0x34   : > { %p5679_p2 = pnand %p5677_p0, %p6175_p6 }
  0x35   : > { %p5686_p1 = por %p5685_p8, %p5684_p7 }
  0x36   : > { %p5680_p4 = pneg %p5679_p2 }
  0x37   : > { %4893 = dma.hbm_to_vmem [thread:$0]  (!%p6169_p5), %s6676_s3, 12288, %s361_s17, [#allocation11], %s6019_s16, %s6019_s16, %s6020_s19  }
  0x38   : > { %p5687_p10 = pnand %p5686_p1, %p5680_p4 }
  0x3a   : > { %5690 = shalt.err (!%p5687_p10)
}
  0x3b   : > { %s6021_s28 = smov 128   ;;  %s6022_s27 = smov 8  }
  0x3c   : > { %s6677_s7 = sld [smem:[#allocation42_spill]]  ;;  %s6023_s6 = smov [#allocation16]  }
  0x3d   : > { %s421_s9 = sshll.u32 %s6023_s6, 4  ;;  %s422_s9 = int_to_ptr.vmem [resolvable:$true] %s421_s9 }
  0x3e   : > { %s5702_s17 = scalar_lea.vmem %s422_s9, 8192  ;;  %p5710_p13 = scmp.lt.s32.totalorder %s422_s9, %s422_s9 }
  0x3f   : > { %p5703_p9 = scmp.ne.s32.totalorder %s422_s9, %s5702_s17  ;;  %p5711_p1 = scmp.lt.s32.totalorder %s5702_s17, %s5702_s17 }
  0x41   : > { %p5705_p11 = pnand %p5703_p9, %p6175_p6  ;;  %p5712_p0 = por %p5711_p1, %p5710_p13 }
  0x42   : > { %4899 = dma.hbm_to_vmem [thread:$0]  (!%p6169_p5), %s6677_s7, 12288, %s393_s20, [#allocation14], %s6021_s28, %s6021_s28, %s6022_s27  }
  0x43   : > { %p5706_p12 = pneg %p5705_p11 }
  0x45   : > { %p5713_p2 = pnand %p5712_p0, %p5706_p12 }
  0x47   : > { %5716 = shalt.err (!%p5713_p2)
}
  0x48   : > { %s6678_s10 = sld [smem:[#allocation45_spill]]  ;;  %p6644_p4 = scmp.eq.s32.totalorder %s6015_s13, 0 }
  0x49   : > { %p88_p7 = scmp.ne.s32.totalorder %s5983_s23, %s5979_s22  ;;  %p94_p8 = scmp.ne.s32.totalorder %s5979_s22, %s5975_s21 }
  0x4a   : > { %p6679_p9 = scmp.eq.s32.totalorder %s6156_s14, 0  ;;  %p6642_p12 = scmp.lt.s32.totalorder %s6015_s13, 4 }
  0x4b   : > { %p90_p10 = por %p88_p7, %p6644_p4  ;;  %s469_s20 = sand.u32 1, %s6015_s13  }
  0x4c   : > { %p6210_p11 = por %p94_p8, %p6679_p9  ;;  %s471_s19 = sand.u32 1, %s5983_s23  }
  0x4d   : > { %s4369_s6 = sshll.u32 %s471_s19, 5  ;;  %s4778_s17 = sshll.u32 %s6011_s30, 9 }
  0x4e   : > { %4905 = dma.hbm_to_vmem [thread:$0]  (!%p6169_p5), %s6678_s10, 8192, %s422_s9, [#allocation17], %s6021_s28, %s6021_s28, %s6022_s27  }
  0x4f   : > { %s6680_s15 = scalar_select %p6210_p11, 1, 0 }
  0x50   : > { %s6681_s1 = sld [smem:[#allocation36_spill]]  ;;  %s473_s28 = scalar_lea.vmem [#allocation7], %s4369_s6 }
  0x51   : > { %s480_s9 = sshll.u32 %s473_s28, 4  ;;  %p6225_p13 = pnand %p6642_p12, %p90_p10  ;;  %s481_s9 = int_to_ptr.vmem [resolvable:$true] %s480_s9 }
  0x52   : > { %s6229_s2 = smul.u32 48, %s471_s19  ;;  %s6024_s3 = smov [#allocation12]  }
  0x53   : > { %s376_s7 = sshll.u32 %s6024_s3, 4  ;;  %s6231_s10 = scalar_lea.sflag [#allocation8], %s469_s20  ;;  %s377_s7 = int_to_ptr.vmem [resolvable:$true] %s376_s7 }
  0x54   : > { %p6643_p1 = pneg %p6225_p13  ;;  %s6025_s6 = smov [#allocation7]  }
  0x55   : > { %s5735_s4 = sshll.u32 %s6025_s6, 4  ;;  %s5736_s4 = int_to_ptr.vmem [resolvable:$false] %s5735_s4 }
  0x56   : > { %s6221_s27 = scalar_lea.hbm %s6681_s1, %s4778_s17  ;;  %s5730_s17 = scalar_lea.vmem %s481_s9, 512 }
  0x57   : > { %p5731_p0 = scmp.ne.s32.totalorder %s481_s9, %s5730_s17  ;;  %s5737_s16 = scalar_lea.vmem %s5736_s4, 1024 }
  0x58   : > { %p5738_p8 = scmp.lt.s32.totalorder %s481_s9, %s5736_s4  ;;  %p5739_p10 = scmp.lt.s32.totalorder %s5737_s16, %s5730_s17 }
  0x59   : > { %p5733_p2 = pnand %p5731_p0, %p6643_p1 }
  0x5a   : > { %p5740_p9 = por %p5739_p10, %p5738_p8 }
  0x5b   : > { %p5734_p7 = pneg %p5733_p2 }
  0x5d   : > { %p5741_p12 = pnand %p5740_p9, %p5734_p7 }
  0x5f   : > { %5744 = shalt.err (!%p5741_p12)
}
  0x60   : > { %s6646_s3 = smov 256   ;;  %s6647_s20 = smov 16  }
  0x61   : > { %4915 = dma.hbm_to_vmem [thread:$0]  (!%p6225_p13), %s6221_s27, 512, %s481_s9, %s6231_s10, %s6646_s3, %s6646_s3, %s6647_s20  }
  0x62   : > { %s5756_s19 = scalar_lea.vmem %s377_s7, 8192  ;;  %p5764_p8 = scmp.lt.s32.totalorder %s377_s7, %s377_s7 }
  0x63   : > { %p5757_p0 = scmp.ne.s32.totalorder %s377_s7, %s5756_s19  ;;  %p5765_p7 = scmp.lt.s32.totalorder %s5756_s19, %s5756_s19 }
  0x65   : > { %p5759_p2 = pnand %p5757_p0, %p6175_p6  ;;  %p5766_p12 = por %p5765_p7, %p5764_p8 }
  0x67   : > { %p5760_p1 = pneg %p5759_p2 }
  0x69   : > { %p5767_p10 = pnand %p5766_p12, %p5760_p1 }
  0x6b   : > { %5770 = shalt.err (!%p5767_p10)
}
  0x6c   : > { %s6683_s5 = sld [smem:[#allocation40_spill]]  ;;  %s6028_s27 = smov [#allocation15]  }
  0x6d   : > { %s405_s9 = sshll.u32 %s6028_s27, 4  ;;  %s6029_s6 = smov [#allocation18]   ;;  %s406_s9 = int_to_ptr.vmem [resolvable:$true] %s405_s9 }
  0x6e   : > { %s434_s4 = sshll.u32 %s6029_s6, 4  ;;  %s5782_s16 = scalar_lea.vmem %s406_s9, 8192  ;;  %s435_s4 = int_to_ptr.vmem [resolvable:$true] %s434_s4 }
  0x6f   : > { %p5783_p9 = scmp.ne.s32.totalorder %s406_s9, %s5782_s16  ;;  %p5790_p2 = scmp.lt.s32.totalorder %s406_s9, %s406_s9 }
  0x70   : > { %p5791_p8 = scmp.lt.s32.totalorder %s5782_s16, %s5782_s16 }
  0x71   : > { %p5785_p1 = pnand %p5783_p9, %p6175_p6 }
  0x72   : > { %4896 = dma.hbm_to_vmem [thread:$0]  (!%p6169_p5), %s6683_s5, 8192, %s377_s7, [#allocation11], %s6646_s3, %s6646_s3, %s6647_s20  }
  0x73   : > { %p5786_p0 = pneg %p5785_p1  ;;  %p5792_p7 = por %p5791_p8, %p5790_p2 }
  0x75   : > { %p5793_p12 = pnand %p5792_p7, %p5786_p0 }
  0x77   : > { %5796 = shalt.err (!%p5793_p12)
}
  0x78   : > { %s6684_s8 = sld [smem:[#allocation43_spill]]  ;;  %s5808_s28 = scalar_lea.vmem %s435_s4, 512 }
  0x79   : > { %p5809_p10 = scmp.ne.s32.totalorder %s435_s4, %s5808_s28  ;;  %p5816_p4 = scmp.lt.s32.totalorder %s435_s4, %s435_s4 }
  0x7a   : > { %p5817_p11 = scmp.lt.s32.totalorder %s5808_s28, %s5808_s28 }
  0x7b   : > { %p5811_p9 = pnand %p5809_p10, %p6175_p6 }
  0x7c   : > { %p5818_p2 = por %p5817_p11, %p5816_p4 }
  0x7d   : > { %p5812_p1 = pneg %p5811_p9 }
  0x7e   : > { %4902 = dma.hbm_to_vmem [thread:$0]  (!%p6169_p5), %s6684_s8, 8192, %s406_s9, [#allocation14], %s6646_s3, %s6646_s3, %s6647_s20  }
  0x7f   : > { %p5819_p0 = pnand %p5818_p2, %p5812_p1 }
  0x81   : > { %5822 = shalt.err (!%p5819_p0)
}
  0x82   : > { %s6685_s11 = sld [smem:[#allocation46_spill]]  ;;  %s4356_s12 = sadd.s32 4294967294, %s6015_s13  }
  0x83   : > { %s43_s18 = sadd.s32 1, %s6007_s29  ;;  %s46_s9 = sadd.s32 1, %s6011_s30 }
  0x84   : > { %p44_p6 = scmp.ge.s32.totalorder %s43_s18, 2  ;;  %s55_s6 = sadd.s32 1, %s5995_s26 }
  0x85   : > { %p62_p4 = scmp.ne.s32.totalorder %s5995_s26, %s5991_s25  ;;  %p6687_p11 = scmp.eq.s32.totalorder %s6015_s13, 0 }
  0x86   : > { %s6735_s18 = smov (%p44_p6, %s43_s18), 0  ;;  %s6737_s9 = smov (!%p44_p6, %s46_s9), %s6011_s30 }
  0x87   : > { %6686 = sst [smem:[#allocation32_spill]] %s6735_s18  ;;  %s51_s16 = ssub.s32 %s6007_s29, %s6735_s18 }
  0x88   : > { %4908 = dma.hbm_to_vmem [thread:$0]  (!%p6169_p5), %s6685_s11, 512, %s435_s4, [#allocation17], %s6646_s3, %s6646_s3, %s6647_s20  }
  0x89   : > { %p6288_p8 = por %p6687_p11, %p62_p4  ;;  %p48_p5 = scmp.ge.s32.totalorder %s6737_s9, 2 }
  0x8a   : > { %p68_p7 = scmp.ne.s32.totalorder %s5991_s25, %s5987_s24  ;;  %p335_p12 = scmp.eq.s32.totalorder %s6156_s14, 3 }
  0x8b   : > { %p341_p10 = scmp.eq.s32.totalorder %s4356_s12, 3  ;;  %s6739_s9 = smov (%p48_p5, %s6737_s9), 0 }
  0x8c   : > { %6689 = sst [smem:[#allocation33_spill]] %s6739_s9  ;;  %p6690_p9 = scmp.eq.s32.totalorder %s6156_s14, 0 }
  0x8d   : > { %p6303_p2 = por %p335_p12, %p62_p4  ;;  %s50_s28 = ssub.s32 %s6011_s30, %s6739_s9 }
  0x8e   : > { %p6299_p1 = por %p6690_p9, %p68_p7  ;;  %p6309_p0 = por %p341_p10, %p68_p7 }
  0x8f   : > { %s6692_s19 = scalar_select %p6303_p2, 1, 0 }
  0x90   : > { %s6694_s17 = scalar_select %p6309_p0, 1, 0 }
  0x91   : > { %6693 = sst [smem:[#allocation34_spill]] %s6692_s19  ;;  %s52_s27 = sor.u32 %s51_s16, %s50_s28 }
  0x92   : > { %p79_p6 = scmp.eq.s32.totalorder %s50_s28, 0  ;;  %p53_p11 = scmp.eq.s32.totalorder %s52_s27, 0 }
  0x93   : > { %s448_s12 = sand.u32 1, %s5995_s26   ;;  %s6695_s3 = sadd.s32 1, %s5983_s23 }
  0x94   : > { %s6317_s20 = scalar_select %p79_p6, %s5983_s23, %s6695_s3  }
  0x95   : > { %s6320_s1 = scalar_select %p53_p11, %s5995_s26, %s55_s6  }
  0x96   : > { %s4365_s5 = sshll.u32 %s448_s12, 4  ;;  %s4366_s8 = sshll.u32 %s6007_s29, 1 }
  0x97   : > { %6696 = sst [smem:[#allocation35_spill]] %s6320_s1  ;;  %s4367_s11 = sshll.u32 %s6011_s30, 2 }
  0x98   : > { %s452_s9 = scalar_lea.vmem [#allocation4], %s4365_s5  ;;  %s458_s24 = sadd.s32 %s4367_s11, %s4366_s8 }
  0x99   : > { %s462_s18 = sshll.u32 %s452_s9, 4  ;;  %s4368_s19 = sshll.u32 %s458_s24, 7  ;;  %s463_s18 = int_to_ptr.vmem [resolvable:$true] %s462_s18 }
  0x9a   : > { %p6697_p4 = scmp.lt.s32.totalorder %s6015_s13, 4  ;;  %s460_s3 = scalar_lea.hbm %s6626_s0, %s4368_s19 }
  0x9b   : > { %s4856_s6 = smul.u32 768, %s6011_s30  ;;  %s494_s1 = scalar_lea.vmem [#allocation9], %s6229_s2 }
  0x9c   : > { %p6328_p5 = pnand %p6697_p4, %p6288_p8  ;;  %s501_s29 = sshll.u32 %s494_s1, 4  ;;  %s502_s29 = int_to_ptr.vmem [resolvable:$true] %s501_s29 }
  0x9d   : > { %s449_s26 = scalar_lea.sflag [#allocation5], %s448_s12  ;;  %s5836_s5 = scalar_lea.vmem %s463_s18, 256 }
  0x9e   : > { %p5825_p7 = pneg %p6328_p5  ;;  %p5837_p12 = scmp.ne.s32.totalorder %s463_s18, %s5836_s5 }
  0x9f   : > { %s6030_s8 = smov [#allocation4]  }
  0xa0   : > { %p5839_p10 = pnand %p5837_p12, %p5825_p7  ;;  %s5841_s11 = sshll.u32 %s6030_s8, 4  ;;  %s5842_s11 = int_to_ptr.vmem [resolvable:$false] %s5841_s11 }
  0xa1   : > { %s5843_s24 = scalar_lea.vmem %s5842_s11, 512  ;;  %p5844_p8 = scmp.lt.s32.totalorder %s463_s18, %s5842_s11 }
  0xa2   : > { %p5840_p9 = pneg %p5839_p10  ;;  %p5845_p6 = scmp.lt.s32.totalorder %s5843_s24, %s5836_s5 }
  0xa4   : > { %p5846_p11 = por %p5845_p6, %p5844_p8 }
  0xa6   : > { %p5847_p4 = pnand %p5846_p11, %p5840_p9 }
  0xa8   : > { %5850 = shalt.err (!%p5847_p4)
}
  0xa9   : > { %4912 = dma.hbm_to_vmem [thread:$0]  (!%p6328_p5), %s460_s3, 256, %s463_s18, %s449_s26  }
  0xaa   : > { %s6699_s9 = sld [smem:[#allocation37_spill]]  ;;  %s5864_s19 = scalar_lea.vmem %s502_s29, 768 }
  0xab   : > { %p5865_p7 = scmp.ne.s32.totalorder %s502_s29, %s5864_s19  ;;  %p6700_p12 = pneg %p6225_p13 }
  0xac   : > { %s6031_s12 = smov [#allocation9]  }
  0xad   : > { %p5867_p10 = pnand %p5865_p7, %p6700_p12  ;;  %s5869_s28 = sshll.u32 %s6031_s12, 4  ;;  %s5870_s28 = int_to_ptr.vmem [resolvable:$false] %s5869_s28 }
  0xae   : > { %s5871_s27 = scalar_lea.vmem %s5870_s28, 1536  ;;  %p5872_p9 = scmp.lt.s32.totalorder %s502_s29, %s5870_s28 }
  0xaf   : > { %p5868_p0 = pneg %p5867_p10  ;;  %p5873_p8 = scmp.lt.s32.totalorder %s5871_s27, %s5864_s19 }
  0xb0   : > { %s500_s4 = scalar_lea.hbm %s6699_s9, %s4856_s6 }
  0xb1   : > { %p5874_p6 = por %p5873_p8, %p5872_p9 }
  0xb3   : > { %p5875_p11 = pnand %p5874_p6, %p5868_p0 }
  0xb5   : > { %5878 = shalt.err (!%p5875_p11)
}
  0xb6   : > { %s6701_s26 = smov 16   ;;  %s6702_s18 = smov 256  }
  0xb7   : > { %4918 = dma.hbm_to_vmem [thread:$0]  (!%p6225_p13), %s500_s4, 768, %s502_s29, %s6231_s10, %s6702_s18, %s6702_s18, %s6701_s26  }
  0xb8   : > { %513 = sbr.rel (%p6161_p3) target bundleno = 4195 (0x1063), region = 68  ;;  %s6356_s3 = sand.u32 (!%p6161_p3), 1, %s5991_s25  }
  0xb9   : > { %s4374_s6 = sshll.u32 (!%p6161_p3), %s6356_s3, 4  ;;  %s516_s5 = scalar_lea.sflag (!%p6161_p3), [#allocation5], %s6356_s3 }
  0xba   : > { %s6360_s8 = scalar_lea.vmem (!%p6161_p3), [#allocation4], %s4374_s6 }
  0xbd   : > { %5950 = dma.done.wait (%p6299_p1), %s516_s5, 256  }
  0xbe   : > { %5952 = vsyncadd (%p6299_p1), %s516_s5, 4294967040  ;;  %s524_s10 = sand.u32 1, %s6156_s14   ;;  %s526_s29 = sand.u32 1, %s5979_s22  }
  0xbf   : > { %s4375_s21 = sshll.u32 %s526_s29, 5  ;;  %s525_s11 = scalar_lea.sflag [#allocation8], %s524_s10 }
  0xc0   : > { %s6368_s24 = scalar_lea.vmem [#allocation7], %s4375_s21  ;;  %p6704_p3 = scmp.ne.s32.totalorder %s6680_s15, 0 }
  0xc2   : > { %5954 = dma.done.wait (%p6704_p3), %s525_s11, 1280  }
  0xc3   : > { %5956 = vsyncadd (%p6704_p3), %s525_s11, 4294966016  ;;  %s4857_s1 = smul.u32 48, %s526_s29  ;;  %p6705_p13 = scmp.eq.s32.totalorder %s6156_s14, 0 }
  0xc5   : > { %s6374_s2 = scalar_lea.vmem [#allocation9], %s4857_s1 }
  0xc6   : > { %5958 = dma.done.wait (%p6705_p13), [#allocation11], 20480   ;;  %p6706_p1 = pmov %p6705_p13 }
  0xc8   : > { %5960 = vsyncadd (%p6706_p1), [#allocation11], 4294946816  ;;  %p6707_p0 = pmov %p6706_p1 }
  0xca   : > { %5962 = dma.done.wait (%p6707_p0), [#allocation14], 20480   ;;  %p6708_p5 = pmov %p6707_p0 }
  0xcb   : > { %p6709_p4 = pmov %p6707_p0 }
  0xcc   : > { %5964 = vsyncadd (%p6708_p5), [#allocation14], 4294946816 }
  0xcd   : > { %5966 = dma.done.wait (%p6709_p4), [#allocation17], 8704   ;;  %p6710_p7 = pmov %p6707_p0 }
  0xce   : > { %s6388_s15 = scalar_lea.vmem [#allocation19], %s4374_s6  ;;  %s6711_s7 = sld [smem:[#allocation28_spill]] }
  0xcf   : > { %5968 = vsyncadd (%p6710_p7), [#allocation17], 4294958592 }
  0xd4   : > { %p4383_p12 = scmp.ne.s32.totalorder %s6711_s7, 0 }
  0xd5   : > { %s6712_s4 = sld [smem:[#allocation39_spill]] (!%p4383_p12) }
  0xd6   : > { %616 = sbr.rel (%p4383_p12) target bundleno = 556 (0x22c), region = 108  ;;  %s6713_s28 = sld [smem:[#allocation41_spill]] (!%p4383_p12) }
  0xdb   : > { %v5039_v0 = vld [vmem:[#allocation10 + $0x15c] ss:$24 sps:$4 sm:$0xff]   ;;  %v5043_v2 = vld [vmem:[#allocation10 + $0x158] ss:$24 sps:$4 sm:$0xff]   ;;  %v5045_v4 = vld [vmem:[#allocation10 + $0x12c] ss:$24 sps:$4 sm:$0xff]  }
  0xdc   : > { %v5041_v1 = vld [vmem:[#allocation10 + $0x164] ss:$24 sps:$4 sm:$0xff]   ;;  %1029 = vmatprep.subr.bf16.mxu0 %v5039_v0  ;;  %v5044_v3 = vld [vmem:[#allocation10 + $0x160] ss:$24 sps:$4 sm:$0xff]   ;;  %v5047_v5 = vld [vmem:[#allocation10 + $0x134] ss:$24 sps:$4 sm:$0xff]  }
  0xdd   : > { %1072 = vmatprep.subr.bf16.mxu1 %v5041_v1  ;;  %1030 = vmatpush1.bf16.msra.mxu0 %v5043_v2  ;;  %v5049_v6 = vld [vmem:[#allocation10 + $0x128] ss:$24 sps:$4 sm:$0xff]   ;;  %v5051_v8 = vld [vmem:[#allocation10 + $0xfc] ss:$24 sps:$4 sm:$0xff]   ;;  %v5055_v10 = vld [vmem:[#allocation10 + $0xf8] ss:$24 sps:$4 sm:$0xff]  }
  0xde   : > { %1073 = vmatpush1.bf16.msra.mxu1 %v5044_v3  ;;  %1031 = vmatprep.subr.bf16.mxu0 %v5045_v4  ;;  %v5050_v7 = vld [vmem:[#allocation10 + $0x130] ss:$24 sps:$4 sm:$0xff]   ;;  %v5053_v9 = vld [vmem:[#allocation10 + $0x104] ss:$24 sps:$4 sm:$0xff]   ;;  %v5056_v11 = vld [vmem:[#allocation10 + $0x100] ss:$24 sps:$4 sm:$0xff]  }
  0xdf   : > { %1074 = vmatprep.subr.bf16.mxu1 %v5047_v5  ;;  %v5057_v12 = vld [vmem:[#allocation10 + $0xcc] ss:$24 sps:$4 sm:$0xff]   ;;  %v5061_v14 = vld [vmem:[#allocation10 + $0xc8] ss:$24 sps:$4 sm:$0xff]   ;;  %v5063_v16 = vld [vmem:[#allocation10 + $0x9c] ss:$24 sps:$4 sm:$0xff]  }
  0xe0   : > { %v5059_v13 = vld [vmem:[#allocation10 + $0xd4] ss:$24 sps:$4 sm:$0xff]   ;;  %v5062_v15 = vld [vmem:[#allocation10 + $0xd0] ss:$24 sps:$4 sm:$0xff]   ;;  %v5065_v17 = vld [vmem:[#allocation10 + $0xa4] ss:$24 sps:$4 sm:$0xff]  }
  0xe1   : > { %1032 = vmatpush1.bf16.msra.mxu0 %v5049_v6  ;;  %v5067_v18 = vld [vmem:[#allocation10 + $0x98] ss:$24 sps:$4 sm:$0xff]   ;;  %v5069_v20 = vld [vmem:[#allocation10 + $0x6c] ss:$24 sps:$4 sm:$0xff]   ;;  %v5073_v22 = vld [vmem:[#allocation10 + $0x68] ss:$24 sps:$4 sm:$0xff]  }
  0xe2   : > { %1075 = vmatpush1.bf16.msra.mxu1 %v5050_v7  ;;  %1033 = vmatprep.subr.bf16.mxu0 %v5051_v8  ;;  %v5068_v19 = vld [vmem:[#allocation10 + $0xa0] ss:$24 sps:$4 sm:$0xff]   ;;  %v5071_v21 = vld [vmem:[#allocation10 + $0x74] ss:$24 sps:$4 sm:$0xff]   ;;  %v5074_v23 = vld [vmem:[#allocation10 + $0x70] ss:$24 sps:$4 sm:$0xff]  }
  0xe3   : > { %1076 = vmatprep.subr.bf16.mxu1 %v5053_v9  ;;  %v5075_v24 = vld [vmem:[#allocation10 + $0x3c] ss:$24 sps:$4 sm:$0xff]   ;;  %v5079_v26 = vld [vmem:[#allocation10 + $0x38] ss:$24 sps:$4 sm:$0xff]   ;;  %v5081_v28 = vld [vmem:[#allocation10 + $0xc] ss:$24 sps:$4 sm:$0xff]  }
  0xe4   : > { %v5077_v25 = vld [vmem:[#allocation10 + $0x44] ss:$24 sps:$4 sm:$0xff]   ;;  %v5080_v27 = vld [vmem:[#allocation10 + $0x40] ss:$24 sps:$4 sm:$0xff]   ;;  %v5083_v29 = vld [vmem:[#allocation10 + $0x14] ss:$24 sps:$4 sm:$0xff]  }
  0xe5   : > { %1034 = vmatpush1.bf16.msra.mxu0 %v5055_v10  ;;  %v5085_v30 = vld [vmem:[#allocation10 + $0x8] ss:$24 sps:$4 sm:$0xff]   ;;  %v5087_v32 = vld [vmem:[#allocation10 + $0x2dc] ss:$24 sps:$4 sm:$0xff]   ;;  %v5091_v34 = vld [vmem:[#allocation10 + $0x2d8] ss:$24 sps:$4 sm:$0xff]  }
  0xe6   : > { %1077 = vmatpush1.bf16.msra.mxu1 %v5056_v11  ;;  %1035 = vmatprep.subr.bf16.mxu0 %v5057_v12  ;;  %v5086_v31 = vld [vmem:[#allocation10 + $0x10] ss:$24 sps:$4 sm:$0xff]   ;;  %v5089_v33 = vld [vmem:[#allocation10 + $0x2e4] ss:$24 sps:$4 sm:$0xff]   ;;  %v5092_v35 = vld [vmem:[#allocation10 + $0x2e0] ss:$24 sps:$4 sm:$0xff]  }
  0xe7   : > { %1078 = vmatprep.subr.bf16.mxu1 %v5059_v13  ;;  %v5093_v36 = vld [vmem:[#allocation10 + $0x2ac] ss:$24 sps:$4 sm:$0xff]   ;;  %v5097_v38 = vld [vmem:[#allocation10 + $0x2a8] ss:$24 sps:$4 sm:$0xff]   ;;  %v5099_v40 = vld [vmem:[#allocation10 + $0x27c] ss:$24 sps:$4 sm:$0xff]  }
  0xe8   : > { %v5095_v37 = vld [vmem:[#allocation10 + $0x2b4] ss:$24 sps:$4 sm:$0xff]   ;;  %v5098_v39 = vld [vmem:[#allocation10 + $0x2b0] ss:$24 sps:$4 sm:$0xff]   ;;  %v5101_v41 = vld [vmem:[#allocation10 + $0x284] ss:$24 sps:$4 sm:$0xff]  }
  0xe9   : > { %1036 = vmatpush1.bf16.msra.mxu0 %v5061_v14  ;;  %v5103_v42 = vld [vmem:[#allocation10 + $0x278] ss:$24 sps:$4 sm:$0xff]   ;;  %v5105_v44 = vld [vmem:[#allocation10 + $0x24c] ss:$24 sps:$4 sm:$0xff]   ;;  %v5109_v47 = vld [vmem:[#allocation10 + $0x248] ss:$24 sps:$4 sm:$0xff]  }
  0xea   : > { %1079 = vmatpush1.bf16.msra.mxu1 %v5062_v15  ;;  %1037 = vmatprep.subr.bf16.mxu0 %v5063_v16  ;;  %v5104_v43 = vld [vmem:[#allocation10 + $0x280] ss:$24 sps:$4 sm:$0xff]   ;;  %v5107_v45 = vld [vmem:[#allocation10 + $0x254] ss:$24 sps:$4 sm:$0xff]   ;;  %v5110_v48 = vld [vmem:[#allocation10 + $0x250] ss:$24 sps:$4 sm:$0xff]  }
  0xeb   : > { %1080 = vmatprep.subr.bf16.mxu1 %v5065_v17  ;;  %v618_v46 = vld [vmem:[%s6368_s24 + $0x8] sm:$0xff]  ;;  %v620_v49 = vld [vmem:[%s6368_s24 + $0x18] sm:$0xff]  ;;  %v617_v3 = vld [vmem:[%s6368_s24] sm:$0xff] }
  0xec   : > { %v5111_v50 = vld [vmem:[#allocation10 + $0x21c] ss:$24 sps:$4 sm:$0xff]   ;;  %v622_v51 = vpack.c.bf16 %v620_v49, %v618_v46  ;;  %v5115_v53 = vld [vmem:[#allocation10 + $0x218] ss:$24 sps:$4 sm:$0xff]   ;;  %v5117_v55 = vld [vmem:[#allocation10 + $0x1ec] ss:$24 sps:$4 sm:$0xff]  }
  0xed   : > { %1038 = vmatpush1.bf16.msra.mxu0 %v5067_v18  ;;  %v5113_v52 = vld [vmem:[#allocation10 + $0x224] ss:$24 sps:$4 sm:$0xff]   ;;  %v5116_v54 = vld [vmem:[#allocation10 + $0x220] ss:$24 sps:$4 sm:$0xff]   ;;  %v5119_v56 = vld [vmem:[#allocation10 + $0x1f4] ss:$24 sps:$4 sm:$0xff]  }
  0xee   : > { %1081 = vmatpush1.bf16.msra.mxu1 %v5068_v19  ;;  %1039 = vmatprep.subr.bf16.mxu0 %v5069_v20  ;;  %v5121_v57 = vld [vmem:[#allocation10 + $0x1e8] ss:$24 sps:$4 sm:$0xff]   ;;  %v5123_v59 = vld [vmem:[#allocation10 + $0x1bc] ss:$24 sps:$4 sm:$0xff]   ;;  %v5127_v61 = vld [vmem:[#allocation10 + $0x1b8] ss:$24 sps:$4 sm:$0xff]  }
  0xef   : > { %1082 = vmatprep.subr.bf16.mxu1 %v5071_v21  ;;  %1061 = vmatprep.mubr.bf16.mxu0 %v622_v51  ;;  %v5122_v58 = vld [vmem:[#allocation10 + $0x1f0] ss:$24 sps:$4 sm:$0xff]   ;;  %v5125_v60 = vld [vmem:[#allocation10 + $0x1c4] ss:$24 sps:$4 sm:$0xff]   ;;  %v5128_v62 = vld [vmem:[#allocation10 + $0x1c0] ss:$24 sps:$4 sm:$0xff]  }
  0xf0   : > { %1104 = vmatprep.mubr.bf16.mxu1 %v622_v51  ;;  %v5129_v63 = vld [vmem:[#allocation10 + $0x18c] ss:$24 sps:$4 sm:$0xff]   ;;  %v5133_v1 = vld [vmem:[#allocation10 + $0x188] ss:$24 sps:$4 sm:$0xff]   ;;  %v619_v4 = vld [vmem:[%s6368_s24 + $0x10] sm:$0xff] }
  0xf1   : > { %1040 = vmatpush1.bf16.msra.mxu0 %v5073_v22  ;;  %v5131_v0 = vld [vmem:[#allocation10 + $0x194] ss:$24 sps:$4 sm:$0xff]   ;;  %v5134_v2 = vld [vmem:[#allocation10 + $0x190] ss:$24 sps:$4 sm:$0xff]   ;;  %v621_v7 = vpack.c.bf16 %v619_v4, %v617_v3 }
  0xf2   : > { %1083 = vmatpush1.bf16.msra.mxu1 %v5074_v23  ;;  %1041 = vmatprep.subr.bf16.mxu0 %v5075_v24  ;;  %v5137_v5 = vld [vmem:[#allocation12 + $0xe4] ss:$16 sps:$4 sm:$0xff]   ;;  %v5140_v6 = vld [vmem:[#allocation12 + $0xec] ss:$16 sps:$4 sm:$0xff]   ;;  %v5135_v8 = vld [vmem:[#allocation12 + $0xe0] ss:$16 sps:$4 sm:$0xff]  }
  0xf3   : > { %1084 = vmatprep.subr.bf16.mxu1 %v5077_v25  ;;  %v5138_v9 = vld [vmem:[#allocation12 + $0xe8] ss:$16 sps:$4 sm:$0xff]   ;;  %v5143_v10 = vld [vmem:[#allocation12 + $0xc4] ss:$16 sps:$4 sm:$0xff]   ;;  %v5146_v11 = vld [vmem:[#allocation12 + $0xcc] ss:$16 sps:$4 sm:$0xff]  }
  0xf4   : > { %v5141_v12 = vld [vmem:[#allocation12 + $0xc0] ss:$16 sps:$4 sm:$0xff]   ;;  %v5144_v13 = vld [vmem:[#allocation12 + $0xc8] ss:$16 sps:$4 sm:$0xff]   ;;  %v5149_v14 = vld [vmem:[#allocation12 + $0xa4] ss:$16 sps:$4 sm:$0xff]  }
  0xf5   : > { %1042 = vmatpush1.bf16.msra.mxu0 %v5079_v26  ;;  %v5152_v15 = vld [vmem:[#allocation12 + $0xac] ss:$16 sps:$4 sm:$0xff]   ;;  %v5147_v16 = vld [vmem:[#allocation12 + $0xa0] ss:$16 sps:$4 sm:$0xff]   ;;  %v5150_v17 = vld [vmem:[#allocation12 + $0xa8] ss:$16 sps:$4 sm:$0xff]  }
  0xf6   : > { %1085 = vmatpush1.bf16.msra.mxu1 %v5080_v27  ;;  %1043 = vmatprep.subr.bf16.mxu0 %v5081_v28  ;;  %v5155_v18 = vld [vmem:[#allocation12 + $0x84] ss:$16 sps:$4 sm:$0xff]   ;;  %v5158_v19 = vld [vmem:[#allocation12 + $0x8c] ss:$16 sps:$4 sm:$0xff]   ;;  %v5153_v20 = vld [vmem:[#allocation12 + $0x80] ss:$16 sps:$4 sm:$0xff]  }
  0xf7   : > { %1086 = vmatprep.subr.bf16.mxu1 %v5083_v29  ;;  %v5156_v21 = vld [vmem:[#allocation12 + $0x88] ss:$16 sps:$4 sm:$0xff]   ;;  %v5161_v22 = vld [vmem:[#allocation12 + $0x64] ss:$16 sps:$4 sm:$0xff]   ;;  %v5164_v23 = vld [vmem:[#allocation12 + $0x6c] ss:$16 sps:$4 sm:$0xff]  }
  0xf8   : > { %v5159_v24 = vld [vmem:[#allocation12 + $0x60] ss:$16 sps:$4 sm:$0xff]   ;;  %v5162_v25 = vld [vmem:[#allocation12 + $0x68] ss:$16 sps:$4 sm:$0xff]   ;;  %v5167_v26 = vld [vmem:[#allocation12 + $0x44] ss:$16 sps:$4 sm:$0xff]  }
  0xf9   : > { %1044 = vmatpush1.bf16.msra.mxu0 %v5085_v30  ;;  %v5170_v27 = vld [vmem:[#allocation12 + $0x4c] ss:$16 sps:$4 sm:$0xff]   ;;  %v5165_v28 = vld [vmem:[#allocation12 + $0x40] ss:$16 sps:$4 sm:$0xff]   ;;  %v5168_v29 = vld [vmem:[#allocation12 + $0x48] ss:$16 sps:$4 sm:$0xff]  }
  0xfa   : > { %1087 = vmatpush1.bf16.msra.mxu1 %v5086_v31  ;;  %1045 = vmatprep.subr.bf16.mxu0 %v5087_v32  ;;  %v5173_v30 = vld [vmem:[#allocation12 + $0x24] ss:$16 sps:$4 sm:$0xff]   ;;  %v5176_v31 = vld [vmem:[#allocation12 + $0x2c] ss:$16 sps:$4 sm:$0xff]   ;;  %v5195_v51 = vld [vmem:[#allocation12 + $0x1a0] ss:$16 sps:$4 sm:$0xff]  }
  0xfb   : > { %1088 = vmatprep.subr.bf16.mxu1 %v5089_v33  ;;  %v1124_v32 = vld [vmem:[%s6374_s2 + $0x8] sm:$0xff]  ;;  %v1126_v33 = vld [vmem:[%s6374_s2 + $0x18] sm:$0xff]  ;;  %v5197_v49 = vld [vmem:[#allocation12 + $0x1a4] ss:$16 sps:$4 sm:$0xff]  }
  0xfc   : > { %v5194_v46 = vld [vmem:[#allocation12 + $0x1cc] ss:$16 sps:$4 sm:$0xff]   ;;  %v5219_v3 = vld [vmem:[#allocation12 + $0x120] ss:$16 sps:$4 sm:$0xff]   ;;  %v5222_v4 = vld [vmem:[#allocation12 + $0x128] ss:$16 sps:$4 sm:$0xff]  }
  0xfd   : > { %1046 = vmatpush2.bf16.msra.mxu0 %v5091_v34  ;;  %v5171_v34 = vld [vmem:[#allocation12 + $0x20] ss:$16 sps:$4 sm:$0xff]  }
  0xfe   : > { %1089 = vmatpush2.bf16.msra.mxu1 %v5092_v35  ;;  %1047 = vmatprep.subr.bf16.mxu0 %v5093_v36  ;;  %v5174_v35 = vld [vmem:[#allocation12 + $0x28] ss:$16 sps:$4 sm:$0xff]   ;;  %v1130_v36 = vpack.c.bf16 %v1126_v33, %v1124_v32 }
  0xff   : > { %1090 = vmatprep.subr.bf16.mxu1 %v5095_v37  ;;  %v5179_v37 = vld [vmem:[#allocation12 + $0x4] ss:$16 sps:$4 sm:$0xff]  }
 0x101   : > { %1048 = vmatpush2.bf16.msra.mxu0 %v5097_v38  ;;  %v5182_v38 = vld [vmem:[#allocation12 + $0xc] ss:$16 sps:$4 sm:$0xff]  }
 0x102   : > { %1091 = vmatpush2.bf16.msra.mxu1 %v5098_v39  ;;  %1049 = vmatprep.subr.bf16.mxu0 %v5099_v40  ;;  %v5177_v39 = vld [vmem:[#allocation12] ss:$16 sps:$4 sm:$0xff]   ;;  %v5180_v40 = vld [vmem:[#allocation12 + $0x8] ss:$16 sps:$4 sm:$0xff]  }
 0x103   : > { %1092 = vmatprep.subr.bf16.mxu1 %v5101_v41  ;;  %v5185_v41 = vld [vmem:[#allocation12 + $0x1e4] ss:$16 sps:$4 sm:$0xff]  }
 0x105   : > { %1050 = vmatpush2.bf16.msra.mxu0 %v5103_v42  ;;  %v5188_v42 = vld [vmem:[#allocation12 + $0x1ec] ss:$16 sps:$4 sm:$0xff]  }
 0x106   : > { %1093 = vmatpush2.bf16.msra.mxu1 %v5104_v43  ;;  %1051 = vmatprep.subr.bf16.mxu0 %v5105_v44  ;;  %v5183_v43 = vld [vmem:[#allocation12 + $0x1e0] ss:$16 sps:$4 sm:$0xff]   ;;  %v5186_v44 = vld [vmem:[#allocation12 + $0x1e8] ss:$16 sps:$4 sm:$0xff]  }
 0x107   : > { %1094 = vmatprep.subr.bf16.mxu1 %v5107_v45  ;;  %v5191_v45 = vld [vmem:[#allocation12 + $0x1c4] ss:$16 sps:$4 sm:$0xff]  }
 0x109   : > { %1052 = vmatpush2.bf16.msra.mxu0 %v5109_v47  ;;  %v5189_v47 = vld [vmem:[#allocation12 + $0x1c0] ss:$16 sps:$4 sm:$0xff]  }
 0x10a   : > { %1095 = vmatpush2.bf16.msra.mxu1 %v5110_v48  ;;  %1053 = vmatprep.subr.bf16.mxu0 %v5111_v50  ;;  %v5192_v48 = vld [vmem:[#allocation12 + $0x1c8] ss:$16 sps:$4 sm:$0xff]   ;;  %v5200_v50 = vld [vmem:[#allocation12 + $0x1ac] ss:$16 sps:$4 sm:$0xff]  }
 0x10b   : > { %1096 = vmatprep.subr.bf16.mxu1 %v5113_v52  ;;  %v5198_v52 = vld [vmem:[#allocation12 + $0x1a8] ss:$16 sps:$4 sm:$0xff]  }
 0x10d   : > { %1054 = vmatpush2.bf16.msra.mxu0 %v5115_v53  ;;  %v5203_v53 = vld [vmem:[#allocation12 + $0x184] ss:$16 sps:$4 sm:$0xff]  }
 0x10e   : > { %1097 = vmatpush2.bf16.msra.mxu1 %v5116_v54  ;;  %1055 = vmatprep.subr.bf16.mxu0 %v5117_v55  ;;  %v5206_v54 = vld [vmem:[#allocation12 + $0x18c] ss:$16 sps:$4 sm:$0xff]   ;;  %v5201_v55 = vld [vmem:[#allocation12 + $0x180] ss:$16 sps:$4 sm:$0xff]  }
 0x10f   : > { %1098 = vmatprep.subr.bf16.mxu1 %v5119_v56  ;;  %v5204_v56 = vld [vmem:[#allocation12 + $0x188] ss:$16 sps:$4 sm:$0xff]  }
 0x111   : > { %1056 = vmatpush2.bf16.msra.mxu0 %v5121_v57  ;;  %v5209_v57 = vld [vmem:[#allocation12 + $0x164] ss:$16 sps:$4 sm:$0xff]  }
 0x112   : > { %1099 = vmatpush2.bf16.msra.mxu1 %v5122_v58  ;;  %1057 = vmatprep.subr.bf16.mxu0 %v5123_v59  ;;  %v5212_v58 = vld [vmem:[#allocation12 + $0x16c] ss:$16 sps:$4 sm:$0xff]   ;;  %v5207_v59 = vld [vmem:[#allocation12 + $0x160] ss:$16 sps:$4 sm:$0xff]  }
 0x113   : > { %1100 = vmatprep.subr.bf16.mxu1 %v5125_v60  ;;  %v5210_v60 = vld [vmem:[#allocation12 + $0x168] ss:$16 sps:$4 sm:$0xff]  }
 0x115   : > { %1058 = vmatpush2.bf16.msra.mxu0 %v5127_v61  ;;  %v5215_v61 = vld [vmem:[#allocation12 + $0x144] ss:$16 sps:$4 sm:$0xff]  }
 0x116   : > { %1101 = vmatpush2.bf16.msra.mxu1 %v5128_v62  ;;  %1059 = vmatprep.subr.bf16.mxu0 %v5129_v63  ;;  %v5218_v62 = vld [vmem:[#allocation12 + $0x14c] ss:$16 sps:$4 sm:$0xff]   ;;  %v5213_v63 = vld [vmem:[#allocation12 + $0x140] ss:$16 sps:$4 sm:$0xff]  }
 0x117   : > { %1102 = vmatprep.subr.bf16.mxu1 %v5131_v0  ;;  %v5216_v0 = vld [vmem:[#allocation12 + $0x148] ss:$16 sps:$4 sm:$0xff]  }
 0x119   : > { %1060 = vmatpush2.bf16.msra.mxu0 %v5133_v1  ;;  %v5221_v1 = vld [vmem:[#allocation12 + $0x124] ss:$16 sps:$4 sm:$0xff]  }
 0x11a   : > { %1103 = vmatpush2.bf16.msra.mxu1 %v5134_v2  ;;  %1539 = vmatprep.subr.bf16.mxu0 %v5137_v5  ;;  %v5224_v2 = vld [vmem:[#allocation12 + $0x12c] ss:$16 sps:$4 sm:$0xff]   ;;  %v5227_v5 = vld [vmem:[#allocation12 + $0x104] ss:$16 sps:$4 sm:$0xff]  }
 0x11b   : > { %1590 = vmatprep.subr.bf16.mxu1 %v5140_v6  ;;  %v5230_v6 = vld [vmem:[#allocation12 + $0x10c] ss:$16 sps:$4 sm:$0xff]  }
 0x11c   : > { %1062 = vmatmul.mubr.bf16.vlgmr.msra.gmra.mxu0 %v621_v7 }
 0x11d   : > { %1105 = vmatmul.mubr.bf16.vlgmr.msra.gmra.mxu1 %v621_v7  ;;  %1540 = vmatpush1.bf16.msra.mxu0 %v5135_v8  ;;  %v5225_v7 = vld [vmem:[#allocation12 + $0x100] ss:$16 sps:$4 sm:$0xff]   ;;  %v5228_v8 = vld [vmem:[#allocation12 + $0x108] ss:$16 sps:$4 sm:$0xff]  }
 0x11e   : > { %1591 = vmatpush1.bf16.msra.mxu1 %v5138_v9  ;;  %1541 = vmatprep.subr.bf16.mxu0 %v5143_v10  ;;  %v1123_v9 = vld [vmem:[%s6374_s2] sm:$0xff]  ;;  %v1125_v10 = vld [vmem:[%s6374_s2 + $0x10] sm:$0xff] }
 0x11f   : > { %1592 = vmatprep.subr.bf16.mxu1 %v5146_v11  ;;  %1571 = vmatprep.mubr.bf16.mxu0 %v1130_v36  ;;  %v1128_v11 = vld [vmem:[%s6374_s2 + $0x28] sm:$0xff] }
 0x120   : > { %1622 = vmatprep.mubr.bf16.mxu1 %v1130_v36 }
 0x121   : > { %1542 = vmatpush1.bf16.msra.mxu0 %v5141_v12  ;;  %v1129_v12 = vpack.c.bf16 %v1125_v10, %v1123_v9 }
 0x122   : > { %1593 = vmatpush1.bf16.msra.mxu1 %v5144_v13  ;;  %1543 = vmatprep.subr.bf16.mxu0 %v5149_v14  ;;  %v1132_v13 = vpack.c.bf16 %v1128_v11, %v1128_v11  ;;  %v1127_v14 = vld [vmem:[%s6374_s2 + $0x20] sm:$0xff] }
 0x123   : > { %1594 = vmatprep.subr.bf16.mxu1 %v5152_v15  ;;  %v1131_v15 = vpack.c.bf16 %v1127_v14, %v1127_v14 }
 0x125   : > { %1544 = vmatpush1.bf16.msra.mxu0 %v5147_v16  ;;  %v689_v16 = vlaneseq }
 0x126   : > { %1595 = vmatpush1.bf16.msra.mxu1 %v5150_v17  ;;  %1545 = vmatprep.subr.bf16.mxu0 %v5155_v18 }
 0x127   : > { %1596 = vmatprep.subr.bf16.mxu1 %v5158_v19  ;;  %v690_v17 = vshrl.u32 %v689_v16, 7 }
 0x129   : > { %1546 = vmatpush1.bf16.msra.mxu0 %v5153_v20  ;;  %v691_v18 = vsub.s32 0, %v690_v17  ;;  %v699_v19 = vsub.s32 2, %v690_v17  ;;  %v687_v20 = vld [vmem:[%s6712_s4 + $0x2] sm:$0xf] }
 0x12a   : > { %1597 = vmatpush1.bf16.msra.mxu1 %v5156_v21  ;;  %1547 = vmatprep.subr.bf16.mxu0 %v5161_v22  ;;  %v695_v21 = vsub.s32 1, %v690_v17  ;;  %v703_v22 = vsub.s32 3, %v690_v17 }
 0x12b   : > { %1598 = vmatprep.subr.bf16.mxu1 %v5164_v23  ;;  %v692_v23 = vrot.slane %v687_v20, %v691_v18 }
 0x12d   : > { %1548 = vmatpush1.bf16.msra.mxu0 %v5159_v24  ;;  %v700_v24 = vrot.slane %v687_v20, %v699_v19 }
 0x12e   : > { %1599 = vmatpush1.bf16.msra.mxu1 %v5162_v25  ;;  %1549 = vmatprep.subr.bf16.mxu0 %v5167_v26  ;;  %v696_v25 = vrot.slane %v687_v20, %v695_v21  ;;  %v704_v26 = vrot.slane %v687_v20, %v703_v22 }
 0x12f   : > { %1600 = vmatprep.subr.bf16.mxu1 %v5170_v27 }
 0x131   : > { %1550 = vmatpush1.bf16.msra.mxu0 %v5165_v28 }
 0x132   : > { %1601 = vmatpush1.bf16.msra.mxu1 %v5168_v29  ;;  %1551 = vmatprep.subr.bf16.mxu0 %v5173_v30 }
 0x133   : > { %1602 = vmatprep.subr.bf16.mxu1 %v5176_v31 }
 0x135   : > { %1552 = vmatpush1.bf16.msra.mxu0 %v5171_v34 }
 0x136   : > { %1603 = vmatpush1.bf16.msra.mxu1 %v5174_v35  ;;  %1553 = vmatprep.subr.bf16.mxu0 %v5179_v37 }
 0x137   : > { %1604 = vmatprep.subr.bf16.mxu1 %v5182_v38 }
 0x139   : > { %1554 = vmatpush1.bf16.msra.mxu0 %v5177_v39 }
 0x13a   : > { %1605 = vmatpush1.bf16.msra.mxu1 %v5180_v40  ;;  %1555 = vmatprep.subr.bf16.mxu0 %v5185_v41 }
 0x13b   : > { %1606 = vmatprep.subr.bf16.mxu1 %v5188_v42 }
 0x13d   : > { %1556 = vmatpush2.bf16.msra.mxu0 %v5183_v43  ;;  %v1197_v43 = vld [vmem:[%s6713_s28] sm:$0xf] }
 0x13e   : > { %1607 = vmatpush2.bf16.msra.mxu1 %v5186_v44  ;;  %1557 = vmatprep.subr.bf16.mxu0 %v5191_v45  ;;  %v1202_v44 = vrot.slane %v1197_v43, %v691_v18  ;;  %v1210_v45 = vrot.slane %v1197_v43, %v699_v19 }
 0x13f   : > { %1608 = vmatprep.subr.bf16.mxu1 %v5194_v46  ;;  %v1206_v46 = vrot.slane %v1197_v43, %v695_v21 }
 0x141   : > { %1558 = vmatpush2.bf16.msra.mxu0 %v5189_v47  ;;  %v1214_v47 = vrot.slane %v1197_v43, %v703_v22 }
 0x142   : > { %1609 = vmatpush2.bf16.msra.mxu1 %v5192_v48  ;;  %1559 = vmatprep.subr.bf16.mxu0 %v5197_v49 }
 0x143   : > { %1610 = vmatprep.subr.bf16.mxu1 %v5200_v50 }
 0x145   : > { %1560 = vmatpush2.bf16.msra.mxu0 %v5195_v51 }
 0x146   : > { %1611 = vmatpush2.bf16.msra.mxu1 %v5198_v52  ;;  %1561 = vmatprep.subr.bf16.mxu0 %v5203_v53 }
 0x147   : > { %1612 = vmatprep.subr.bf16.mxu1 %v5206_v54 }
 0x149   : > { %1562 = vmatpush2.bf16.msra.mxu0 %v5201_v55 }
 0x14a   : > { %1613 = vmatpush2.bf16.msra.mxu1 %v5204_v56  ;;  %1563 = vmatprep.subr.bf16.mxu0 %v5209_v57 }
 0x14b   : > { %1614 = vmatprep.subr.bf16.mxu1 %v5212_v58 }
 0x14d   : > { %1564 = vmatpush2.bf16.msra.mxu0 %v5207_v59 }
 0x14e   : > { %1615 = vmatpush2.bf16.msra.mxu1 %v5210_v60  ;;  %1565 = vmatprep.subr.bf16.mxu0 %v5215_v61 }
 0x14f   : > { %1616 = vmatprep.subr.bf16.mxu1 %v5218_v62 }
 0x151   : > { %1566 = vmatpush2.bf16.msra.mxu0 %v5213_v63 }
 0x152   : > { %1617 = vmatpush2.bf16.msra.mxu1 %v5216_v0  ;;  %1567 = vmatprep.subr.bf16.mxu0 %v5221_v1 }
 0x153   : > { %1618 = vmatprep.subr.bf16.mxu1 %v5224_v2 }
 0x155   : > { %1568 = vmatpush2.bf16.msra.mxu0 %v5219_v3 }
 0x156   : > { %1619 = vmatpush2.bf16.msra.mxu1 %v5222_v4  ;;  %1569 = vmatprep.subr.bf16.mxu0 %v5227_v5 }
 0x157   : > { %1620 = vmatprep.subr.bf16.mxu1 %v5230_v6 }
 0x159   : > { %1570 = vmatpush2.bf16.msra.mxu0 %v5225_v7 }
 0x15a   : > { %1621 = vmatpush2.bf16.msra.mxu1 %v5228_v8 }
 0x15c   : > { %1572 = vmatmul.mubr.bf16.vlgmr.msra.gmra.mxu0 %v1129_v12 }
 0x15d   : > { %1623 = vmatmul.mubr.bf16.vlgmr.msra.gmra.mxu1 %v1129_v12  ;;  %1581 = vmatprep.mubr.bf16.mxu0 %v1132_v13 }
 0x15e   : > { %1632 = vmatprep.mubr.bf16.mxu1 %v1132_v13 }
 0x164   : > { %1582 = vmatmul.mubr.bf16.gmra.mxu0 %v1131_v15 }
 0x165   : > { %1633 = vmatmul.mubr.bf16.gmra.mxu1 %v1131_v15 }
 0x1dc   : > { %v1063_v27 = vpop.f32.mrf.mxu0 }
 0x1dd   : > { %v1106_v28 = vpop.f32.mrf.mxu1  ;;  %v1064_v29 = vadd.f32 %v1063_v27, %v692_v23 }
 0x1de   : > { %v1107_v30 = vadd.f32 %v1106_v28, %v700_v24  ;;  %v1065_v31 = vpop.f32.mrf.mxu0 }
 0x1df   : > { %v1108_v32 = vpop.f32.mrf.mxu1  ;;  %1115 = vst [vmem:[#allocation2 + $0x30] sm:$0xff] %v1064_v29  ;;  %v1066_v33 = vadd.f32 %v1065_v31, %v696_v25 }
 0x1e0   : > { %1117 = vst [vmem:[#allocation2 + $0x18] sm:$0xff] %v1107_v30  ;;  %v1109_v34 = vadd.f32 %v1108_v32, %v704_v26  ;;  %v1067_v35 = vpop.f32.mrf.mxu0 }
 0x1e1   : > { %v1110_v36 = vpop.f32.mrf.mxu1  ;;  %1116 = vst [vmem:[#allocation2] sm:$0xff] %v1066_v33  ;;  %v1068_v37 = vadd.f32 %v1067_v35, %v692_v23 }
 0x1e2   : > { %1118 = vst [vmem:[#allocation2 + $0x10] sm:$0xff] %v1109_v34  ;;  %v1111_v38 = vadd.f32 %v1110_v36, %v700_v24  ;;  %v1069_v39 = vpop.f32.mrf.mxu0 }
 0x1e3   : > { %v1112_v40 = vpop.f32.mrf.mxu1  ;;  %1119 = vst [vmem:[#allocation2 + $0x8] sm:$0xff] %v1068_v37  ;;  %v1070_v41 = vadd.f32 %v1069_v39, %v696_v25 }
 0x1e4   : > { %1121 = vst [vmem:[#allocation2 + $0x28] sm:$0xff] %v1111_v38  ;;  %v1113_v42 = vadd.f32 %v1112_v40, %v704_v26 }
 0x1e5   : > { %1120 = vst [vmem:[#allocation2 + $0x20] sm:$0xff] %v1070_v41 }
 0x1e6   : > { %1122 = vst [vmem:[#allocation2 + $0x38] sm:$0xff] %v1113_v42 }
 0x21c   : > { %v1573_v48 = vpop.f32.mrf.mxu0 }
 0x21d   : > { %v1624_v49 = vpop.f32.mrf.mxu1  ;;  %v1574_v50 = vadd.f32 %v1573_v48, %v1202_v44 }
 0x21e   : > { %v1625_v51 = vadd.f32 %v1624_v49, %v1210_v45  ;;  %v1575_v52 = vpop.f32.mrf.mxu0 }
 0x21f   : > { %v1626_v53 = vpop.f32.mrf.mxu1  ;;  %1641 = vst [vmem:[#allocation3] sm:$0xff] %v1574_v50  ;;  %v1576_v54 = vadd.f32 %v1575_v52, %v1206_v46 }
 0x220   : > { %1643 = vst [vmem:[#allocation3 + $0x50] sm:$0xff] %v1625_v51  ;;  %v1627_v55 = vadd.f32 %v1626_v53, %v1214_v47  ;;  %v1577_v56 = vpop.f32.mrf.mxu0 }
 0x221   : > { %v1628_v57 = vpop.f32.mrf.mxu1  ;;  %1642 = vst [vmem:[#allocation3 + $0x18] sm:$0xff] %v1576_v54  ;;  %v1578_v58 = vadd.f32 %v1577_v56, %v1202_v44 }
 0x222   : > { %1644 = vst [vmem:[#allocation3 + $0x58] sm:$0xff] %v1627_v55  ;;  %v1629_v59 = vadd.f32 %v1628_v57, %v1210_v45  ;;  %v1579_v60 = vpop.f32.mrf.mxu0 }
 0x223   : > { %v1630_v61 = vpop.f32.mrf.mxu1  ;;  %1645 = vst [vmem:[#allocation3 + $0x20] sm:$0xff] %v1578_v58  ;;  %v1580_v62 = vadd.f32 %v1579_v60, %v1206_v46 }
 0x224   : > { %1647 = vst [vmem:[#allocation3 + $0x48] sm:$0xff] %v1629_v59  ;;  %v1631_v63 = vadd.f32 %v1630_v61, %v1214_v47  ;;  %v1583_v0 = vpop.f32.mrf.mxu0 }
 0x225   : > { %v1634_v1 = vpop.f32.mrf.mxu1  ;;  %1646 = vst [vmem:[#allocation3 + $0x10] sm:$0xff] %v1580_v62  ;;  %v1584_v2 = vadd.f32 %v1583_v0, %v1202_v44 }
 0x226   : > { %1648 = vst [vmem:[#allocation3 + $0x8] sm:$0xff] %v1631_v63  ;;  %v1635_v3 = vadd.f32 %v1634_v1, %v1210_v45  ;;  %v1585_v4 = vpop.f32.mrf.mxu0 }
 0x227   : > { %v1636_v5 = vpop.f32.mrf.mxu1  ;;  %1649 = vst [vmem:[#allocation3 + $0x40] sm:$0xff] %v1584_v2  ;;  %v1586_v6 = vadd.f32 %v1585_v4, %v1206_v46 }
 0x228   : > { %1651 = vst [vmem:[#allocation3 + $0x38] sm:$0xff] %v1635_v3  ;;  %v1637_v7 = vadd.f32 %v1636_v5, %v1214_v47  ;;  %v1587_v8 = vpop.f32.mrf.mxu0 }
 0x229   : > { %v1638_v9 = vpop.f32.mrf.mxu1  ;;  %1650 = vst [vmem:[#allocation3 + $0x28] sm:$0xff] %v1586_v6 }
 0x22a   : > { %1652 = vst [vmem:[#allocation3 + $0x30] sm:$0xff] %v1637_v7  ;;  %v1588_v10 = vpop.f32.mrf.mxu0 }
 0x22b   : > { %v1639_v11 = vpop.f32.mrf.mxu1 }
 0x22c PF: > { %v5231_v12 = vld [vmem:[#allocation10 + $0x154] ss:$24 sps:$4 sm:$0xff]   ;;  %v5233_v13 = vld [vmem:[#allocation10 + $0x150] ss:$24 sps:$4 sm:$0xff]   ;;  %v6032_v14 = vmov 0.0   ;;  %vm6033_vm0 = vmmov 0   ;;  %v1695_v52 = vlaneseq }
 0x22d   : > { %4799 = vmatprep.subr.bf16.mxu1 %v6032_v14  ;;  %1865 = vmatprep.subr.bf16.mxu0 %v5231_v12  ;;  %v5234_v15 = vld [vmem:[#allocation10 + $0x124] ss:$24 sps:$4 sm:$0xff]   ;;  %v5236_v16 = vld [vmem:[#allocation10 + $0x120] ss:$24 sps:$4 sm:$0xff]   ;;  %v5237_v17 = vld [vmem:[#allocation10 + $0xf4] ss:$24 sps:$4 sm:$0xff]  }
 0x22e   : > { %1866 = vmatpush1.bf16.msra.mxu0 %v5233_v13  ;;  %v5239_v18 = vld [vmem:[#allocation10 + $0xf0] ss:$24 sps:$4 sm:$0xff]   ;;  %v5240_v19 = vld [vmem:[#allocation10 + $0xc4] ss:$24 sps:$4 sm:$0xff]   ;;  %v5242_v20 = vld [vmem:[#allocation10 + $0xc0] ss:$24 sps:$4 sm:$0xff]   ;;  %4801 = vmatprep.mubr.msk.bf16.mxu1 %vm6033_vm0, %v6032_v14 }
 0x22f   : > { %1867 = vmatprep.subr.bf16.mxu0 %v5234_v15  ;;  %v5243_v21 = vld [vmem:[#allocation10 + $0x94] ss:$24 sps:$4 sm:$0xff]   ;;  %v5245_v22 = vld [vmem:[#allocation10 + $0x90] ss:$24 sps:$4 sm:$0xff]   ;;  %v5246_v23 = vld [vmem:[#allocation10 + $0x64] ss:$24 sps:$4 sm:$0xff]  }
 0x230   : > { %v5248_v24 = vld [vmem:[#allocation10 + $0x60] ss:$24 sps:$4 sm:$0xff]   ;;  %v5249_v25 = vld [vmem:[#allocation10 + $0x34] ss:$24 sps:$4 sm:$0xff]   ;;  %v5251_v26 = vld [vmem:[#allocation10 + $0x30] ss:$24 sps:$4 sm:$0xff]  }
 0x231   : > { %v6409_v27 = vld [vmem:[%s6360_s8 + $0x8] sm:$0xff]  ;;  %v1906_v30 = vld [vmem:[#allocation2 + $0x30] sm:$0xff]  ;;  %v6421_v53 = vshrl.u32 %v1695_v52, 7  ;;  %s6714_s18 = sld [smem:[#allocation39_spill]]  ;;  %v1907_v58 = vld [vmem:[#allocation2] sm:$0xff]  ;;  %vm2000_vm1 = vcmask 130048  }
 0x232   : > { %1868 = vmatpush1.bf16.msra.mxu0 %v5236_v16  ;;  %v5252_v28 = vld [vmem:[#allocation10 + $0x4] ss:$24 sps:$4 sm:$0xff]   ;;  %v1660_v29 = vpack.c.bf16 %v6409_v27, %v6409_v27  ;;  %v1910_v31 = vld [vmem:[#allocation2 + $0x8] sm:$0xff]  ;;  %v5254_v33 = vld [vmem:[#allocation10] ss:$24 sps:$4 sm:$0xff]   ;;  %vm2739_vm2 = vcmask 195584  }
 0x233   : > { %1869 = vmatprep.subr.bf16.mxu0 %v5237_v17  ;;  %v1916_v32 = vpack.c.bf16 %v1910_v31, %v1906_v30  ;;  %v5255_v34 = vld [vmem:[#allocation10 + $0x2d4] ss:$24 sps:$4 sm:$0xff]   ;;  %v5257_v35 = vld [vmem:[#allocation10 + $0x2d0] ss:$24 sps:$4 sm:$0xff]   ;;  %v5258_v36 = vld [vmem:[#allocation10 + $0x2a4] ss:$24 sps:$4 sm:$0xff]  }
 0x234   : > { %1897 = vmatprep.mubr.bf16.mxu0 %v1660_v29  ;;  %v5260_v37 = vld [vmem:[#allocation10 + $0x2a0] ss:$24 sps:$4 sm:$0xff]   ;;  %v5261_v38 = vld [vmem:[#allocation10 + $0x274] ss:$24 sps:$4 sm:$0xff]   ;;  %v5263_v39 = vld [vmem:[#allocation10 + $0x270] ss:$24 sps:$4 sm:$0xff]  }
 0x235   : > { %4800 = vmatpush3.bf16.xpose.msra.mxu1 %v1916_v32  ;;  %v5264_v40 = vld [vmem:[#allocation10 + $0x244] ss:$24 sps:$4 sm:$0xff]   ;;  %v5266_v41 = vld [vmem:[#allocation10 + $0x240] ss:$24 sps:$4 sm:$0xff]   ;;  %v5267_v42 = vld [vmem:[#allocation10 + $0x214] ss:$24 sps:$4 sm:$0xff]  }
 0x236   : > { %1870 = vmatpush1.bf16.msra.mxu0 %v5239_v18  ;;  %4805 = vmatprep.subr.bf16.mxu1 %v6032_v14  ;;  %v5269_v43 = vld [vmem:[#allocation10 + $0x210] ss:$24 sps:$4 sm:$0xff]   ;;  %v5270_v44 = vld [vmem:[#allocation10 + $0x1e4] ss:$24 sps:$4 sm:$0xff]   ;;  %v5272_v45 = vld [vmem:[#allocation10 + $0x1e0] ss:$24 sps:$4 sm:$0xff]  }
 0x237   : > { %1871 = vmatprep.subr.bf16.mxu0 %v5240_v19  ;;  %v5273_v46 = vld [vmem:[#allocation10 + $0x1b4] ss:$24 sps:$4 sm:$0xff]   ;;  %v5275_v47 = vld [vmem:[#allocation10 + $0x1b0] ss:$24 sps:$4 sm:$0xff]   ;;  %v5276_v48 = vld [vmem:[#allocation10 + $0x184] ss:$24 sps:$4 sm:$0xff]  }
 0x238   : > { %v5278_v49 = vld [vmem:[#allocation10 + $0x180] ss:$24 sps:$4 sm:$0xff]   ;;  %v6424_v54 = vsub.s32 0, %v6421_v53  ;;  %v6431_v57 = vsub.s32 1, %v6421_v53  ;;  %v1912_v29 = vld [vmem:[#allocation2 + $0x28] sm:$0xff]  ;;  %vm2767_vm3 = vcmask 1043456  }
 0x239   : > { %v6415_v50 = vld [vmem:[%s6360_s8] sm:$0xff]  ;;  %s6715_s5 = sld [smem:[#allocation44_spill]]  ;;  %s4168_s2 = sshll.u32 %s6388_s15, 4  ;;  %s4169_s2 = int_to_ptr.vmem [resolvable:$true] %s4168_s2 }
 0x23a   : > { %1872 = vmatpush1.bf16.msra.mxu0 %v5242_v20  ;;  %v1659_v51 = vpack.c.bf16 %v6415_v50, %v6415_v50  ;;  %v1693_v55 = vld [vmem:[%s6714_s18] sm:$0x3]  ;;  %v5291_v52 = vld [vmem:[#allocation13 + $0x30] ss:$8 sps:$4 sm:$0xff]   ;;  %s6716_s8 = sld [smem:[#allocation28_spill]]  ;;  %s4152_s19 = scalar_lea.sflag [#allocation6], %s6356_s3 }
 0x23b   : > { %1873 = vmatprep.subr.bf16.mxu0 %v5243_v21  ;;  %v1698_v56 = vrot.slane %v1693_v55, %v6424_v54  ;;  %v1911_v59 = vld [vmem:[#allocation2 + $0x20] sm:$0xff]  ;;  %v1702_v1 = vrot.slane %v1693_v55, %v6431_v57  ;;  %s6717_s10 = sld [smem:[#allocation29_spill]]  ;;  %s5879_s12 = scalar_lea.vmem %s4169_s2, 256 }
 0x23c   : > { %v1917_v63 = vpack.c.bf16 %v1911_v59, %v1907_v58  ;;  %v5296_v55 = vld [vmem:[#allocation13 + $0x24] ss:$8 sps:$4 sm:$0xff]   ;;  %v5299_v58 = vld [vmem:[#allocation13 + $0x14] ss:$8 sps:$4 sm:$0xff]   ;;  %v5297_v59 = vld [vmem:[#allocation13 + $0x10] ss:$8 sps:$4 sm:$0xff]   ;;  %p5880_p10 = scmp.ne.s32.totalorder %s4169_s2, %s5879_s12 }
 0x23d   : > { %s6719_s9 = sld [smem:[#allocation47_spill]]  ;;  %s6034_s28 = smov [#allocation19]  }
 0x23e   : > { %1874 = vmatpush1.bf16.msra.mxu0 %v5245_v22  ;;  %p5881_p9 = pnand %p5880_p10, %p6303_p2  ;;  %s5883_s27 = sshll.u32 %s6034_s28, 4  ;;  %s5884_s27 = int_to_ptr.vmem [resolvable:$false] %s5883_s27 }
 0x23f   : > { %1875 = vmatprep.subr.bf16.mxu0 %v5246_v23  ;;  %s5885_s26 = scalar_lea.vmem %s5884_s27, 512  ;;  %p5886_p6 = scmp.lt.s32.totalorder %s4169_s2, %s5884_s27 }
 0x240   : > { %s4773_s29 = sshll.u32 %s6716_s8, 1  ;;  %p5882_p8 = pneg %p5881_p9 }
 0x241   : > { %s4774_s21 = sshll.u32 %s6717_s10, 2  ;;  %p5887_p11 = scmp.lt.s32.totalorder %s5885_s26, %s5879_s12 }
 0x242   : > { %1876 = vmatpush1.bf16.msra.mxu0 %v5248_v24  ;;  %s4164_s11 = sadd.s32 %s4774_s21, %s4773_s29 }
 0x243   : > { %1877 = vmatprep.subr.bf16.mxu0 %v5249_v25  ;;  %s4775_s1 = sshll.u32 %s4164_s11, 7  ;;  %p5888_p3 = por %p5887_p11, %p5886_p6 }
 0x244   : > { %s6568_s4 = scalar_lea.hbm %s6719_s9, %s4775_s1 }
 0x245   : > { %p5889_p13 = pnand %p5888_p3, %p5882_p8 }
 0x246   : > { %1878 = vmatpush1.bf16.msra.mxu0 %v5251_v26 }
 0x247   : > { %1879 = vmatprep.subr.bf16.mxu0 %v5252_v28  ;;  %v1908_v28 = vld [vmem:[#allocation2 + $0x18] sm:$0xff] }
 0x248   : > { %v1918_v30 = vpack.c.bf16 %v1912_v29, %v1908_v28 }
 0x24a   : > { %1880 = vmatpush1.bf16.msra.mxu0 %v5254_v33  ;;  %v1909_v33 = vld [vmem:[#allocation2 + $0x10] sm:$0xff] }
 0x24b   : > { %1881 = vmatprep.subr.bf16.mxu0 %v5255_v34  ;;  %v1913_v34 = vld [vmem:[#allocation2 + $0x38] sm:$0xff] }
 0x24e   : > { %1882 = vmatpush2.bf16.msra.mxu0 %v5257_v35 }
 0x24f   : > { %1883 = vmatprep.subr.bf16.mxu0 %v5258_v36 }
 0x252   : > { %1884 = vmatpush2.bf16.msra.mxu0 %v5260_v37  ;;  %v1919_v37 = vpack.c.bf16 %v1913_v34, %v1909_v33 }
 0x253   : > { %1885 = vmatprep.subr.bf16.mxu0 %v5261_v38 }
 0x256   : > { %1886 = vmatpush2.bf16.msra.mxu0 %v5263_v39  ;;  %v5281_v39 = vld [vmem:[#allocation13 + $0x74] ss:$8 sps:$4 sm:$0xff]  }
 0x257   : > { %1887 = vmatprep.subr.bf16.mxu0 %v5264_v40 }
 0x25a   : > { %1888 = vmatpush2.bf16.msra.mxu0 %v5266_v41 }
 0x25b   : > { %1889 = vmatprep.subr.bf16.mxu0 %v5267_v42  ;;  %v5279_v42 = vld [vmem:[#allocation13 + $0x70] ss:$8 sps:$4 sm:$0xff]  }
 0x25e   : > { %1890 = vmatpush2.bf16.msra.mxu0 %v5269_v43 }
 0x25f   : > { %1891 = vmatprep.subr.bf16.mxu0 %v5270_v44  ;;  %v5284_v44 = vld [vmem:[#allocation13 + $0x64] ss:$8 sps:$4 sm:$0xff]  }
 0x262   : > { %1892 = vmatpush2.bf16.msra.mxu0 %v5272_v45  ;;  %v5282_v45 = vld [vmem:[#allocation13 + $0x60] ss:$8 sps:$4 sm:$0xff]  }
 0x263   : > { %1893 = vmatprep.subr.bf16.mxu0 %v5273_v46  ;;  %v5287_v46 = vld [vmem:[#allocation13 + $0x54] ss:$8 sps:$4 sm:$0xff]  }
 0x266   : > { %1894 = vmatpush2.bf16.msra.mxu0 %v5275_v47  ;;  %v5285_v47 = vld [vmem:[#allocation13 + $0x50] ss:$8 sps:$4 sm:$0xff]  }
 0x267   : > { %1895 = vmatprep.subr.bf16.mxu0 %v5276_v48  ;;  %v5290_v48 = vld [vmem:[#allocation13 + $0x44] ss:$8 sps:$4 sm:$0xff]  }
 0x26a   : > { %1896 = vmatpush2.bf16.msra.mxu0 %v5278_v49  ;;  %v5288_v49 = vld [vmem:[#allocation13 + $0x40] ss:$8 sps:$4 sm:$0xff]  }
 0x26d   : > { %1898 = vmatmul.mubr.bf16.vlgmr.msra.gmra.mxu0 %v1659_v51  ;;  %v5293_v51 = vld [vmem:[#allocation13 + $0x34] ss:$8 sps:$4 sm:$0xff]  }
 0x32d   : > { %v1899_v60 = vpop.f32.mrf.mxu0 }
 0x32e   : > { %v1900_v61 = vadd.f32 %v1899_v60, %v1698_v56  ;;  %v5294_v56 = vld [vmem:[#allocation13 + $0x20] ss:$8 sps:$4 sm:$0xff]   ;;  %v5302_v60 = vld [vmem:[#allocation13 + $0x4] ss:$8 sps:$4 sm:$0xff]  }
 0x32f   : > { %v1901_v62 = vpop.f32.mrf.mxu0 }
 0x330   : > { %v1914_v0 = vpack.c.bf16 %v1900_v61, %v1900_v61  ;;  %v1902_v4 = vadd.f32 %v1901_v62, %v1702_v1  ;;  %v5300_v61 = vld [vmem:[#allocation13] ss:$8 sps:$4 sm:$0xff]   ;;  %v5305_v62 = vld [vmem:[#allocation13 + $0xf4] ss:$8 sps:$4 sm:$0xff]  }
 0x331   : > { %v1903_v2 = vpop.f32.mrf.mxu0  ;;  %v5306_v1 = vld [vmem:[#allocation13 + $0xe0] ss:$8 sps:$4 sm:$0xff]  }
 0x332   : > { %4802 = vmatmul.mubr.bf16.vlgmr.msra.gmra.mxu1 %v1914_v0  ;;  %v1915_v5 = vpack.c.bf16 %v1902_v4, %v1902_v4  ;;  %v5308_v0 = vld [vmem:[#allocation13 + $0xe4] ss:$8 sps:$4 sm:$0xff]   ;;  %v5311_v2 = vld [vmem:[#allocation13 + $0xd4] ss:$8 sps:$4 sm:$0xff]  }
 0x333   : > { %4806 = vmatpush3.bf16.xpose.msra.mxu1 %v1917_v63  ;;  %v1904_v3 = vpop.f32.mrf.mxu0  ;;  %4807 = vmatprep.mubr.msk.bf16.mxu1 %vm6033_vm0, %v6032_v14  ;;  %v5303_v63 = vld [vmem:[#allocation13 + $0xf0] ss:$8 sps:$4 sm:$0xff]   ;;  %v5314_v4 = vld [vmem:[#allocation13 + $0xc4] ss:$8 sps:$4 sm:$0xff]  }
 0x334   : > { %4811 = vmatprep.subr.bf16.mxu1 %v6032_v14  ;;  %v5309_v3 = vld [vmem:[#allocation13 + $0xd0] ss:$8 sps:$4 sm:$0xff]  }
 0x33a   : > { %4808 = vmatmul.mubr.bf16.vlgmr.msra.gmra.mxu1 %v1915_v5  ;;  %v5312_v5 = vld [vmem:[#allocation13 + $0xc0] ss:$8 sps:$4 sm:$0xff]  }
 0x33b   : > { %4813 = vmatprep.mubr.msk.bf16.mxu1 %vm6033_vm0, %v6032_v14  ;;  %4812 = vmatpush3.bf16.msra.mxu1 %v1918_v30 }
 0x33c   : > { %4817 = vmatprep.subr.bf16.mxu1 %v6032_v14 }
 0x3f2   : > { %v1954_v6 = vpop.f32.mrf.mxu1 }
 0x3f3   : > { %v2001_v7 = vsel %vm2000_vm1, %v1954_v6, -inf }
 0x3f4   : > { %2002 = vmax.xlane.f32.xlu0 %v2001_v7  ;;  %v4803_v8 = vpop.f32.mrf.mxu1  ;;  %v5315_v7 = vld [vmem:[#allocation13 + $0xb0] ss:$8 sps:$4 sm:$0xff]  }
 0x3f5   : > { %v5320_v8 = vld [vmem:[#allocation13 + $0xa4] ss:$8 sps:$4 sm:$0xff]  }
 0x3f6   : > { %v1957_v9 = vpop.f32.mrf.mxu1 }
 0x3f7   : > { %v5318_v9 = vld [vmem:[#allocation13 + $0xa0] ss:$8 sps:$4 sm:$0xff]  }
 0x3f8   : > { %v4804_v10 = vpop.f32.mrf.mxu1 }
 0x3f9   : > { %v5323_v10 = vld [vmem:[#allocation13 + $0x94] ss:$8 sps:$4 sm:$0xff]  }
 0x3fa   : > { %v1994_v11 = vpop.f32.mrf.mxu1 }
 0x3fb   : > { %v2004_v12 = vsel %vm2000_vm1, %v1994_v11, -inf }
 0x3fc   : > { %2005 = vmax.xlane.f32.xlu0 %v2004_v12  ;;  %v4809_v13 = vpop.f32.mrf.mxu1  ;;  %v5326_v12 = vld [vmem:[#allocation13 + $0x84] ss:$8 sps:$4 sm:$0xff]  }
 0x3fd   : > { %v5324_v13 = vld [vmem:[#allocation13 + $0x80] ss:$8 sps:$4 sm:$0xff]  }
 0x3fe   : > { %v1997_v15 = vpop.f32.mrf.mxu1 }
 0x400   : > { %v4810_v16 = vpop.f32.mrf.mxu1 }
 0x47d   : > { %v2003_v17 = vpop.xlane.xlu0 %2002 }
 0x47e   : > { %v2007_v18 = vsub.f32 %v1954_v6, %v2003_v17  ;;  %v5317_v6 = vld [vmem:[#allocation13 + $0xb4] ss:$8 sps:$4 sm:$0xff]  }
 0x480   : > { %v2009_v19 = vmul.f32 1.442695, %v2007_v18 }
 0x482   : > { %5615 = vpow2.f32 %v2009_v19 }
 0x485   : > { %v2006_v20 = vpop.xlane.xlu0 %2005 }
 0x486   : > { %v2008_v21 = vsub.f32 %v1994_v11, %v2006_v20  ;;  %v5321_v11 = vld [vmem:[#allocation13 + $0x90] ss:$8 sps:$4 sm:$0xff]  }
 0x488   : > { %v2011_v22 = vmul.f32 1.442695, %v2008_v21 }
 0x48a   : > { %5617 = vpow2.f32 %v2011_v22 }
 0x48f   : > { %v5616_v23 = vpop.eup %5615 }
 0x490   : > { %v2013_v24 = vsel %vm2000_vm1, %v5616_v23, 0.0 }
 0x491   : > { %2014 = vadd.xlane.f32.xlu1 %v2013_v24 }
 0x497   : > { %v5618_v25 = vpop.eup %5617 }
 0x498   : > { %v2016_v26 = vsel %vm2000_vm1, %v5618_v25, 0.0 }
 0x499   : > { %2017 = vadd.xlane.f32.xlu1 %v2016_v26  ;;  %v6453_v26 = vld [vmem:[#allocation18 + $0x8] sm:$0xff] }
 0x49a   : > { %v2152_v29 = vrot.slane %v6453_v26, %v6424_v54 }
 0x51a   : > { %v2015_v31 = vpop.xlane.xlu1 %2014 }
 0x51b   : > { %5619 = vrcp.f32 %v2015_v31 }
 0x522   : > { %v2018_v32 = vpop.xlane.xlu1 %2017 }
 0x523   : > { %5621 = vrcp.f32 %v2018_v32 }
 0x528   : > { %v5620_v35 = vpop.eup %5619 }
 0x529   : > { %v2021_v36 = vmul.f32 %v5620_v35, %v5616_v23 }
 0x52b   : > { %v2023_v38 = vpack.c.bf16 %v2021_v36, %v2021_v36 }
 0x52d   : > { %4814 = vmatmul.mubr.msk.bf16.vlgmr.msra.gmra.mxu1 %vm2000_vm1, %v2023_v38 }
 0x52e   : > { %4818 = vmatpush3.bf16.msra.mxu1 %v1919_v37  ;;  %4819 = vmatprep.mubr.msk.bf16.mxu1 %vm6033_vm0, %v6032_v14 }
 0x52f   : > { %2313 = vmatprep.subr.bf16.mxu1 %v5281_v39  ;;  %v5327_v39 = vld [vmem:[#allocation13 + $0x170] ss:$8 sps:$4 sm:$0xff]  }
 0x530   : > { %v5622_v40 = vpop.eup %5621 }
 0x531   : > { %v2022_v41 = vmul.f32 %v5622_v40, %v5618_v25  ;;  %v6451_v25 = vld [vmem:[#allocation18] sm:$0xff]  ;;  %v5329_v40 = vld [vmem:[#allocation13 + $0x174] ss:$8 sps:$4 sm:$0xff]  }
 0x532   : > { %v2148_v28 = vrot.slane %v6451_v25, %v6424_v54  ;;  %2596 = vmatprep.subr.bf16.mxu0 %v5329_v40 }
 0x533   : > { %v2024_v43 = vpack.c.bf16 %v2022_v41, %v2022_v41  ;;  %v5332_v41 = vld [vmem:[#allocation13 + $0x164] ss:$8 sps:$4 sm:$0xff]   ;;  %2597 = vmatpush1.bf16.msra.mxu0 %v5327_v39 }
 0x534   : > { %2598 = vmatprep.subr.bf16.mxu0 %v5332_v41 }
 0x535   : > { %4820 = vmatmul.mubr.msk.bf16.vlgmr.msra.gmra.mxu1 %vm2000_vm1, %v2024_v43  ;;  %v5335_v43 = vld [vmem:[#allocation13 + $0x154] ss:$8 sps:$4 sm:$0xff]  }
 0x536   : > { %2314 = vmatpush1.bf16.msra.mxu1 %v5279_v42  ;;  %v5330_v42 = vld [vmem:[#allocation13 + $0x160] ss:$8 sps:$4 sm:$0xff]  }
 0x537   : > { %2315 = vmatprep.subr.bf16.mxu1 %v5284_v44  ;;  %2599 = vmatpush1.bf16.msra.mxu0 %v5330_v42  ;;  %v5333_v44 = vld [vmem:[#allocation13 + $0x150] ss:$8 sps:$4 sm:$0xff]  }
 0x538   : > { %2600 = vmatprep.subr.bf16.mxu0 %v5335_v43  ;;  %v2431_v43 = vrot.slane %v6451_v25, %v6431_v57 }
 0x53a   : > { %2316 = vmatpush1.bf16.msra.mxu1 %v5282_v45  ;;  %v5338_v45 = vld [vmem:[#allocation13 + $0x144] ss:$8 sps:$4 sm:$0xff]  }
 0x53b   : > { %2317 = vmatprep.subr.bf16.mxu1 %v5287_v46  ;;  %2601 = vmatpush1.bf16.msra.mxu0 %v5333_v44  ;;  %v5336_v46 = vld [vmem:[#allocation13 + $0x140] ss:$8 sps:$4 sm:$0xff]  }
 0x53c   : > { %2602 = vmatprep.subr.bf16.mxu0 %v5338_v45  ;;  %v2646_v44 = vld [vmem:[#allocation3 + $0x28] sm:$0xff] }
 0x53e   : > { %2318 = vmatpush1.bf16.msra.mxu1 %v5285_v47  ;;  %v5344_v47 = vld [vmem:[#allocation13 + $0x124] ss:$8 sps:$4 sm:$0xff]  }
 0x53f   : > { %2319 = vmatprep.subr.bf16.mxu1 %v5290_v48  ;;  %2603 = vmatpush1.bf16.msra.mxu0 %v5336_v46  ;;  %v5342_v48 = vld [vmem:[#allocation13 + $0x120] ss:$8 sps:$4 sm:$0xff]  }
 0x542   : > { %2320 = vmatpush1.bf16.msra.mxu1 %v5288_v49  ;;  %v5347_v49 = vld [vmem:[#allocation13 + $0x114] ss:$8 sps:$4 sm:$0xff]  }
 0x543   : > { %2321 = vmatprep.subr.bf16.mxu1 %v5293_v51  ;;  %v5345_v51 = vld [vmem:[#allocation13 + $0x110] ss:$8 sps:$4 sm:$0xff]  }
 0x546   : > { %2322 = vmatpush1.bf16.msra.mxu1 %v5291_v52  ;;  %v5350_v52 = vld [vmem:[#allocation13 + $0x104] ss:$8 sps:$4 sm:$0xff]  }
 0x547   : > { %2323 = vmatprep.subr.bf16.mxu1 %v5296_v55  ;;  %v5348_v55 = vld [vmem:[#allocation13 + $0x100] ss:$8 sps:$4 sm:$0xff]  }
 0x54a   : > { %2324 = vmatpush1.bf16.msra.mxu1 %v5294_v56  ;;  %v5353_v56 = vld [vmem:[#allocation13 + $0x1f4] ss:$8 sps:$4 sm:$0xff]  }
 0x54b   : > { %2325 = vmatprep.subr.bf16.mxu1 %v5299_v58  ;;  %v5351_v58 = vld [vmem:[#allocation13 + $0x1f0] ss:$8 sps:$4 sm:$0xff]  }
 0x54e   : > { %2326 = vmatpush1.bf16.msra.mxu1 %v5297_v59  ;;  %v5356_v59 = vld [vmem:[#allocation13 + $0x1e4] ss:$8 sps:$4 sm:$0xff]  }
 0x54f   : > { %2327 = vmatprep.subr.bf16.mxu1 %v5302_v60  ;;  %v5354_v60 = vld [vmem:[#allocation13 + $0x1e0] ss:$8 sps:$4 sm:$0xff]  }
 0x552   : > { %2328 = vmatpush1.bf16.msra.mxu1 %v5300_v61 }
 0x553   : > { %2329 = vmatprep.subr.bf16.mxu1 %v5305_v62 }
 0x556   : > { %2330 = vmatpush2.bf16.msra.mxu1 %v5303_v63 }
 0x557   : > { %2331 = vmatprep.subr.bf16.mxu1 %v5308_v0 }
 0x55a   : > { %2332 = vmatpush2.bf16.msra.mxu1 %v5306_v1 }
 0x55b   : > { %2333 = vmatprep.subr.bf16.mxu1 %v5311_v2 }
 0x55e   : > { %2334 = vmatpush2.bf16.msra.mxu1 %v5309_v3 }
 0x55f   : > { %2335 = vmatprep.subr.bf16.mxu1 %v5314_v4  ;;  %v5359_v4 = vld [vmem:[#allocation13 + $0x1d4] ss:$8 sps:$4 sm:$0xff]  }
 0x562   : > { %2336 = vmatpush2.bf16.msra.mxu1 %v5312_v5  ;;  %v5357_v5 = vld [vmem:[#allocation13 + $0x1d0] ss:$8 sps:$4 sm:$0xff]  }
 0x563   : > { %2337 = vmatprep.subr.bf16.mxu1 %v5317_v6  ;;  %v5360_v6 = vld [vmem:[#allocation13 + $0x1c0] ss:$8 sps:$4 sm:$0xff]  }
 0x566   : > { %2338 = vmatpush2.bf16.msra.mxu1 %v5315_v7  ;;  %v5362_v7 = vld [vmem:[#allocation13 + $0x1c4] ss:$8 sps:$4 sm:$0xff]  }
 0x567   : > { %2339 = vmatprep.subr.bf16.mxu1 %v5320_v8  ;;  %v5365_v8 = vld [vmem:[#allocation13 + $0x1b4] ss:$8 sps:$4 sm:$0xff]  }
 0x56a   : > { %2340 = vmatpush2.bf16.msra.mxu1 %v5318_v9  ;;  %v5363_v9 = vld [vmem:[#allocation13 + $0x1b0] ss:$8 sps:$4 sm:$0xff]  }
 0x56b   : > { %2341 = vmatprep.subr.bf16.mxu1 %v5323_v10  ;;  %v5368_v10 = vld [vmem:[#allocation13 + $0x1a4] ss:$8 sps:$4 sm:$0xff]  }
 0x56e   : > { %2342 = vmatpush2.bf16.msra.mxu1 %v5321_v11  ;;  %v5366_v11 = vld [vmem:[#allocation13 + $0x1a0] ss:$8 sps:$4 sm:$0xff]  }
 0x56f   : > { %2343 = vmatprep.subr.bf16.mxu1 %v5326_v12  ;;  %v5371_v12 = vld [vmem:[#allocation13 + $0x194] ss:$8 sps:$4 sm:$0xff]  }
 0x572   : > { %2344 = vmatpush2.bf16.msra.mxu1 %v5324_v13  ;;  %v5369_v13 = vld [vmem:[#allocation13 + $0x190] ss:$8 sps:$4 sm:$0xff]  }
 0x573   : > { %4823 = vmatprep.subr.bf16.mxu1 %v6032_v14 }
 0x5ed   : > { %v2062_v15 = vpop.f32.mrf.mxu1 }
 0x5ee   : > { %v2111_v21 = vpack.c.bf16 %v2062_v15, %v2062_v15  ;;  %v5374_v15 = vld [vmem:[#allocation13 + $0x184] ss:$8 sps:$4 sm:$0xff]  }
 0x5ef   : > { %v4815_v16 = vpop.f32.mrf.mxu1 }
 0x5f0   : > { %v5372_v16 = vld [vmem:[#allocation13 + $0x180] ss:$8 sps:$4 sm:$0xff]  }
 0x5f1   : > { %v2065_v17 = vpop.f32.mrf.mxu1 }
 0x5f2   : > { %v2645_v17 = vld [vmem:[#allocation3 + $0x40] sm:$0xff] }
 0x5f3   : > { %v4816_v18 = vpop.f32.mrf.mxu1 }
 0x5f4   : > { %v2653_v18 = vpack.c.bf16 %v2645_v17, %v2645_v17 }
 0x5f5   : > { %v2105_v19 = vpop.f32.mrf.mxu1 }
 0x5f6   : > { %v2112_v20 = vpack.c.bf16 %v2105_v19, %v2105_v19  ;;  %v2637_v19 = vld [vmem:[#allocation3] sm:$0xff] }
 0x5f7   : > { %v4821_v22 = vpop.f32.mrf.mxu1 }
 0x5f8   : > { %2345 = vmatprep.mubr.bf16.mxu1 %v2112_v20  ;;  %v2641_v20 = vld [vmem:[#allocation3 + $0x20] sm:$0xff] }
 0x5f9   : > { %v2108_v23 = vpop.f32.mrf.mxu1  ;;  %2346 = vmatmul.mubr.bf16.vlgmr.msra.gmra.mxu1 %v2111_v21  ;;  %v2651_v21 = vpack.c.bf16 %v2641_v20, %v2637_v19  ;;  %v2639_v20 = vld [vmem:[#allocation3 + $0x50] sm:$0xff] }
 0x5fa   : > { %4827 = vmatprep.mubr.msk.bf16.mxu1 %vm6033_vm0, %v6032_v14  ;;  %4824 = vmatpush3.bf16.xpose.msra.mxu1 %v2653_v18 }
 0x5fb   : > { %v4822_v24 = vpop.f32.mrf.mxu1  ;;  %4825 = vmatprep.subr.bf16.mxu1 %v6032_v14 }
 0x602   : > { %4826 = vmatpush3.bf16.xpose.msra.mxu1 %v2651_v21  ;;  %v2643_v21 = vld [vmem:[#allocation3 + $0x48] sm:$0xff] }
 0x603   : > { %4831 = vmatprep.subr.bf16.mxu1 %v6032_v14 }
 0x6b9   : > { %v2347_v30 = vpop.f32.mrf.mxu1 }
 0x6ba   : > { %v2348_v31 = vadd.f32 %v2347_v30, %v2148_v28  ;;  %v2375_v28 = vsub.s32 4, %v6421_v53 }
 0x6bb   : > { %v2349_v32 = vpop.f32.mrf.mxu1 }
 0x6bc   : > { %v2350_v33 = vadd.f32 %v2349_v32, %v2152_v29  ;;  %v2354_v35 = vadd.f32 %v2348_v31, %v6415_v50  ;;  %v5341_v50 = vld [vmem:[#allocation13 + $0x134] ss:$8 sps:$4 sm:$0xff]   ;;  %v2385_v29 = vsub.s32 5, %v6421_v53  ;;  %v2380_v30 = vrot.slane %v6453_v26, %v2375_v28 }
 0x6bd   : > { %v2351_v34 = vpop.f32.mrf.mxu1  ;;  %2604 = vmatprep.subr.bf16.mxu0 %v5341_v50  ;;  %v2376_v31 = vrot.slane %v6451_v25, %v2375_v28  ;;  %v5380_v28 = vld [vmem:[#allocation13 + $0x264] ss:$8 sps:$4 sm:$0xff]  }
 0x6be   : > { %v2355_v36 = vadd.f32 %v2350_v33, %v6409_v27  ;;  %v5339_v27 = vld [vmem:[#allocation13 + $0x130] ss:$8 sps:$4 sm:$0xff]   ;;  %v2390_v34 = vrot.slane %v6453_v26, %v2385_v29 }
 0x6bf   : > { %v2352_v37 = vpop.f32.mrf.mxu1  ;;  %2605 = vmatpush1.bf16.msra.mxu0 %v5339_v27  ;;  %v2654_v27 = vpack.c.bf16 %v2646_v44, %v2646_v44  ;;  %v5401_v44 = vld [vmem:[#allocation13 + $0x2f4] ss:$8 sps:$4 sm:$0xff]  }
 0x6c0   : > { %v2356_v38 = vadd.f32 %v2355_v36, %v2354_v35  ;;  %2606 = vmatprep.subr.bf16.mxu0 %v5344_v47 }
 0x6c2   : > { %2357 = vadd.xlane.f32.xlu0 %v2356_v38 }
 0x6c3   : > { %2607 = vmatpush1.bf16.msra.mxu0 %v5342_v48 }
 0x6c4   : > { %2608 = vmatprep.subr.bf16.mxu0 %v5347_v49 }
 0x6c7   : > { %2609 = vmatpush1.bf16.msra.mxu0 %v5345_v51  ;;  %v2638_v51 = vld [vmem:[#allocation3 + $0x18] sm:$0xff] }
 0x6c8   : > { %2610 = vmatprep.subr.bf16.mxu0 %v5350_v52  ;;  %v2642_v52 = vld [vmem:[#allocation3 + $0x10] sm:$0xff] }
 0x6cb   : > { %2611 = vmatpush1.bf16.msra.mxu0 %v5348_v55  ;;  %v2652_v55 = vpack.c.bf16 %v2642_v52, %v2638_v51  ;;  %v2648_v52 = vld [vmem:[#allocation3 + $0x30] sm:$0xff] }
 0x6cc   : > { %2612 = vmatprep.subr.bf16.mxu0 %v5353_v56  ;;  %v2435_v56 = vrot.slane %v6453_v26, %v6431_v57 }
 0x6cf   : > { %2613 = vmatpush2.bf16.msra.mxu0 %v5351_v58 }
 0x6d0   : > { %2614 = vmatprep.subr.bf16.mxu0 %v5356_v59 }
 0x6d3   : > { %2615 = vmatpush2.bf16.msra.mxu0 %v5354_v60 }
 0x6d4   : > { %2616 = vmatprep.subr.bf16.mxu0 %v5359_v4 }
 0x6d7   : > { %2617 = vmatpush2.bf16.msra.mxu0 %v5357_v5 }
 0x6d8   : > { %2618 = vmatprep.subr.bf16.mxu0 %v5362_v7 }
 0x6db   : > { %2619 = vmatpush2.bf16.msra.mxu0 %v5360_v6 }
 0x6dc   : > { %2620 = vmatprep.subr.bf16.mxu0 %v5365_v8 }
 0x6df   : > { %2621 = vmatpush2.bf16.msra.mxu0 %v5363_v9 }
 0x6e0   : > { %2622 = vmatprep.subr.bf16.mxu0 %v5368_v10 }
 0x6e3   : > { %2623 = vmatpush2.bf16.msra.mxu0 %v5366_v11 }
 0x6e4   : > { %2624 = vmatprep.subr.bf16.mxu0 %v5371_v12 }
 0x6e7   : > { %2625 = vmatpush2.bf16.msra.mxu0 %v5369_v13 }
 0x6e8   : > { %2626 = vmatprep.subr.bf16.mxu0 %v5374_v15  ;;  %v2647_v15 = vld [vmem:[#allocation3 + $0x38] sm:$0xff] }
 0x6eb   : > { %2627 = vmatpush2.bf16.msra.mxu0 %v5372_v16  ;;  %v2657_v16 = vpack.c.bf16 %v2647_v15, %v2647_v15 }
 0x6ed   : > { %v2769_v17 = vsel %vm2767_vm3, %v2657_v16, 0 }
 0x74b   : > { %v2358_v61 = vpop.xlane.xlu0 %2357 }
 0x74c   : > { %v2360_v62 = vmul.f32 0.00390625, %v2358_v61 }
 0x74e   : > { %v2361_v63 = vsub.f32 %v2354_v35, %v2360_v62  ;;  %v2362_v0 = vsub.f32 %v2355_v36, %v2360_v62  ;;  %v2386_v36 = vrot.slane %v6451_v25, %v2385_v29  ;;  %v5378_v29 = vld [vmem:[#allocation13 + $0x260] ss:$8 sps:$4 sm:$0xff]  }
 0x750   : > { %v2363_v1 = vmul.f32 %v2361_v63, %v2361_v63  ;;  %v2364_v2 = vmul.f32 %v2362_v0, %v2362_v0 }
 0x752   : > { %v2365_v3 = vadd.f32 %v2364_v2, %v2363_v1 }
 0x754   : > { %2366 = vadd.xlane.f32.xlu1 %v2365_v3 }
 0x7dd   : > { %v2367_v22 = vpop.xlane.xlu1 %2366 }
 0x7de   : > { %v2368_v23 = vmul.f32 0.00390625, %v2367_v22  ;;  %v2655_v22 = vpack.c.bf16 %v2643_v21, %v2639_v20 }
 0x7e0   : > { %v2369_v24 = vadd.f32 1e-05, %v2368_v23  ;;  %v5375_v23 = vld [vmem:[#allocation13 + $0x270] ss:$8 sps:$4 sm:$0xff]  }
 0x7e2   : > { %5623 = vrsqrt.f32 %v2369_v24  ;;  %v5377_v24 = vld [vmem:[#allocation13 + $0x274] ss:$8 sps:$4 sm:$0xff]  }
 0x7e3   : > { %3060 = vmatprep.subr.bf16.mxu0 %v5377_v24 }
 0x7ef   : > { %v5624_v32 = vpop.eup %5623 }
 0x7f0   : > { %v2372_v33 = vmul.f32 %v5624_v32, %v2362_v0  ;;  %v2371_v35 = vmul.f32 %v5624_v32, %v2361_v63  ;;  %v5386_v32 = vld [vmem:[#allocation13 + $0x244] ss:$8 sps:$4 sm:$0xff]  }
 0x7f2   : > { %v2382_v37 = vmul.f32 %v2380_v30, %v2372_v33  ;;  %v2381_v38 = vmul.f32 %v2376_v31, %v2371_v35  ;;  %v5383_v30 = vld [vmem:[#allocation13 + $0x254] ss:$8 sps:$4 sm:$0xff]   ;;  %v5381_v31 = vld [vmem:[#allocation13 + $0x250] ss:$8 sps:$4 sm:$0xff]   ;;  %v5384_v33 = vld [vmem:[#allocation13 + $0x240] ss:$8 sps:$4 sm:$0xff]  }
 0x7f3   : > { %v5387_v35 = vld [vmem:[#allocation13 + $0x230] ss:$8 sps:$4 sm:$0xff]  }
 0x7f4   : > { %v6469_v39 = vadd.f32 %v2390_v34, %v2382_v37  ;;  %v6471_v40 = vadd.f32 %v2386_v36, %v2381_v38  ;;  %v5389_v34 = vld [vmem:[#allocation13 + $0x234] ss:$8 sps:$4 sm:$0xff]   ;;  %v5392_v36 = vld [vmem:[#allocation13 + $0x224] ss:$8 sps:$4 sm:$0xff]   ;;  %v5390_v37 = vld [vmem:[#allocation13 + $0x220] ss:$8 sps:$4 sm:$0xff]  }
 0x7f5   : > { %v5395_v38 = vld [vmem:[#allocation13 + $0x214] ss:$8 sps:$4 sm:$0xff]  }
 0x7f6   : > { %v2394_v41 = vpack.c.bf16 %v6469_v39, %v6469_v39  ;;  %v2393_v42 = vpack.c.bf16 %v6471_v40, %v6471_v40 }
 0x7f8   : > { %2628 = vmatprep.mubr.bf16.mxu0 %v2394_v41  ;;  %v5393_v41 = vld [vmem:[#allocation13 + $0x210] ss:$8 sps:$4 sm:$0xff]  }
 0x7f9   : > { %2629 = vmatmul.mubr.bf16.vlgmr.msra.gmra.mxu0 %v2393_v42  ;;  %v5398_v42 = vld [vmem:[#allocation13 + $0x204] ss:$8 sps:$4 sm:$0xff]  }
 0x7fa   : > { %3061 = vmatpush1.bf16.msra.mxu0 %v5375_v23 }
 0x7fb   : > { %3062 = vmatprep.subr.bf16.mxu0 %v5380_v28 }
 0x7fe   : > { %3063 = vmatpush1.bf16.msra.mxu0 %v5378_v29 }
 0x7ff   : > { %3064 = vmatprep.subr.bf16.mxu0 %v5383_v30 }
 0x802   : > { %3065 = vmatpush1.bf16.msra.mxu0 %v5381_v31 }
 0x803   : > { %3066 = vmatprep.subr.bf16.mxu0 %v5386_v32 }
 0x806   : > { %3067 = vmatpush1.bf16.msra.mxu0 %v5384_v33 }
 0x807   : > { %3068 = vmatprep.subr.bf16.mxu0 %v5389_v34 }
 0x80a   : > { %3069 = vmatpush1.bf16.msra.mxu0 %v5387_v35 }
 0x80b   : > { %3070 = vmatprep.subr.bf16.mxu0 %v5392_v36 }
 0x80e   : > { %3071 = vmatpush1.bf16.msra.mxu0 %v5390_v37  ;;  %v5423_v37 = vld [vmem:[#allocation15 + $0xe0] ss:$16 sps:$4 sm:$0xff]  }
 0x80f   : > { %3072 = vmatprep.subr.bf16.mxu0 %v5395_v38  ;;  %v5425_v38 = vld [vmem:[#allocation15 + $0xe4] ss:$16 sps:$4 sm:$0xff]  }
 0x812   : > { %3073 = vmatpush1.bf16.msra.mxu0 %v5393_v41  ;;  %v5426_v41 = vld [vmem:[#allocation15 + $0xe8] ss:$16 sps:$4 sm:$0xff]  }
 0x813   : > { %3074 = vmatprep.subr.bf16.mxu0 %v5398_v42  ;;  %v5428_v42 = vld [vmem:[#allocation15 + $0xec] ss:$16 sps:$4 sm:$0xff]  }
 0x8b9   : > { %v2630_v45 = vpop.f32.mrf.mxu0 }
 0x8ba   : > { %v2631_v46 = vadd.f32 %v2630_v45, %v2431_v43  ;;  %v5396_v43 = vld [vmem:[#allocation13 + $0x200] ss:$8 sps:$4 sm:$0xff]   ;;  %v5399_v45 = vld [vmem:[#allocation13 + $0x2f0] ss:$8 sps:$4 sm:$0xff]  }
 0x8bb   : > { %v2632_v50 = vpop.f32.mrf.mxu0  ;;  %3075 = vmatpush1.bf16.msra.mxu0 %v5396_v43  ;;  %v5431_v43 = vld [vmem:[#allocation15 + $0xc4] ss:$16 sps:$4 sm:$0xff]  }
 0x8bc   : > { %v2649_v47 = vpack.c.bf16 %v2631_v46, %v2631_v46  ;;  %v2633_v58 = vadd.f32 %v2632_v50, %v2435_v56  ;;  %3076 = vmatprep.subr.bf16.mxu0 %v5401_v44  ;;  %v5404_v46 = vld [vmem:[#allocation13 + $0x2e4] ss:$8 sps:$4 sm:$0xff]   ;;  %v5402_v50 = vld [vmem:[#allocation13 + $0x2e0] ss:$8 sps:$4 sm:$0xff]  }
 0x8bd   : > { %v2634_v48 = vpop.f32.mrf.mxu0  ;;  %v5434_v44 = vld [vmem:[#allocation15 + $0xcc] ss:$16 sps:$4 sm:$0xff]  }
 0x8be   : > { %4828 = vmatmul.mubr.bf16.vlgmr.msra.gmra.mxu1 %v2649_v47  ;;  %v2650_v59 = vpack.c.bf16 %v2633_v58, %v2633_v58  ;;  %v5405_v47 = vld [vmem:[#allocation13 + $0x2d0] ss:$8 sps:$4 sm:$0xff]   ;;  %v5410_v48 = vld [vmem:[#allocation13 + $0x2c4] ss:$8 sps:$4 sm:$0xff]  }
 0x8bf   : > { %4832 = vmatpush3.bf16.xpose.msra.mxu1 %v2654_v27  ;;  %v2635_v49 = vpop.f32.mrf.mxu0  ;;  %4835 = vmatprep.mubr.msk.bf16.mxu1 %vm6033_vm0, %v6032_v14  ;;  %v5407_v27 = vld [vmem:[#allocation13 + $0x2d4] ss:$8 sps:$4 sm:$0xff]  }
 0x8c0   : > { %4833 = vmatprep.subr.bf16.mxu1 %v6032_v14  ;;  %3077 = vmatpush2.bf16.msra.mxu0 %v5399_v45  ;;  %v5408_v49 = vld [vmem:[#allocation13 + $0x2c0] ss:$8 sps:$4 sm:$0xff]  }
 0x8c1   : > { %3078 = vmatprep.subr.bf16.mxu0 %v5404_v46  ;;  %v5429_v45 = vld [vmem:[#allocation15 + $0xc0] ss:$16 sps:$4 sm:$0xff]   ;;  %v5440_v46 = vld [vmem:[#allocation15 + $0xac] ss:$16 sps:$4 sm:$0xff]  }
 0x8c4   : > { %3079 = vmatpush2.bf16.msra.mxu0 %v5402_v50  ;;  %v5435_v50 = vld [vmem:[#allocation15 + $0xa0] ss:$16 sps:$4 sm:$0xff]  }
 0x8c5   : > { %3080 = vmatprep.subr.bf16.mxu0 %v5407_v27  ;;  %v5438_v27 = vld [vmem:[#allocation15 + $0xa8] ss:$16 sps:$4 sm:$0xff]  }
 0x8c7   : > { %4834 = vmatpush3.bf16.xpose.msra.mxu1 %v2652_v55  ;;  %v2658_v55 = vpack.c.bf16 %v2648_v52, %v2648_v52  ;;  %v5449_v52 = vld [vmem:[#allocation15 + $0x64] ss:$16 sps:$4 sm:$0xff]  }
 0x8c8   : > { %4839 = vmatprep.subr.bf16.mxu1 %v6032_v14  ;;  %3081 = vmatpush2.bf16.msra.mxu0 %v5405_v47  ;;  %v5443_v47 = vld [vmem:[#allocation15 + $0x84] ss:$16 sps:$4 sm:$0xff]  }
 0x8c9   : > { %3082 = vmatprep.subr.bf16.mxu0 %v5410_v48  ;;  %v5446_v48 = vld [vmem:[#allocation15 + $0x8c] ss:$16 sps:$4 sm:$0xff]  }
 0x8cc   : > { %3083 = vmatpush2.bf16.msra.mxu0 %v5408_v49  ;;  %v5441_v49 = vld [vmem:[#allocation15 + $0x80] ss:$16 sps:$4 sm:$0xff]  }
 0x8ce   : > { %4836 = vmatmul.mubr.bf16.vlgmr.msra.gmra.mxu1 %v2650_v59 }
 0x8cf   : > { %4843 = vmatprep.mubr.msk.bf16.mxu1 %vm6033_vm0, %v6032_v14  ;;  %4840 = vmatpush3.bf16.msra.mxu1 %v2769_v17 }
 0x8d0   : > { %4841 = vmatprep.subr.bf16.mxu1 %v6032_v14 }
 0x8d3   : > { %4842 = vmatpush3.bf16.msra.mxu1 %v2655_v22  ;;  %v6509_v22 = vsub.s32 2, %v6421_v53 }
 0x8d4   : > { %4847 = vmatprep.subr.bf16.mxu1 %v6032_v14 }
 0x8d5   : > { %v2895_v23 = vrot.slane %v6451_v25, %v6509_v22  ;;  %v2899_v24 = vrot.slane %v6453_v26, %v6509_v22 }
 0x97e   : > { %v2693_v60 = vpop.f32.mrf.mxu1 }
 0x97f   : > { %v2740_v61 = vsel %vm2739_vm2, %v2693_v60, -inf }
 0x980   : > { %2741 = vmax.xlane.f32.xlu0 %v2740_v61  ;;  %v4829_v62 = vpop.f32.mrf.mxu1  ;;  %v2815_v61 = vsel %vm2767_vm3, %v2658_v55, 0  ;;  %v5452_v55 = vld [vmem:[#allocation15 + $0x6c] ss:$16 sps:$4 sm:$0xff]  }
 0x981   : > { %v2640_v62 = vld [vmem:[#allocation3 + $0x58] sm:$0xff] }
 0x982   : > { %v2696_v63 = vpop.f32.mrf.mxu1 }
 0x983   : > { %v2644_v63 = vld [vmem:[#allocation3 + $0x8] sm:$0xff] }
 0x984   : > { %v4830_v0 = vpop.f32.mrf.mxu1 }
 0x985   : > { %v2656_v0 = vpack.c.bf16 %v2644_v63, %v2640_v62  ;;  %v5456_v62 = vld [vmem:[#allocation15 + $0x48] ss:$16 sps:$4 sm:$0xff]   ;;  %v5461_v63 = vld [vmem:[#allocation15 + $0x24] ss:$16 sps:$4 sm:$0xff]  }
 0x98e   : > { %v2733_v1 = vpop.f32.mrf.mxu1 }
 0x98f   : > { %v2743_v2 = vsel %vm2739_vm2, %v2733_v1, -inf }
 0x990   : > { %2744 = vmax.xlane.f32.xlu1 %v2743_v2  ;;  %v4837_v3 = vpop.f32.mrf.mxu1 }
 0x992   : > { %v2736_v4 = vpop.f32.mrf.mxu1 }
 0x993   : > { %v5411_v4 = vld [vmem:[#allocation13 + $0x2b0] ss:$8 sps:$4 sm:$0xff]  }
 0x994   : > { %v4838_v5 = vpop.f32.mrf.mxu1 }
 0x995   : > { %v5413_v5 = vld [vmem:[#allocation13 + $0x2b4] ss:$8 sps:$4 sm:$0xff]  }
 0x996   : > { %3084 = vmatprep.subr.bf16.mxu0 %v5413_v5  ;;  %v5465_v5 = vld [vmem:[#allocation15] ss:$16 sps:$4 sm:$0xff]  }
 0x997   : > { %3085 = vmatpush2.bf16.msra.mxu0 %v5411_v4  ;;  %v5470_v4 = vld [vmem:[#allocation15 + $0xc] ss:$16 sps:$4 sm:$0xff]  }
 0xa09   : > { %v2742_v6 = vpop.xlane.xlu0 %2741 }
 0xa0a   : > { %v2746_v7 = vsub.f32 %v2693_v60, %v2742_v6  ;;  %v5414_v6 = vld [vmem:[#allocation13 + $0x2a0] ss:$8 sps:$4 sm:$0xff]  }
 0xa0c   : > { %v2748_v8 = vmul.f32 1.442695, %v2746_v7  ;;  %v5416_v7 = vld [vmem:[#allocation13 + $0x2a4] ss:$8 sps:$4 sm:$0xff]  }
 0xa0d   : > { %3086 = vmatprep.subr.bf16.mxu0 %v5416_v7  ;;  %v5473_v7 = vld [vmem:[#allocation15 + $0x1e4] ss:$16 sps:$4 sm:$0xff]  }
 0xa0e   : > { %5625 = vpow2.f32 %v2748_v8  ;;  %v5419_v8 = vld [vmem:[#allocation13 + $0x294] ss:$8 sps:$4 sm:$0xff]   ;;  %3087 = vmatpush2.bf16.msra.mxu0 %v5414_v6  ;;  %v5468_v6 = vld [vmem:[#allocation15 + $0x8] ss:$16 sps:$4 sm:$0xff]  }
 0xa0f   : > { %3088 = vmatprep.subr.bf16.mxu0 %v5419_v8  ;;  %v5476_v8 = vld [vmem:[#allocation15 + $0x1ec] ss:$16 sps:$4 sm:$0xff]  }
 0xa19   : > { %v2745_v9 = vpop.xlane.xlu1 %2744 }
 0xa1a   : > { %v2747_v10 = vsub.f32 %v2733_v1, %v2745_v9  ;;  %v5417_v9 = vld [vmem:[#allocation13 + $0x290] ss:$8 sps:$4 sm:$0xff]  }
 0xa1b   : > { %v6489_v11 = vpop.eup %5625  ;;  %3089 = vmatpush2.bf16.msra.mxu0 %v5417_v9  ;;  %v5471_v9 = vld [vmem:[#allocation15 + $0x1e0] ss:$16 sps:$4 sm:$0xff]  }
 0xa1c   : > { %v2750_v12 = vmul.f32 1.442695, %v2747_v10  ;;  %v2752_v13 = vsel %vm2739_vm2, %v6489_v11, 0.0  ;;  %v5420_v10 = vld [vmem:[#allocation13 + $0x280] ss:$8 sps:$4 sm:$0xff]  }
 0xa1d   : > { %2753 = vadd.xlane.f32.xlu0 %v2752_v13 }
 0xa1e   : > { %5627 = vpow2.f32 %v2750_v12 }
 0xa2b   : > { %v6494_v18 = vpop.eup %5627 }
 0xa2c   : > { %v2755_v19 = vsel %vm2739_vm2, %v6494_v18, 0.0 }
 0xa2d   : > { %2756 = vadd.xlane.f32.xlu1 %v2755_v19 }
 0xaa6   : > { %v2754_v51 = vpop.xlane.xlu0 %2753 }
 0xaa7   : > { %5629 = vrcp.f32 %v2754_v51  ;;  %v5444_v51 = vld [vmem:[#allocation15 + $0x88] ss:$16 sps:$4 sm:$0xff]  }
 0xab4   : > { %v5630_v56 = vpop.eup %5629 }
 0xab5   : > { %v2760_v58 = vmul.f32 %v5630_v56, %v6489_v11  ;;  %v5447_v56 = vld [vmem:[#allocation15 + $0x60] ss:$16 sps:$4 sm:$0xff]  }
 0xab6   : > { %v2757_v59 = vpop.xlane.xlu1 %2756 }
 0xab7   : > { %5631 = vrcp.f32 %v2757_v59  ;;  %v2762_v60 = vpack.c.bf16 %v2760_v58, %v2760_v58  ;;  %v5450_v58 = vld [vmem:[#allocation15 + $0x68] ss:$16 sps:$4 sm:$0xff]   ;;  %v5455_v59 = vld [vmem:[#allocation15 + $0x44] ss:$16 sps:$4 sm:$0xff]  }
 0xab9   : > { %4844 = vmatmul.mubr.msk.bf16.vlgmr.msra.gmra.mxu1 %vm2739_vm2, %v2762_v60  ;;  %v5458_v60 = vld [vmem:[#allocation15 + $0x4c] ss:$16 sps:$4 sm:$0xff]  }
 0xaba   : > { %4848 = vmatpush3.bf16.msra.mxu1 %v2815_v61  ;;  %4851 = vmatprep.mubr.msk.bf16.mxu1 %vm6033_vm0, %v6032_v14  ;;  %v5453_v61 = vld [vmem:[#allocation15 + $0x40] ss:$16 sps:$4 sm:$0xff]  }
 0xabb   : > { %4849 = vmatprep.subr.bf16.mxu1 %v6032_v14  ;;  %v5422_v14 = vld [vmem:[#allocation13 + $0x284] ss:$8 sps:$4 sm:$0xff]  }
 0xabc   : > { %3090 = vmatprep.subr.bf16.mxu0 %v5422_v14  ;;  %v5474_v14 = vld [vmem:[#allocation15 + $0x1e8] ss:$16 sps:$4 sm:$0xff]  }
 0xabd   : > { %3091 = vmatpush2.bf16.msra.mxu0 %v5420_v10  ;;  %v5479_v10 = vld [vmem:[#allocation15 + $0x1c4] ss:$16 sps:$4 sm:$0xff]  }
 0xabe   : > { %4850 = vmatpush3.bf16.msra.mxu1 %v2656_v0  ;;  %3588 = vmatprep.subr.bf16.mxu0 %v5428_v42  ;;  %v5464_v0 = vld [vmem:[#allocation15 + $0x2c] ss:$16 sps:$4 sm:$0xff]   ;;  %v5501_v42 = vld [vmem:[#allocation15 + $0x140] ss:$16 sps:$4 sm:$0xff]  }
 0xabf   : > { %3547 = vmatprep.subr.bf16.mxu1 %v5425_v38  ;;  %v5503_v38 = vld [vmem:[#allocation15 + $0x144] ss:$16 sps:$4 sm:$0xff]  }
 0xac4   : > { %v5632_v1 = vpop.eup %5631 }
 0xac5   : > { %v2761_v2 = vmul.f32 %v5632_v1, %v6494_v18  ;;  %v5459_v1 = vld [vmem:[#allocation15 + $0x20] ss:$16 sps:$4 sm:$0xff]  }
 0xac7   : > { %v2763_v3 = vpack.c.bf16 %v2761_v2, %v2761_v2  ;;  %v5462_v2 = vld [vmem:[#allocation15 + $0x28] ss:$16 sps:$4 sm:$0xff]  }
 0xac9   : > { %4852 = vmatmul.mubr.msk.bf16.vlgmr.msra.gmra.mxu1 %vm2739_vm2, %v2763_v3  ;;  %v5467_v3 = vld [vmem:[#allocation15 + $0x4] ss:$16 sps:$4 sm:$0xff]  }
 0xaca   : > { %3548 = vmatpush1.bf16.msra.mxu1 %v5423_v37  ;;  %v5498_v37 = vld [vmem:[#allocation15 + $0x168] ss:$16 sps:$4 sm:$0xff]  }
 0xacb   : > { %3549 = vmatprep.subr.bf16.mxu1 %v5431_v43  ;;  %v5504_v43 = vld [vmem:[#allocation15 + $0x148] ss:$16 sps:$4 sm:$0xff]  }
 0xace   : > { %3550 = vmatpush1.bf16.msra.mxu1 %v5429_v45  ;;  %v5512_v45 = vld [vmem:[#allocation15 + $0x12c] ss:$16 sps:$4 sm:$0xff]  }
 0xb79   : > { %v2805_v11 = vpop.f32.mrf.mxu1 }
 0xb7a   : > { %v2857_v18 = vpack.c.bf16 %v2805_v11, %v2805_v11  ;;  %v5482_v11 = vld [vmem:[#allocation15 + $0x1cc] ss:$16 sps:$4 sm:$0xff]  }
 0xb7b   : > { %v4845_v12 = vpop.f32.mrf.mxu1 }
 0xb7c   : > { %v5477_v12 = vld [vmem:[#allocation15 + $0x1c0] ss:$16 sps:$4 sm:$0xff]  }
 0xb7d   : > { %v2808_v13 = vpop.f32.mrf.mxu1 }
 0xb7e   : > { %v5480_v13 = vld [vmem:[#allocation15 + $0x1c8] ss:$16 sps:$4 sm:$0xff]  }
 0xb7f   : > { %v4846_v15 = vpop.f32.mrf.mxu1 }
 0xb89   : > { %v2851_v16 = vpop.f32.mrf.mxu1 }
 0xb8a   : > { %v2858_v17 = vpack.c.bf16 %v2851_v16, %v2851_v16 }
 0xb8b   : > { %v4853_v19 = vpop.f32.mrf.mxu1 }
 0xb8c   : > { %3092 = vmatprep.mubr.bf16.mxu0 %v2858_v17 }
 0xb8d   : > { %v2854_v20 = vpop.f32.mrf.mxu1  ;;  %3093 = vmatmul.mubr.bf16.vlgmr.msra.gmra.mxu0 %v2857_v18 }
 0xb8e   : > { %3589 = vmatpush1.bf16.msra.mxu0 %v5426_v41  ;;  %v5506_v41 = vld [vmem:[#allocation15 + $0x14c] ss:$16 sps:$4 sm:$0xff]  }
 0xb8f   : > { %v4854_v21 = vpop.f32.mrf.mxu1  ;;  %3590 = vmatprep.subr.bf16.mxu0 %v5434_v44  ;;  %v5509_v44 = vld [vmem:[#allocation15 + $0x124] ss:$16 sps:$4 sm:$0xff]  }
 0xc4d   : > { %v3094_v28 = vpop.f32.mrf.mxu0 }
 0xc4e   : > { %v3095_v29 = vadd.f32 %v3094_v28, %v2895_v23  ;;  %v5485_v23 = vld [vmem:[#allocation15 + $0x1a4] ss:$16 sps:$4 sm:$0xff]   ;;  %v5483_v28 = vld [vmem:[#allocation15 + $0x1a0] ss:$16 sps:$4 sm:$0xff]  }
 0xc4f   : > { %v3096_v30 = vpop.f32.mrf.mxu0 }
 0xc50   : > { %v3097_v31 = vadd.f32 %v3096_v30, %v2899_v24  ;;  %v6516_v33 = vadd.f32 %v3095_v29, %v6471_v40  ;;  %v5432_v40 = vld [vmem:[#allocation15 + $0xc8] ss:$16 sps:$4 sm:$0xff]   ;;  %v5488_v24 = vld [vmem:[#allocation15 + $0x1ac] ss:$16 sps:$4 sm:$0xff]   ;;  %v5489_v30 = vld [vmem:[#allocation15 + $0x180] ss:$16 sps:$4 sm:$0xff]  }
 0xc51   : > { %v3098_v32 = vpop.f32.mrf.mxu0  ;;  %3591 = vmatpush1.bf16.msra.mxu0 %v5432_v40  ;;  %v5486_v29 = vld [vmem:[#allocation15 + $0x1a8] ss:$16 sps:$4 sm:$0xff]   ;;  %v5507_v40 = vld [vmem:[#allocation15 + $0x120] ss:$16 sps:$4 sm:$0xff]  }
 0xc52   : > { %v6519_v34 = vadd.f32 %v3097_v31, %v6469_v39  ;;  %v5437_v39 = vld [vmem:[#allocation15 + $0xa4] ss:$16 sps:$4 sm:$0xff]   ;;  %3592 = vmatprep.subr.bf16.mxu0 %v5440_v46  ;;  %v5492_v32 = vld [vmem:[#allocation15 + $0x188] ss:$16 sps:$4 sm:$0xff]  }
 0xc53   : > { %v3099_v35 = vpop.f32.mrf.mxu0  ;;  %3551 = vmatprep.subr.bf16.mxu1 %v5437_v39  ;;  %v5491_v31 = vld [vmem:[#allocation15 + $0x184] ss:$16 sps:$4 sm:$0xff]   ;;  %v5510_v39 = vld [vmem:[#allocation15 + $0x128] ss:$16 sps:$4 sm:$0xff]  }
 0xc54   : > { %v3103_v36 = vadd.f32 %v6519_v34, %v6516_v33  ;;  %3552 = vmatpush1.bf16.msra.mxu1 %v5435_v50  ;;  %v5500_v35 = vld [vmem:[#allocation15 + $0x16c] ss:$16 sps:$4 sm:$0xff]   ;;  %v5515_v46 = vld [vmem:[#allocation15 + $0x104] ss:$16 sps:$4 sm:$0xff]  }
 0xc55   : > { %3593 = vmatpush1.bf16.msra.mxu0 %v5438_v27  ;;  %3553 = vmatprep.subr.bf16.mxu1 %v5443_v47  ;;  %v5518_v50 = vld [vmem:[#allocation15 + $0x10c] ss:$16 sps:$4 sm:$0xff]   ;;  %v5513_v27 = vld [vmem:[#allocation15 + $0x100] ss:$16 sps:$4 sm:$0xff]   ;;  %v5516_v47 = vld [vmem:[#allocation15 + $0x108] ss:$16 sps:$4 sm:$0xff]  }
 0xc56   : > { %3104 = vadd.xlane.f32.xlu0 %v3103_v36  ;;  %3594 = vmatprep.subr.bf16.mxu0 %v5446_v48  ;;  %v5495_v36 = vld [vmem:[#allocation15 + $0x160] ss:$16 sps:$4 sm:$0xff]   ;;  %v5521_v48 = vld [vmem:[#allocation16 + $0x74] ss:$8 sps:$4 sm:$0xff]  }
 0xc58   : > { %3554 = vmatpush1.bf16.msra.mxu1 %v5441_v49  ;;  %v5524_v49 = vld [vmem:[#allocation16 + $0x174] ss:$8 sps:$4 sm:$0xff]  }
 0xc59   : > { %3595 = vmatpush1.bf16.msra.mxu0 %v5444_v51  ;;  %3555 = vmatprep.subr.bf16.mxu1 %v5449_v52 }
 0xc5a   : > { %3596 = vmatprep.subr.bf16.mxu0 %v5452_v55 }
 0xc5c   : > { %3556 = vmatpush1.bf16.msra.mxu1 %v5447_v56  ;;  %v3121_v56 = vsub.s32 6, %v6421_v53 }
 0xc5d   : > { %3597 = vmatpush1.bf16.msra.mxu0 %v5450_v58  ;;  %3557 = vmatprep.subr.bf16.mxu1 %v5455_v59  ;;  %v3131_v58 = vsub.s32 7, %v6421_v53 }
 0xc5e   : > { %3598 = vmatprep.subr.bf16.mxu0 %v5458_v60  ;;  %v3126_v59 = vrot.slane %v6453_v26, %v3121_v56  ;;  %v3122_v60 = vrot.slane %v6451_v25, %v3121_v56  ;;  %v5588_v56 = vld [vmem:[#allocation16 + $0x1c0] ss:$8 sps:$4 sm:$0xff]  }
 0xc60   : > { %3558 = vmatpush1.bf16.msra.mxu1 %v5453_v61 }
 0xc61   : > { %3599 = vmatpush1.bf16.msra.mxu0 %v5456_v62  ;;  %3559 = vmatprep.subr.bf16.mxu1 %v5461_v63  ;;  %v3136_v63 = vrot.slane %v6453_v26, %v3131_v58  ;;  %v5530_v26 = vld [vmem:[#allocation16 + $0x164] ss:$8 sps:$4 sm:$0xff]  }
 0xc62   : > { %3600 = vmatprep.subr.bf16.mxu0 %v5464_v0 }
 0xc64   : > { %3560 = vmatpush1.bf16.msra.mxu1 %v5459_v1  ;;  %v3132_v1 = vrot.slane %v6451_v25, %v3131_v58  ;;  %v5525_v25 = vld [vmem:[#allocation16 + $0x60] ss:$8 sps:$4 sm:$0xff]   ;;  %v5593_v58 = vld [vmem:[#allocation16 + $0xb4] ss:$8 sps:$4 sm:$0xff]  }
 0xc65   : > { %3601 = vmatpush1.bf16.msra.mxu0 %v5462_v2  ;;  %3561 = vmatprep.subr.bf16.mxu1 %v5467_v3 }
 0xc66   : > { %3602 = vmatprep.subr.bf16.mxu0 %v5470_v4 }
 0xc68   : > { %3562 = vmatpush1.bf16.msra.mxu1 %v5465_v5 }
 0xc69   : > { %3603 = vmatpush1.bf16.msra.mxu0 %v5468_v6  ;;  %3563 = vmatprep.subr.bf16.mxu1 %v5473_v7 }
 0xc6a   : > { %3604 = vmatprep.subr.bf16.mxu0 %v5476_v8  ;;  %v5519_v8 = vld [vmem:[#allocation16 + $0x70] ss:$8 sps:$4 sm:$0xff]  }
 0xc6c   : > { %3564 = vmatpush2.bf16.msra.mxu1 %v5471_v9  ;;  %v5522_v9 = vld [vmem:[#allocation16 + $0x170] ss:$8 sps:$4 sm:$0xff]  }
 0xc6d   : > { %3605 = vmatpush2.bf16.msra.mxu0 %v5474_v14  ;;  %3565 = vmatprep.subr.bf16.mxu1 %v5479_v10  ;;  %v5527_v14 = vld [vmem:[#allocation16 + $0x64] ss:$8 sps:$4 sm:$0xff]   ;;  %v5528_v10 = vld [vmem:[#allocation16 + $0x160] ss:$8 sps:$4 sm:$0xff]  }
 0xc6e   : > { %3606 = vmatprep.subr.bf16.mxu0 %v5482_v11  ;;  %v5533_v11 = vld [vmem:[#allocation16 + $0x54] ss:$8 sps:$4 sm:$0xff]  }
 0xc70   : > { %3566 = vmatpush2.bf16.msra.mxu1 %v5477_v12  ;;  %v5536_v12 = vld [vmem:[#allocation16 + $0x154] ss:$8 sps:$4 sm:$0xff]  }
 0xc71   : > { %3607 = vmatpush2.bf16.msra.mxu0 %v5480_v13  ;;  %3567 = vmatprep.subr.bf16.mxu1 %v5485_v23  ;;  %v5531_v13 = vld [vmem:[#allocation16 + $0x50] ss:$8 sps:$4 sm:$0xff]  }
 0xc72   : > { %3608 = vmatprep.subr.bf16.mxu0 %v5488_v24  ;;  %v5543_v23 = vld [vmem:[#allocation16 + $0x30] ss:$8 sps:$4 sm:$0xff]  }
 0xc73   : > { %v5546_v24 = vld [vmem:[#allocation16 + $0x130] ss:$8 sps:$4 sm:$0xff]  }
 0xc74   : > { %3568 = vmatpush2.bf16.msra.mxu1 %v5483_v28  ;;  %v5551_v28 = vld [vmem:[#allocation16 + $0x24] ss:$8 sps:$4 sm:$0xff]  }
 0xc75   : > { %3609 = vmatpush2.bf16.msra.mxu0 %v5486_v29  ;;  %3569 = vmatprep.subr.bf16.mxu1 %v5491_v31  ;;  %v5554_v29 = vld [vmem:[#allocation16 + $0x124] ss:$8 sps:$4 sm:$0xff]   ;;  %v5552_v31 = vld [vmem:[#allocation16 + $0x120] ss:$8 sps:$4 sm:$0xff]  }
 0xc78   : > { %3570 = vmatpush2.bf16.msra.mxu1 %v5489_v30  ;;  %v5549_v30 = vld [vmem:[#allocation16 + $0x20] ss:$8 sps:$4 sm:$0xff]  }
 0xcdf   : > { %v3105_v15 = vpop.xlane.xlu0 %3104 }
 0xce0   : > { %v3106_v16 = vmul.f32 0.00390625, %v3105_v15  ;;  %v5534_v15 = vld [vmem:[#allocation16 + $0x150] ss:$8 sps:$4 sm:$0xff]  }
 0xce2   : > { %v6524_v17 = vsub.f32 %v6516_v33, %v3106_v16  ;;  %v6527_v18 = vsub.f32 %v6519_v34, %v3106_v16  ;;  %v5494_v33 = vld [vmem:[#allocation15 + $0x18c] ss:$16 sps:$4 sm:$0xff]   ;;  %v5497_v34 = vld [vmem:[#allocation15 + $0x164] ss:$16 sps:$4 sm:$0xff]  }
 0xce3   : > { %3610 = vmatprep.subr.bf16.mxu0 %v5494_v33  ;;  %3571 = vmatprep.subr.bf16.mxu1 %v5497_v34  ;;  %v5539_v16 = vld [vmem:[#allocation16 + $0x44] ss:$8 sps:$4 sm:$0xff]   ;;  %v5560_v33 = vld [vmem:[#allocation16 + $0x114] ss:$8 sps:$4 sm:$0xff]   ;;  %v5555_v34 = vld [vmem:[#allocation16 + $0x10] ss:$8 sps:$4 sm:$0xff]  }
 0xce4   : > { %v3109_v19 = vmul.f32 %v6524_v17, %v6524_v17  ;;  %v3110_v20 = vmul.f32 %v6527_v18, %v6527_v18  ;;  %3611 = vmatpush2.bf16.msra.mxu0 %v5492_v32  ;;  %3572 = vmatpush2.bf16.msra.mxu1 %v5495_v36  ;;  %v5557_v32 = vld [vmem:[#allocation16 + $0x14] ss:$8 sps:$4 sm:$0xff]   ;;  %v5563_v36 = vld [vmem:[#allocation16 + $0x4] ss:$8 sps:$4 sm:$0xff]  }
 0xce5   : > { %3612 = vmatprep.subr.bf16.mxu0 %v5500_v35  ;;  %3573 = vmatprep.subr.bf16.mxu1 %v5503_v38  ;;  %v5558_v35 = vld [vmem:[#allocation16 + $0x110] ss:$8 sps:$4 sm:$0xff]   ;;  %v5561_v38 = vld [vmem:[#allocation16] ss:$8 sps:$4 sm:$0xff]  }
 0xce6   : > { %v3111_v21 = vadd.f32 %v3110_v20, %v3109_v19  ;;  %v5540_v19 = vld [vmem:[#allocation16 + $0x140] ss:$8 sps:$4 sm:$0xff]   ;;  %v5545_v20 = vld [vmem:[#allocation16 + $0x34] ss:$8 sps:$4 sm:$0xff]  }
 0xce8   : > { %3112 = vadd.xlane.f32.xlu1 %v3111_v21  ;;  %3613 = vmatpush2.bf16.msra.mxu0 %v5498_v37  ;;  %v5548_v21 = vld [vmem:[#allocation16 + $0x134] ss:$8 sps:$4 sm:$0xff]   ;;  %v5566_v37 = vld [vmem:[#allocation16 + $0x104] ss:$8 sps:$4 sm:$0xff]  }
 0xce9   : > { %3614 = vmatprep.subr.bf16.mxu0 %v5506_v41  ;;  %3574 = vmatpush2.bf16.msra.mxu1 %v5501_v42  ;;  %v5564_v41 = vld [vmem:[#allocation16 + $0x100] ss:$8 sps:$4 sm:$0xff]   ;;  %v5569_v42 = vld [vmem:[#allocation16 + $0xf4] ss:$8 sps:$4 sm:$0xff]  }
 0xcea   : > { %3575 = vmatprep.subr.bf16.mxu1 %v5509_v44  ;;  %v5567_v44 = vld [vmem:[#allocation16 + $0xf0] ss:$8 sps:$4 sm:$0xff]  }
 0xcec   : > { %3615 = vmatpush2.bf16.msra.mxu0 %v5504_v43  ;;  %v5572_v43 = vld [vmem:[#allocation16 + $0x1f4] ss:$8 sps:$4 sm:$0xff]  }
 0xced   : > { %3616 = vmatprep.subr.bf16.mxu0 %v5512_v45  ;;  %3576 = vmatpush2.bf16.msra.mxu1 %v5507_v40  ;;  %v5570_v45 = vld [vmem:[#allocation16 + $0x1f0] ss:$8 sps:$4 sm:$0xff]   ;;  %v5575_v40 = vld [vmem:[#allocation16 + $0xe4] ss:$8 sps:$4 sm:$0xff]  }
 0xcee   : > { %3577 = vmatprep.subr.bf16.mxu1 %v5515_v46  ;;  %v5573_v46 = vld [vmem:[#allocation16 + $0xe0] ss:$8 sps:$4 sm:$0xff]  }
 0xcf0   : > { %3617 = vmatpush2.bf16.msra.mxu0 %v5510_v39  ;;  %v5578_v39 = vld [vmem:[#allocation16 + $0x1e4] ss:$8 sps:$4 sm:$0xff]  }
 0xcf1   : > { %3618 = vmatprep.subr.bf16.mxu0 %v5518_v50  ;;  %3578 = vmatpush2.bf16.msra.mxu1 %v5513_v27  ;;  %v5576_v50 = vld [vmem:[#allocation16 + $0x1e0] ss:$8 sps:$4 sm:$0xff]   ;;  %v5581_v27 = vld [vmem:[#allocation16 + $0xd4] ss:$8 sps:$4 sm:$0xff]  }
 0xcf2   : > { %4029 = vmatprep.subr.bf16.mxu1 %v5521_v48  ;;  %v5579_v48 = vld [vmem:[#allocation16 + $0xd0] ss:$8 sps:$4 sm:$0xff]  }
 0xcf4   : > { %3619 = vmatpush2.bf16.msra.mxu0 %v5516_v47  ;;  %v5584_v47 = vld [vmem:[#allocation16 + $0x1d4] ss:$8 sps:$4 sm:$0xff]  }
 0xcf5   : > { %4070 = vmatprep.subr.bf16.mxu0 %v5524_v49  ;;  %v5582_v49 = vld [vmem:[#allocation16 + $0x1d0] ss:$8 sps:$4 sm:$0xff]  }
 0xd71   : > { %v3113_v51 = vpop.xlane.xlu1 %3112 }
 0xd72   : > { %v3114_v52 = vmul.f32 0.00390625, %v3113_v51  ;;  %v5587_v51 = vld [vmem:[#allocation16 + $0xc4] ss:$8 sps:$4 sm:$0xff]  }
 0xd74   : > { %v3115_v55 = vadd.f32 1e-05, %v3114_v52  ;;  %v5590_v52 = vld [vmem:[#allocation16 + $0x1c4] ss:$8 sps:$4 sm:$0xff]  }
 0xd76   : > { %5633 = vrsqrt.f32 %v3115_v55  ;;  %v5585_v55 = vld [vmem:[#allocation16 + $0xc0] ss:$8 sps:$4 sm:$0xff]  }
 0xd83   : > { %v5634_v61 = vpop.eup %5633 }
 0xd84   : > { %v3118_v62 = vmul.f32 %v5634_v61, %v6527_v18  ;;  %v3117_v0 = vmul.f32 %v5634_v61, %v6524_v17  ;;  %v5542_v17 = vld [vmem:[#allocation16 + $0x144] ss:$8 sps:$4 sm:$0xff]   ;;  %v5537_v18 = vld [vmem:[#allocation16 + $0x40] ss:$8 sps:$4 sm:$0xff]   ;;  %v5594_v61 = vld [vmem:[#allocation16 + $0x1b0] ss:$8 sps:$4 sm:$0xff]  }
 0xd86   : > { %v3128_v2 = vmul.f32 %v3126_v59, %v3118_v62  ;;  %v3127_v3 = vmul.f32 %v3122_v60, %v3117_v0  ;;  %v5596_v59 = vld [vmem:[#allocation16 + $0x1b4] ss:$8 sps:$4 sm:$0xff]   ;;  %v5591_v60 = vld [vmem:[#allocation16 + $0xb0] ss:$8 sps:$4 sm:$0xff]   ;;  %v5599_v62 = vld [vmem:[#allocation16 + $0xa4] ss:$8 sps:$4 sm:$0xff]  }
 0xd87   : > { %v5597_v0 = vld [vmem:[#allocation16 + $0xa0] ss:$8 sps:$4 sm:$0xff]  }
 0xd88   : > { %v6541_v4 = vadd.f32 %v3136_v63, %v3128_v2  ;;  %v6543_v5 = vadd.f32 %v3132_v1, %v3127_v3  ;;  %v5602_v63 = vld [vmem:[#allocation16 + $0x1a4] ss:$8 sps:$4 sm:$0xff]   ;;  %v5600_v1 = vld [vmem:[#allocation16 + $0x1a0] ss:$8 sps:$4 sm:$0xff]   ;;  %v5605_v2 = vld [vmem:[#allocation16 + $0x94] ss:$8 sps:$4 sm:$0xff]  }
 0xd89   : > { %v5608_v3 = vld [vmem:[#allocation16 + $0x194] ss:$8 sps:$4 sm:$0xff]  }
 0xd8a   : > { %v3140_v6 = vpack.c.bf16 %v6541_v4, %v6541_v4  ;;  %v3139_v7 = vpack.c.bf16 %v6543_v5, %v6543_v5 }
 0xd8c   : > { %3579 = vmatprep.mubr.bf16.mxu1 %v3140_v6  ;;  %3620 = vmatprep.mubr.bf16.mxu0 %v3140_v6  ;;  %v5603_v6 = vld [vmem:[#allocation16 + $0x90] ss:$8 sps:$4 sm:$0xff]  }
 0xd8d   : > { %3580 = vmatmul.mubr.bf16.vlgmr.msra.gmra.mxu1 %v3139_v7  ;;  %3621 = vmatmul.mubr.bf16.vlgmr.msra.gmra.mxu0 %v3139_v7  ;;  %v5606_v7 = vld [vmem:[#allocation16 + $0x190] ss:$8 sps:$4 sm:$0xff]  }
 0xd8e   : > { %4030 = vmatpush1.bf16.msra.mxu1 %v5519_v8  ;;  %4071 = vmatpush1.bf16.msra.mxu0 %v5522_v9  ;;  %v5611_v8 = vld [vmem:[#allocation16 + $0x84] ss:$8 sps:$4 sm:$0xff]  }
 0xd8f   : > { %4031 = vmatprep.subr.bf16.mxu1 %v5527_v14  ;;  %4072 = vmatprep.subr.bf16.mxu0 %v5530_v26  ;;  %v5614_v9 = vld [vmem:[#allocation16 + $0x184] ss:$8 sps:$4 sm:$0xff]   ;;  %v5609_v14 = vld [vmem:[#allocation16 + $0x80] ss:$8 sps:$4 sm:$0xff]  }
 0xd90   : > { %v5612_v26 = vld [vmem:[#allocation16 + $0x180] ss:$8 sps:$4 sm:$0xff]  }
 0xd92   : > { %4032 = vmatpush1.bf16.msra.mxu1 %v5525_v25  ;;  %4073 = vmatpush1.bf16.msra.mxu0 %v5528_v10  ;;  %v3205_v25 = vld [vmem:[%s6715_s5] sm:$0xf]  ;;  %v3221_v10 = vsub.s32 3, %v6421_v53 }
 0xd93   : > { %4033 = vmatprep.subr.bf16.mxu1 %v5533_v11  ;;  %4074 = vmatprep.subr.bf16.mxu0 %v5536_v12  ;;  %v3210_v11 = vrot.slane %v3205_v25, %v6424_v54  ;;  %v3218_v12 = vrot.slane %v3205_v25, %v6509_v22 }
 0xd96   : > { %4034 = vmatpush1.bf16.msra.mxu1 %v5531_v13  ;;  %4075 = vmatpush1.bf16.msra.mxu0 %v5534_v15  ;;  %v3214_v13 = vrot.slane %v3205_v25, %v6431_v57  ;;  %v3222_v15 = vrot.slane %v3205_v25, %v3221_v10 }
 0xd97   : > { %4035 = vmatprep.subr.bf16.mxu1 %v5539_v16  ;;  %4076 = vmatprep.subr.bf16.mxu0 %v5542_v17 }
 0xd9a   : > { %4036 = vmatpush1.bf16.msra.mxu1 %v5537_v18  ;;  %4077 = vmatpush1.bf16.msra.mxu0 %v5540_v19 }
 0xd9b   : > { %4037 = vmatprep.subr.bf16.mxu1 %v5545_v20  ;;  %4078 = vmatprep.subr.bf16.mxu0 %v5548_v21 }
 0xd9e   : > { %4038 = vmatpush1.bf16.msra.mxu1 %v5543_v23  ;;  %4079 = vmatpush1.bf16.msra.mxu0 %v5546_v24 }
 0xd9f   : > { %4039 = vmatprep.subr.bf16.mxu1 %v5551_v28  ;;  %4080 = vmatprep.subr.bf16.mxu0 %v5554_v29 }
 0xda2   : > { %4040 = vmatpush1.bf16.msra.mxu1 %v5549_v30  ;;  %4081 = vmatpush1.bf16.msra.mxu0 %v5552_v31 }
 0xda3   : > { %4041 = vmatprep.subr.bf16.mxu1 %v5557_v32  ;;  %4082 = vmatprep.subr.bf16.mxu0 %v5560_v33 }
 0xda6   : > { %4042 = vmatpush1.bf16.msra.mxu1 %v5555_v34  ;;  %4083 = vmatpush1.bf16.msra.mxu0 %v5558_v35 }
 0xda7   : > { %4043 = vmatprep.subr.bf16.mxu1 %v5563_v36  ;;  %4084 = vmatprep.subr.bf16.mxu0 %v5566_v37 }
 0xdaa   : > { %4044 = vmatpush1.bf16.msra.mxu1 %v5561_v38  ;;  %4085 = vmatpush1.bf16.msra.mxu0 %v5564_v41  ;;  %v5637_v38 = vld [vmem:[#allocation18] sm:$0xff] }
 0xdab   : > { %4045 = vmatprep.subr.bf16.mxu1 %v5569_v42  ;;  %4086 = vmatprep.subr.bf16.mxu0 %v5572_v43  ;;  %v3704_v41 = vrot.slane %v5637_v38, %v3221_v10  ;;  %v5638_v42 = vld [vmem:[#allocation18 + $0x8] sm:$0xff] }
 0xdac   : > { %v3708_v43 = vrot.slane %v5638_v42, %v3221_v10 }
 0xdae   : > { %4046 = vmatpush2.bf16.msra.mxu1 %v5567_v44  ;;  %4087 = vmatpush2.bf16.msra.mxu0 %v5570_v45 }
 0xdaf   : > { %4047 = vmatprep.subr.bf16.mxu1 %v5575_v40  ;;  %4088 = vmatprep.subr.bf16.mxu0 %v5578_v39 }
 0xdb2   : > { %4048 = vmatpush2.bf16.msra.mxu1 %v5573_v46  ;;  %4089 = vmatpush2.bf16.msra.mxu0 %v5576_v50 }
 0xdb3   : > { %4049 = vmatprep.subr.bf16.mxu1 %v5581_v27  ;;  %4090 = vmatprep.subr.bf16.mxu0 %v5584_v47 }
 0xdb6   : > { %4050 = vmatpush2.bf16.msra.mxu1 %v5579_v48  ;;  %4091 = vmatpush2.bf16.msra.mxu0 %v5582_v49 }
 0xdb7   : > { %4051 = vmatprep.subr.bf16.mxu1 %v5587_v51  ;;  %4092 = vmatprep.subr.bf16.mxu0 %v5590_v52 }
 0xdba   : > { %4052 = vmatpush2.bf16.msra.mxu1 %v5585_v55  ;;  %4093 = vmatpush2.bf16.msra.mxu0 %v5588_v56 }
 0xdbb   : > { %4053 = vmatprep.subr.bf16.mxu1 %v5593_v58  ;;  %4094 = vmatprep.subr.bf16.mxu0 %v5596_v59 }
 0xdbe   : > { %4054 = vmatpush2.bf16.msra.mxu1 %v5591_v60  ;;  %4095 = vmatpush2.bf16.msra.mxu0 %v5594_v61 }
 0xdbf   : > { %4055 = vmatprep.subr.bf16.mxu1 %v5599_v62  ;;  %4096 = vmatprep.subr.bf16.mxu0 %v5602_v63 }
 0xdc2   : > { %4056 = vmatpush2.bf16.msra.mxu1 %v5597_v0  ;;  %4097 = vmatpush2.bf16.msra.mxu0 %v5600_v1 }
 0xdc3   : > { %4057 = vmatprep.subr.bf16.mxu1 %v5605_v2  ;;  %4098 = vmatprep.subr.bf16.mxu0 %v5608_v3 }
 0xdc6   : > { %4058 = vmatpush2.bf16.msra.mxu1 %v5603_v6  ;;  %4099 = vmatpush2.bf16.msra.mxu0 %v5606_v7  ;;  %v1656_v7 = vld [vmem:[#allocation18 + $0x18] sm:$0x3] }
 0xdc7   : > { %4059 = vmatprep.subr.bf16.mxu1 %v5611_v8  ;;  %4100 = vmatprep.subr.bf16.mxu0 %v5614_v9  ;;  %v4136_v8 = vrot.slane %v1656_v7, %v6424_v54  ;;  %v4146_v10 = vrot.slane %v1656_v7, %v6431_v57 }
 0xdca   : > { %4060 = vmatpush2.bf16.msra.mxu1 %v5609_v14  ;;  %4101 = vmatpush2.bf16.msra.mxu0 %v5612_v26 }
 0xe4d   : > { %v3581_v16 = vpop.f32.mrf.mxu1  ;;  %v3622_v17 = vpop.f32.mrf.mxu0 }
 0xe4e   : > { %v3582_v18 = vadd.f32 %v3581_v16, %v3210_v11  ;;  %v3623_v19 = vadd.f32 %v3622_v17, %v3218_v12 }
 0xe4f   : > { %v3583_v20 = vpop.f32.mrf.mxu1  ;;  %v3624_v21 = vpop.f32.mrf.mxu0 }
 0xe50   : > { %v3584_v23 = vadd.f32 %v3583_v20, %v3214_v13  ;;  %v3625_v24 = vadd.f32 %v3624_v21, %v3222_v15  ;;  %v3629_v28 = vmax.f32 %v3582_v18, 0.0  ;;  %v3631_v29 = vmax.f32 %v3623_v19, 0.0 }
 0xe51   : > { %v3585_v30 = vpop.f32.mrf.mxu1  ;;  %v3626_v31 = vpop.f32.mrf.mxu0 }
 0xe52   : > { %v3630_v53 = vmax.f32 %v3584_v23, 0.0  ;;  %v3632_v32 = vmax.f32 %v3625_v24, 0.0  ;;  %v3633_v36 = vpack.c.bf16 %v3629_v28, %v3629_v28  ;;  %v3635_v37 = vpack.c.bf16 %v3631_v29, %v3631_v29 }
 0xe53   : > { %v3586_v33 = vpop.f32.mrf.mxu1  ;;  %v3627_v34 = vpop.f32.mrf.mxu0 }
 0xe54   : > { %v3634_v22 = vpack.c.bf16 %v3630_v53, %v3630_v53  ;;  %v3636_v35 = vpack.c.bf16 %v3632_v32, %v3632_v32 }
 0xe56   : > { %4061 = vmatprep.mubr.bf16.mxu1 %v3634_v22  ;;  %4102 = vmatprep.mubr.bf16.mxu0 %v3636_v35 }
 0xe57   : > { %4062 = vmatmul.mubr.bf16.vlgmr.msra.gmra.mxu1 %v3633_v36  ;;  %4103 = vmatmul.mubr.bf16.vlgmr.msra.gmra.mxu0 %v3635_v37 }
 0xf17   : > { %v4063_v44 = vpop.f32.mrf.mxu1  ;;  %v4104_v45 = vpop.f32.mrf.mxu0 }
 0xf18   : > { %v4064_v40 = vadd.f32 %v4063_v44, %v3704_v41 }
 0xf19   : > { %v4065_v39 = vpop.f32.mrf.mxu1  ;;  %v4106_v46 = vpop.f32.mrf.mxu0 }
 0xf1a   : > { %v4105_v50 = vadd.f32 %v4104_v45, %v4064_v40  ;;  %v4066_v27 = vadd.f32 %v4065_v39, %v3708_v43 }
 0xf1b   : > { %v4067_v47 = vpop.f32.mrf.mxu1  ;;  %v4108_v48 = vpop.f32.mrf.mxu0 }
 0xf1c   : > { %v4107_v49 = vadd.f32 %v4106_v46, %v4066_v27  ;;  %v4111_v55 = vadd.f32 %v4105_v50, %v6543_v5  ;;  %v1655_v5 = vld [vmem:[#allocation18 + $0x10] sm:$0x3] }
 0xf1d   : > { %v4068_v51 = vpop.f32.mrf.mxu1  ;;  %v4109_v52 = vpop.f32.mrf.mxu0  ;;  %v4142_v25 = vrot.slane %v1655_v5, %v6431_v57 }
 0xf1e   : > { %v4112_v56 = vadd.f32 %v4107_v49, %v6541_v4  ;;  %v4132_v4 = vrot.slane %v1655_v5, %v6424_v54 }
 0xf20   : > { %v4113_v58 = vadd.f32 %v4112_v56, %v4111_v55 }
 0xf22   : > { %4114 = vadd.xlane.f32.xlu0 %v4113_v58 }
 0xfab   : > { %v4115_v59 = vpop.xlane.xlu0 %4114 }
 0xfac   : > { %v4116_v60 = vmul.f32 0.00390625, %v4115_v59 }
 0xfae   : > { %v4117_v61 = vsub.f32 %v4111_v55, %v4116_v60  ;;  %v4118_v62 = vsub.f32 %v4112_v56, %v4116_v60 }
 0xfb0   : > { %v4119_v63 = vmul.f32 %v4117_v61, %v4117_v61  ;;  %v4120_v0 = vmul.f32 %v4118_v62, %v4118_v62 }
 0xfb2   : > { %v4121_v1 = vadd.f32 %v4120_v0, %v4119_v63 }
 0xfb4   : > { %4122 = vadd.xlane.f32.xlu1 %v4121_v1 }
0x103d   : > { %v4123_v2 = vpop.xlane.xlu1 %4122 }
0x103e   : > { %v4124_v3 = vmul.f32 0.00390625, %v4123_v2 }
0x1040   : > { %v4125_v6 = vadd.f32 1e-05, %v4124_v3 }
0x1042   : > { %5635 = vrsqrt.f32 %v4125_v6 }
0x104f   : > { %v5636_v9 = vpop.eup %5635 }
0x1050   : > { %v4127_v14 = vmul.f32 %v5636_v9, %v4117_v61  ;;  %v4128_v26 = vmul.f32 %v5636_v9, %v4118_v62 }
0x1052   : > { %v4137_v11 = vmul.f32 %v4132_v4, %v4127_v14  ;;  %v4138_v12 = vmul.f32 %v4136_v8, %v4128_v26 }
0x1054   : > { %v4147_v13 = vadd.f32 %v4142_v25, %v4137_v11  ;;  %v4148_v15 = vadd.f32 %v4146_v10, %v4138_v12 }
0x1056   : > { %4149 = vst [vmem:[%s6388_s15] sm:$0xff] %v4147_v13  ;;  %4150 = vst [vmem:[%s6388_s15 + $0x8] sm:$0xff] %v4148_v15 }
0x1057   : > { %5892 = shalt.err (!%p5889_p13)
}
0x1058   : > { %s5893_s15 = scalar_lea.hbm %s6568_s4, 256  ;;  %s5897_s16 = scalar_lea.hbm %s6719_s9, 1024 }
0x1059   : > { %p5894_p1 = scmp.ne.s32.totalorder %s6568_s4, %s5893_s15  ;;  %p5898_p4 = scmp.lt.s32.totalorder %s6568_s4, %s6719_s9 }
0x105a   : > { %p5899_p7 = scmp.lt.s32.totalorder %s5897_s16, %s5893_s15 }
0x105b   : > { %p5895_p0 = pnand %p5894_p1, %p6303_p2 }
0x105c   : > { %p5900_p12 = por %p5899_p7, %p5898_p4 }
0x105d   : > { %p5896_p5 = pneg %p5895_p0 }
0x105f   : > { %p5901_p10 = pnand %p5900_p12, %p5896_p5 }
0x1061   : > { %5904 = shalt.err (!%p5901_p10)
}
0x1062   : > { %4888 = dma.vmem_to_hbm [thread:$0]  (%p6303_p2), %s4169_s2, 256, %s6568_s4, %s4152_s19  }
0x1063 PF: > { %s6720_s8 = sld [smem:[#allocation26_spill]]  ;;  %p4936_p9 = scmp.ge.s32.totalorder %s6015_s13, 2 }
0x1064   : > { %p6721_p8 = scmp.ne.s32.totalorder %s6694_s17, 0 }
0x1066   : > { %p4920_p6 = pnand %p4936_p9, %p6721_p8 }
0x1068   : > { %p4921_p11 = pneg %p4920_p6 }
0x1069   : > { %s4180_s10 = sand.u32 1, %s6720_s8  }
0x106a   : > { %s4181_s29 = scalar_lea.sflag [#allocation6], %s4180_s10 }
0x106b   : > { %5970 = dma.done.wait (%p4921_p11), %s4181_s29, 256  }
0x106c   : > { %5972 = vsyncadd (%p4921_p11), %s4181_s29, 4294967040  ;;  %s34_s13 = sadd.s32 1, %s6015_s13   ;;  %s6722_s11 = sld [smem:[#allocation27_spill]] }
0x106d   : > { %p31_p3 = scmp.ge.s32.totalorder %s34_s13, 6   ;;  %s6723_s26 = sld [smem:[#allocation35_spill]] }
0x106e   : > { %s6724_s27 = sld [smem:[#allocation30_spill]]  ;;  %s6727_s21 = smov %s5979_s22 }
0x106f   : > { %s6725_s29 = sld [smem:[#allocation32_spill]]  ;;  %s6728_s22 = smov %s5983_s23 }
0x1070   : > { %s6726_s1 = sld [smem:[#allocation33_spill]]  ;;  %s6729_s23 = smov %s6317_s20 }
0x1071   : > { %s6730_s24 = smov %s5991_s25  ;;  %s6732_s28 = smov %s6011_s30 }
0x1072   : > { %s6731_s25 = smov %s6722_s11  ;;  %33 = sbr.rel (!%p31_p3) target bundleno = 27 (0x1b), region = 167 }
0x1076   : > { %s6733_s30 = smov %s6726_s1 }
0x1077   :  { %4186 = vsyncpa [#allocation5], 1 }
0x1078   :  { %4188 = vsyncpa [#allocation5 + $0x1], 1 }
0x1079   :  { %4189 = vsyncpa [#allocation8], 1 }
0x107a   :  { %4191 = vsyncpa [#allocation8 + $0x1], 1 }
0x107b   :  { %4192 = vsyncpa [#allocation11], 1 }
0x107c   :  { %4193 = vsyncpa [#allocation14], 1 }
0x107d   :  { %4194 = vsyncpa [#allocation17], 1 }
0x107e   :  { %4195 = vsyncpa [#allocation6], 1 }
0x107f   :  { %4197 = vsyncpa [#allocation6 + $0x1], 1 }

</bundles_post_ra>
